<compile_context>
chip_gen: v7x
topology: tpu7x:2x2x1
jax: 0.10.0
libtpu: 0.0.40
codegen_flags: <defaults>
</compile_context>

<pallas_src>
import functools

import jax
import jax.numpy as jnp
from jax import lax
from jax.experimental import pallas as pl
from jax.experimental.pallas import tpu as pltpu


def lstm_kernel(x_ref,        # (1, T*Bb, D)  time-major input chunk
                wih1_ref,     # (D, 4H)       W_ih_l0^T
                whh1_ref,     # (H, 4H)       W_hh_l0^T
                b1_ref,       # (1, 4H)       b_ih_l0 + b_hh_l0
                wih2_ref,     # (H, 4H)       W_ih_l1^T
                whh2_ref,     # (H, 4H)       W_hh_l1^T
                b2_ref,       # (1, 4H)       b_ih_l1 + b_hh_l1
                wfc_ref,      # (H, O)        W_fc^T
                bfc_ref,      # (1, O)        b_fc
                o_ref,        # (1, T*Bb, O)  output chunk
                h1_ref, c1_ref, h2_ref, c2_ref,   # (Bb, H) carried state
                g1_ref,       # (T*Bb, 4H)    hoisted layer-1 input projection
                h2seq_ref,    # (T*Bb, H)     layer-2 hidden states of chunk
                *, unroll):
    Bb, H = h1_ref.shape
    T = x_ref.shape[1] // Bb

    # Zero the carried h/c state at the start of each batch block's sweep.
    # Relies on the time grid axis being "arbitrary" (sequential, never
    # revisited) -- do not mark it "parallel".
    @pl.when(pl.program_id(1) == 0)
    def _init():
        h1_ref[...] = jnp.zeros_like(h1_ref)
        c1_ref[...] = jnp.zeros_like(c1_ref)
        h2_ref[...] = jnp.zeros_like(h2_ref)
        c2_ref[...] = jnp.zeros_like(c2_ref)

    # ---- Hoisted layer-1 input projection: ONE flattened MXU matmul
    # (M = T*Bb) per chunk; bias broadcast happens once per chunk.
    wih1 = wih1_ref[...]
    x_flat = x_ref[0]                                        # (T*Bb, D)
    g1_ref[...] = (
        jnp.dot(x_flat.astype(wih1.dtype), wih1,
                preferred_element_type=jnp.float32) + b1_ref[...])

    whh1 = whh1_ref[...]
    wih2 = wih2_ref[...]
    whh2 = whh2_ref[...]
    b2 = b2_ref[...]

    def cell(gates, c_prev):
        # PyTorch gate order (i, f, g, o); all gate/cell math kept in f32.
        i = jax.nn.sigmoid(gates[:, 0:H])
        f = jax.nn.sigmoid(gates[:, H:2 * H])
        g = jnp.tanh(gates[:, 2 * H:3 * H])
        o = jax.nn.sigmoid(gates[:, 3 * H:4 * H])
        c_new = f * c_prev + i * g
        return o * jnp.tanh(c_new), c_new

    # ---- Serial recurrence over the chunk; state lives in vregs (loop carry),
    # VMEM state refs are only touched at chunk boundaries.
    def step(t, carry):
        h1, c1, h2, c2 = carry
        rows = pl.ds(t * Bb, Bb)
        # Layer 1: only the recurrent matmul is left on the serial path.
        gates1 = g1_ref[rows, :] + jnp.dot(
            h1.astype(whh1.dtype), whh1, preferred_element_type=jnp.float32)
        h1, c1 = cell(gates1, c1)
        # TODO(synk): inter-layer dropout (p=0.5) is training-only; inference
        # semantics (identity) are implemented here.
        # Layer 2: two accumulated dots (no per-step concatenate copy).
        gates2 = (jnp.dot(h1.astype(wih2.dtype), wih2,
                          preferred_element_type=jnp.float32)
                  + jnp.dot(h2.astype(whh2.dtype), whh2,
                            preferred_element_type=jnp.float32)
                  + b2)
        h2, c2 = cell(gates2, c2)
        h2seq_ref[rows, :] = h2          # single per-step vector store
        return (h1, c1, h2, c2)

    carry0 = (h1_ref[...], c1_ref[...], h2_ref[...], c2_ref[...])
    h1f, c1f, h2f, c2f = lax.fori_loop(0, T, step, carry0, unroll=unroll)

    # Carry the state to the next time chunk.
    h1_ref[...] = h1f
    c1_ref[...] = c1f
    h2_ref[...] = h2f
    c2_ref[...] = c2f

    # ---- Hoisted final Linear: ONE flattened MXU matmul (M = T*Bb) and one
    # dense block store per chunk.
    wfc = wfc_ref[...]
    y = jnp.dot(h2seq_ref[...].astype(wfc.dtype), wfc,
                preferred_element_type=jnp.float32) + bfc_ref[...]
    o_ref[0] = y.astype(o_ref.dtype)


def _weight_spec(block_shape, weight_buffering):
    """Constant-index (weight/bias) BlockSpec, single-buffered when possible."""
    index_map = lambda bi, ti: (0, 0)
    if weight_buffering is not None:
        try:
            return pl.BlockSpec(block_shape, index_map,
                                pipeline_mode=pl.Buffered(weight_buffering))
        except Exception:  # older/newer jax without single-buffer support
            pass
    return pl.BlockSpec(block_shape, index_map)


def _vmem_estimate_bytes(Bb, T, D, H, O, w_itemsize, weight_buffers):
    weights = w_itemsize * (D * 4 * H + 3 * (H * 4 * H) + H * O)
    biases = 4 * (2 * 4 * H + O)
    x_chunk = 4 * T * Bb * D * 2          # double-buffered input chunk
    o_chunk = 4 * T * Bb * O * 2          # double-buffered output chunk
    scratch = 4 * (4 * Bb * H + T * Bb * 4 * H + T * Bb * H)
    temps = 4 * (2 * T * Bb * 4 * H)      # headroom for in-kernel temporaries
    return weight_buffers * (weights + biases) + x_chunk + o_chunk + scratch + temps


def _pick_time_chunk(S, Bb, D, H, O, w_itemsize, weight_buffers,
                     budget_bytes=40 << 20):
    # Largest divisor of S that keeps blocks (8,128)-legal and under a budget
    # chosen to be comfortable even on v7x's 64 MiB VMEM.
    candidates = [t for t in range(1, S + 1)
                  if S % t == 0 and (t % 8 == 0 or t == S)]
    for t in sorted(candidates, reverse=True):
        if _vmem_estimate_bytes(Bb, t, D, H, O, w_itemsize,
                                weight_buffers) <= budget_bytes:
            return t
    return min(candidates)


def lstm_forward(x, params, *, time_chunk=None, batch_block=None,
                 weight_buffering=1, unroll_cap=8):
    """x: (B, S, D) float32 -> (B, S, O) float32 (PyTorch-module semantics).

    NOTE: at the module's nominal input_size=512*512 the layer-0 weight is
    ~2 GiB and cannot be VMEM-resident; that regime needs a separate K-tiled
    pallas_call for the input projection (not implemented here).
    """
    B, S, D = x.shape
    H = params["whh1_T"].shape[0]
    O = params["wfc_T"].shape[1]

    Bb = B if batch_block is None else batch_block
    assert B % Bb == 0
    nb = B // Bb

    w_itemsize = params["wih1_T"].dtype.itemsize
    wbufs = 1 if weight_buffering is not None else 2

    if time_chunk is None:
        T = _pick_time_chunk(S, Bb, D, H, O, w_itemsize, wbufs)
    else:
        T = time_chunk
    assert S % T == 0 and (T % 8 == 0 or T == S)
    nt = S // T
    unroll = max(u for u in range(1, min(T, unroll_cap) + 1) if T % u == 0)

    # Wrapper-side layout plumbing (the PyTorch module itself permutes to
    # time-major): slab bi row (s*Bb + b) holds x[bi*Bb + b, s, :].
    x_r = x.reshape(nb, Bb, S, D).transpose(0, 2, 1, 3).reshape(nb, S * Bb, D)

    est = _vmem_estimate_bytes(Bb, T, D, H, O, w_itemsize, wbufs)
    vmem_limit = int(min(max(est * 5 // 4, 32 << 20), 96 << 20))

    out_flat = pl.pallas_call(
        functools.partial(lstm_kernel, unroll=unroll),
        out_shape=jax.ShapeDtypeStruct((nb, S * Bb, O), jnp.float32),
        grid_spec=pltpu.PrefetchScalarGridSpec(
            num_scalar_prefetch=0,
            grid=(nb, nt),
            in_specs=[
                pl.BlockSpec((1, T * Bb, D), lambda bi, ti: (bi, ti, 0)),
                _weight_spec((D, 4 * H), weight_buffering),   # W_ih_l0^T
                _weight_spec((H, 4 * H), weight_buffering),   # W_hh_l0^T
                _weight_spec((1, 4 * H), weight_buffering),   # b_l0
                _weight_spec((H, 4 * H), weight_buffering),   # W_ih_l1^T
                _weight_spec((H, 4 * H), weight_buffering),   # W_hh_l1^T
                _weight_spec((1, 4 * H), weight_buffering),   # b_l1
                _weight_spec((H, O), weight_buffering),       # W_fc^T
                _weight_spec((1, O), weight_buffering),       # b_fc
            ],
            out_specs=pl.BlockSpec((1, T * Bb, O), lambda bi, ti: (bi, ti, 0)),
            scratch_shapes=[
                pltpu.VMEM((Bb, H), jnp.float32),          # h1 (carried)
                pltpu.VMEM((Bb, H), jnp.float32),          # c1 (carried)
                pltpu.VMEM((Bb, H), jnp.float32),          # h2 (carried)
                pltpu.VMEM((Bb, H), jnp.float32),          # c2 (carried)
                pltpu.VMEM((T * Bb, 4 * H), jnp.float32),  # hoisted x-projection
                pltpu.VMEM((T * Bb, H), jnp.float32),      # chunk h2 sequence
            ],
        ),
        compiler_params=pltpu.CompilerParams(
            # batch blocks independent -> parallel (v7x 2-TC sharding);
            # time chunks carry state in scratch -> must stay arbitrary.
            dimension_semantics=("parallel", "arbitrary"),
            vmem_limit_bytes=vmem_limit,
        ),
    )(x_r,
      params["wih1_T"], params["whh1_T"], params["b1"],
      params["wih2_T"], params["whh2_T"], params["b2"],
      params["wfc_T"], params["bfc"])

    return (out_flat.reshape(nb, S, Bb, O)
            .transpose(0, 2, 1, 3)
            .reshape(B, S, O))


def init_params(key, input_size, hidden_size, output_size):
    """Deterministic PyTorch-style uniform(-1/sqrt(H), 1/sqrt(H)) init."""
    H = hidden_size
    k = float(H) ** -0.5
    keys = jax.random.split(key, 10)

    def u(kk, shape):
        return jax.random.uniform(kk, shape, jnp.float32, -k, k)

    wih1 = u(keys[0], (4 * H, input_size))
    whh1 = u(keys[1], (4 * H, H))
    bih1 = u(keys[2], (4 * H,))
    bhh1 = u(keys[3], (4 * H,))
    wih2 = u(keys[4], (4 * H, H))
    whh2 = u(keys[5], (4 * H, H))
    bih2 = u(keys[6], (4 * H,))
    bhh2 = u(keys[7], (4 * H,))
    wfc = u(keys[8], (output_size, H))
    bfc = u(keys[9], (output_size,))

    return {
        "wih1_T": wih1.T, "whh1_T": whh1.T, "b1": (bih1 + bhh1)[None, :],
        "wih2_T": wih2.T, "whh2_T": whh2.T, "b2": (bih2 + bhh2)[None, :],
        "wfc_T": wfc.T, "bfc": bfc[None, :],
    }


def cast_matmul_weights(params, dtype):
    """Cast MXU matmul weights (keep biases / gate math in f32)."""
    out = dict(params)
    for name in ("wih1_T", "whh1_T", "wih2_T", "whh2_T", "wfc_T"):
        out[name] = params[name].astype(dtype)
    return out


def lstm_forward_ref(x, params):
    """Pure-JAX reference (lax.scan, f32, HIGHEST matmul precision)."""
    B, S, D = x.shape
    H = params["whh1_T"].shape[0]
    hp = jax.lax.Precision.HIGHEST
    x_tm = jnp.transpose(x, (1, 0, 2))

    def cell(x_in, h, c, wih, whh, b):
        gates = (jnp.dot(x_in, wih, precision=hp)
                 + jnp.dot(h, whh, precision=hp) + b)
        i, f, g, o = jnp.split(gates, 4, axis=-1)
        c_new = jax.nn.sigmoid(f) * c + jax.nn.sigmoid(i) * jnp.tanh(g)
        h_new = jax.nn.sigmoid(o) * jnp.tanh(c_new)
        return h_new, c_new

    def step(carry, x_t):
        h1, c1, h2, c2 = carry
        h1, c1 = cell(x_t, h1, c1, params["wih1_T"], params["whh1_T"],
                      params["b1"])
        h2, c2 = cell(h1, h2, c2, params["wih2_T"], params["whh2_T"],
                      params["b2"])
        y = jnp.dot(h2, params["wfc_T"], precision=hp) + params["bfc"]
        return (h1, c1, h2, c2), y

    z = jnp.zeros((B, H), jnp.float32)
    _, ys = lax.scan(step, (z, z, z, z), x_tm)
    return jnp.transpose(ys, (1, 0, 2))


def _run(x, params, **kwargs):
    try:
        return jax.block_until_ready(lstm_forward(x, params, **kwargs))
    except Exception:
        # Fallback if this jax build rejects single-buffered weight specs.
        return jax.block_until_ready(
            lstm_forward(x, params, weight_buffering=None, **kwargs))


if __name__ == "__main__":
    # Small shapes consistent with the module's forward:
    #   x: (batch, seq, input_size) -> out: (batch, seq, output_size)
    B, S, D, H, O = 2, 16, 32, 32, 16
    key = jax.random.PRNGKey(0)
    kx, kp = jax.random.split(key)
    x = jax.random.normal(kx, (B, S, D), jnp.float32)
    params = init_params(kp, D, H, O)

    ref = jax.block_until_ready(lstm_forward_ref(x, params))

    # Run 1 (f32): exercise cross-chunk state carry (time_chunk=8 -> 2 chunks)
    # and the parallel batch grid axis (batch_block=1 -> 2 batch blocks).
    out = _run(x, params, time_chunk=8, batch_block=1)
    assert out.shape == (B, S, O), out.shape
    # Tolerance accommodates possible bf16-pass MXU matmuls vs the f32 ref;
    # structural bugs produce O(0.1+) differences and would still be caught.
    assert jnp.allclose(out, ref, atol=2e-2, rtol=2e-2), "f32 mismatch vs ref"

    # Run 2 (bf16 matmul weights, f32 gate math/accumulation), default tiling.
    params_bf16 = cast_matmul_weights(params, jnp.bfloat16)
    out_bf16 = _run(x, params_bf16)
    assert out_bf16.shape == (B, S, O), out_bf16.shape
    assert jnp.allclose(out_bf16, ref, atol=1e-1, rtol=1e-1), "bf16 mismatch"

    print("KERNEL_OK")
</pallas_src>

<mosaic_0001>
module attributes {stable_mosaic.version = 11 : i64} {
  func.func @lstm_kernel(%arg0: i32, %arg1: i32, %arg2: memref<1x8x32xf32, #tpu.memory_space<vmem>>, %arg3: memref<32x128xf32, #tpu.memory_space<vmem>>, %arg4: memref<32x128xf32, #tpu.memory_space<vmem>>, %arg5: memref<1x128xf32, #tpu.memory_space<vmem>>, %arg6: memref<32x128xf32, #tpu.memory_space<vmem>>, %arg7: memref<32x128xf32, #tpu.memory_space<vmem>>, %arg8: memref<1x128xf32, #tpu.memory_space<vmem>>, %arg9: memref<32x16xf32, #tpu.memory_space<vmem>>, %arg10: memref<1x16xf32, #tpu.memory_space<vmem>>, %arg11: memref<1x8x16xf32, #tpu.memory_space<vmem>>, %arg12: memref<1x32xf32, #tpu.memory_space<vmem>>, %arg13: memref<1x32xf32, #tpu.memory_space<vmem>>, %arg14: memref<1x32xf32, #tpu.memory_space<vmem>>, %arg15: memref<1x32xf32, #tpu.memory_space<vmem>>, %arg16: memref<8x128xf32, #tpu.memory_space<vmem>>, %arg17: memref<8x32xf32, #tpu.memory_space<vmem>>) attributes {dimension_semantics = [#tpu.dimension_semantics<parallel>, #tpu.dimension_semantics<arbitrary>], iteration_bounds = array<i64: 2, 2>, scalar_prefetch = 0 : i64, scratch_operands = 6 : i64, tpu.core_type = #tpu.core_type<tc>, window_params = [{transform_indices = @transform_0, window_bounds = array<i64: 1, 8, 32>}, {pipeline_mode = #tpu.pipeline_mode<synchronous>, transform_indices = @transform_1, window_bounds = array<i64: 32, 128>}, {pipeline_mode = #tpu.pipeline_mode<synchronous>, transform_indices = @transform_2, window_bounds = array<i64: 32, 128>}, {pipeline_mode = #tpu.pipeline_mode<synchronous>, transform_indices = @transform_3, window_bounds = array<i64: 1, 128>}, {pipeline_mode = #tpu.pipeline_mode<synchronous>, transform_indices = @transform_4, window_bounds = array<i64: 32, 128>}, {pipeline_mode = #tpu.pipeline_mode<synchronous>, transform_indices = @transform_5, window_bounds = array<i64: 32, 128>}, {pipeline_mode = #tpu.pipeline_mode<synchronous>, transform_indices = @transform_6, window_bounds = array<i64: 1, 128>}, {pipeline_mode = #tpu.pipeline_mode<synchronous>, transform_indices = @transform_7, window_bounds = array<i64: 32, 16>}, {pipeline_mode = #tpu.pipeline_mode<synchronous>, transform_indices = @transform_8, window_bounds = array<i64: 1, 16>}, {transform_indices = @transform_9, window_bounds = array<i64: 1, 8, 16>}]} {
    %c0_i32 = arith.constant 0 : i32
    %0 = arith.cmpi eq, %arg1, %c0_i32 : i32
    %1 = arith.extui %0 : i1 to i32
    %c0_i32_0 = arith.constant 0 : i32
    %2 = arith.cmpi ne, %1, %c0_i32_0 : i32
    scf.if %2 {
      %cst_140 = arith.constant 0.000000e+00 : f32
      %520 = vector.broadcast %cst_140 : f32 to vector<1x32xf32>
      %c0_141 = arith.constant 0 : index
      %c0_142 = arith.constant 0 : index
      %521 = vector.load %arg12[%c0_141, %c0_142] : memref<1x32xf32, #tpu.memory_space<vmem>>, vector<1x32xf32>
      tpu.vector_store %arg12[%c0_141, %c0_142], %520 {strides = array<i32>} : memref<1x32xf32, #tpu.memory_space<vmem>>, vector<1x32xf32>,
      %cst_143 = arith.constant 0.000000e+00 : f32
      %522 = vector.broadcast %cst_143 : f32 to vector<1x32xf32>
      %c0_144 = arith.constant 0 : index
      %c0_145 = arith.constant 0 : index
      %523 = vector.load %arg13[%c0_144, %c0_145] : memref<1x32xf32, #tpu.memory_space<vmem>>, vector<1x32xf32>
      tpu.vector_store %arg13[%c0_144, %c0_145], %522 {strides = array<i32>} : memref<1x32xf32, #tpu.memory_space<vmem>>, vector<1x32xf32>,
      %cst_146 = arith.constant 0.000000e+00 : f32
      %524 = vector.broadcast %cst_146 : f32 to vector<1x32xf32>
      %c0_147 = arith.constant 0 : index
      %c0_148 = arith.constant 0 : index
      %525 = vector.load %arg14[%c0_147, %c0_148] : memref<1x32xf32, #tpu.memory_space<vmem>>, vector<1x32xf32>
      tpu.vector_store %arg14[%c0_147, %c0_148], %524 {strides = array<i32>} : memref<1x32xf32, #tpu.memory_space<vmem>>, vector<1x32xf32>,
      %cst_149 = arith.constant 0.000000e+00 : f32
      %526 = vector.broadcast %cst_149 : f32 to vector<1x32xf32>
      %c0_150 = arith.constant 0 : index
      %c0_151 = arith.constant 0 : index
      %527 = vector.load %arg15[%c0_150, %c0_151] : memref<1x32xf32, #tpu.memory_space<vmem>>, vector<1x32xf32>
      tpu.vector_store %arg15[%c0_150, %c0_151], %526 {strides = array<i32>} : memref<1x32xf32, #tpu.memory_space<vmem>>, vector<1x32xf32>,
    } else {
    }
    %c0 = arith.constant 0 : index
    %c0_1 = arith.constant 0 : index
    %3 = vector.load %arg3[%c0, %c0_1] : memref<32x128xf32, #tpu.memory_space<vmem>>, vector<32x128xf32>
    %c0_2 = arith.constant 0 : index
    %c0_3 = arith.constant 0 : index
    %c0_4 = arith.constant 0 : index
    %4 = vector.load %arg2[%c0_2, %c0_3, %c0_4] : memref<1x8x32xf32, #tpu.memory_space<vmem>>, vector<1x8x32xf32>
    %5 = vector.shape_cast %4 : vector<1x8x32xf32> to vector<8x32xf32>
    %cst = arith.constant dense<0.000000e+00> : vector<8x128xf32>
    %6 = tpu.matmul %5, %3, %cst {dimension_numbers = #tpu.dot_dimension_numbers<[1], [0], [0], [1], [0, 0, 1, 1], [], []>} : vector<8x32xf32>, vector<32x128xf32>, vector<8x128xf32> -> vector<8x128xf32>
    %c0_5 = arith.constant 0 : index
    %c0_6 = arith.constant 0 : index
    %7 = vector.load %arg5[%c0_5, %c0_6] : memref<1x128xf32, #tpu.memory_space<vmem>>, vector<1x128xf32>
    %8 = vector.broadcast %7 : vector<1x128xf32> to vector<8x128xf32>
    %9 = arith.addf %6, %8 : vector<8x128xf32>
    %c0_7 = arith.constant 0 : index
    %c0_8 = arith.constant 0 : index
    %10 = vector.load %arg16[%c0_7, %c0_8] : memref<8x128xf32, #tpu.memory_space<vmem>>, vector<8x128xf32>
    tpu.vector_store %arg16[%c0_7, %c0_8], %9 {strides = array<i32>} : memref<8x128xf32, #tpu.memory_space<vmem>>, vector<8x128xf32>,
    %c0_9 = arith.constant 0 : index
    %c0_10 = arith.constant 0 : index
    %11 = vector.load %arg4[%c0_9, %c0_10] : memref<32x128xf32, #tpu.memory_space<vmem>>, vector<32x128xf32>
    %c0_11 = arith.constant 0 : index
    %c0_12 = arith.constant 0 : index
    %12 = vector.load %arg6[%c0_11, %c0_12] : memref<32x128xf32, #tpu.memory_space<vmem>>, vector<32x128xf32>
    %c0_13 = arith.constant 0 : index
    %c0_14 = arith.constant 0 : index
    %13 = vector.load %arg7[%c0_13, %c0_14] : memref<32x128xf32, #tpu.memory_space<vmem>>, vector<32x128xf32>
    %c0_15 = arith.constant 0 : index
    %c0_16 = arith.constant 0 : index
    %14 = vector.load %arg8[%c0_15, %c0_16] : memref<1x128xf32, #tpu.memory_space<vmem>>, vector<1x128xf32>
    %c0_17 = arith.constant 0 : index
    %c0_18 = arith.constant 0 : index
    %15 = vector.load %arg12[%c0_17, %c0_18] : memref<1x32xf32, #tpu.memory_space<vmem>>, vector<1x32xf32>
    %c0_19 = arith.constant 0 : index
    %c0_20 = arith.constant 0 : index
    %16 = vector.load %arg13[%c0_19, %c0_20] : memref<1x32xf32, #tpu.memory_space<vmem>>, vector<1x32xf32>
    %c0_21 = arith.constant 0 : index
    %c0_22 = arith.constant 0 : index
    %17 = vector.load %arg14[%c0_21, %c0_22] : memref<1x32xf32, #tpu.memory_space<vmem>>, vector<1x32xf32>
    %c0_23 = arith.constant 0 : index
    %c0_24 = arith.constant 0 : index
    %18 = vector.load %arg15[%c0_23, %c0_24] : memref<1x32xf32, #tpu.memory_space<vmem>>, vector<1x32xf32>
    %c0_i32_25 = arith.constant 0 : i32
    %c1_i32 = arith.constant 1 : i32
    %19 = arith.muli %c0_i32_25, %c1_i32 : i32
    %20 = arith.index_cast %19 : i32 to index
    %c0_26 = arith.constant 0 : index
    %21 = vector.load %arg16[%20, %c0_26] : memref<8x128xf32, #tpu.memory_space<vmem>>, vector<1x128xf32>
    %cst_27 = arith.constant dense<0.000000e+00> : vector<1x128xf32>
    %22 = tpu.matmul %15, %11, %cst_27 {dimension_numbers = #tpu.dot_dimension_numbers<[1], [0], [0], [1], [0, 0, 1, 1], [], []>} : vector<1x32xf32>, vector<32x128xf32>, vector<1x128xf32> -> vector<1x128xf32>
    %23 = arith.addf %21, %22 : vector<1x128xf32>
    %24 = vector.extract_strided_slice %23 {offsets = [0, 0], sizes = [1, 32], strides = [1, 1]} : vector<1x128xf32> to vector<1x32xf32>
    %25 = arith.negf %24 : vector<1x32xf32>
    %26 = math.exp %25 : vector<1x32xf32>
    %cst_28 = arith.constant 1.000000e+00 : f32
    %27 = vector.broadcast %cst_28 : f32 to vector<1x32xf32>
    %28 = arith.addf %27, %26 : vector<1x32xf32>
    %29 = arith.divf %27, %28 : vector<1x32xf32>
    %30 = vector.extract_strided_slice %23 {offsets = [0, 32], sizes = [1, 32], strides = [1, 1]} : vector<1x128xf32> to vector<1x32xf32>
    %31 = arith.negf %30 : vector<1x32xf32>
    %32 = math.exp %31 : vector<1x32xf32>
    %cst_29 = arith.constant 1.000000e+00 : f32
    %33 = vector.broadcast %cst_29 : f32 to vector<1x32xf32>
    %34 = arith.addf %33, %32 : vector<1x32xf32>
    %35 = arith.divf %33, %34 : vector<1x32xf32>
    %36 = vector.extract_strided_slice %23 {offsets = [0, 64], sizes = [1, 32], strides = [1, 1]} : vector<1x128xf32> to vector<1x32xf32>
    %37 = math.tanh %36 : vector<1x32xf32>
    %38 = vector.extract_strided_slice %23 {offsets = [0, 96], sizes = [1, 32], strides = [1, 1]} : vector<1x128xf32> to vector<1x32xf32>
    %39 = arith.negf %38 : vector<1x32xf32>
    %40 = math.exp %39 : vector<1x32xf32>
    %cst_30 = arith.constant 1.000000e+00 : f32
    %41 = vector.broadcast %cst_30 : f32 to vector<1x32xf32>
    %42 = arith.addf %41, %40 : vector<1x32xf32>
    %43 = arith.divf %41, %42 : vector<1x32xf32>
    %44 = arith.mulf %35, %16 : vector<1x32xf32>
    %45 = arith.mulf %29, %37 : vector<1x32xf32>
    %46 = arith.addf %44, %45 : vector<1x32xf32>
    %47 = math.tanh %46 : vector<1x32xf32>
    %48 = arith.mulf %43, %47 : vector<1x32xf32>
    %cst_31 = arith.constant dense<0.000000e+00> : vector<1x128xf32>
    %49 = tpu.matmul %48, %12, %cst_31 {dimension_numbers = #tpu.dot_dimension_numbers<[1], [0], [0], [1], [0, 0, 1, 1], [], []>} : vector<1x32xf32>, vector<32x128xf32>, vector<1x128xf32> -> vector<1x128xf32>
    %cst_32 = arith.constant dense<0.000000e+00> : vector<1x128xf32>
    %50 = tpu.matmul %17, %13, %cst_32 {dimension_numbers = #tpu.dot_dimension_numbers<[1], [0], [0], [1], [0, 0, 1, 1], [], []>} : vector<1x32xf32>, vector<32x128xf32>, vector<1x128xf32> -> vector<1x128xf32>
    %51 = arith.addf %49, %50 : vector<1x128xf32>
    %52 = arith.addf %51, %14 : vector<1x128xf32>
    %53 = vector.extract_strided_slice %52 {offsets = [0, 0], sizes = [1, 32], strides = [1, 1]} : vector<1x128xf32> to vector<1x32xf32>
    %54 = arith.negf %53 : vector<1x32xf32>
    %55 = math.exp %54 : vector<1x32xf32>
    %cst_33 = arith.constant 1.000000e+00 : f32
    %56 = vector.broadcast %cst_33 : f32 to vector<1x32xf32>
    %57 = arith.addf %56, %55 : vector<1x32xf32>
    %58 = arith.divf %56, %57 : vector<1x32xf32>
    %59 = vector.extract_strided_slice %52 {offsets = [0, 32], sizes = [1, 32], strides = [1, 1]} : vector<1x128xf32> to vector<1x32xf32>
    %60 = arith.negf %59 : vector<1x32xf32>
    %61 = math.exp %60 : vector<1x32xf32>
    %cst_34 = arith.constant 1.000000e+00 : f32
    %62 = vector.broadcast %cst_34 : f32 to vector<1x32xf32>
    %63 = arith.addf %62, %61 : vector<1x32xf32>
    %64 = arith.divf %62, %63 : vector<1x32xf32>
    %65 = vector.extract_strided_slice %52 {offsets = [0, 64], sizes = [1, 32], strides = [1, 1]} : vector<1x128xf32> to vector<1x32xf32>
    %66 = math.tanh %65 : vector<1x32xf32>
    %67 = vector.extract_strided_slice %52 {offsets = [0, 96], sizes = [1, 32], strides = [1, 1]} : vector<1x128xf32> to vector<1x32xf32>
    %68 = arith.negf %67 : vector<1x32xf32>
    %69 = math.exp %68 : vector<1x32xf32>
    %cst_35 = arith.constant 1.000000e+00 : f32
    %70 = vector.broadcast %cst_35 : f32 to vector<1x32xf32>
    %71 = arith.addf %70, %69 : vector<1x32xf32>
    %72 = arith.divf %70, %71 : vector<1x32xf32>
    %73 = arith.mulf %64, %18 : vector<1x32xf32>
    %74 = arith.mulf %58, %66 : vector<1x32xf32>
    %75 = arith.addf %73, %74 : vector<1x32xf32>
    %76 = math.tanh %75 : vector<1x32xf32>
    %77 = arith.mulf %72, %76 : vector<1x32xf32>
    %78 = arith.index_cast %19 : i32 to index
    %c0_36 = arith.constant 0 : index
    %79 = vector.load %arg17[%78, %c0_36] : memref<8x32xf32, #tpu.memory_space<vmem>>, vector<1x32xf32>
    tpu.vector_store %arg17[%78, %c0_36], %77 {strides = array<i32>} : memref<8x32xf32, #tpu.memory_space<vmem>>, vector<1x32xf32>,
    %c1_i32_37 = arith.constant 1 : i32
    %c1_i32_38 = arith.constant 1 : i32
    %80 = arith.muli %c1_i32_37, %c1_i32_38 : i32
    %81 = arith.index_cast %80 : i32 to index
    %c0_39 = arith.constant 0 : index
    %82 = vector.load %arg16[%81, %c0_39] : memref<8x128xf32, #tpu.memory_space<vmem>>, vector<1x128xf32>
    %cst_40 = arith.constant dense<0.000000e+00> : vector<1x128xf32>
    %83 = tpu.matmul %48, %11, %cst_40 {dimension_numbers = #tpu.dot_dimension_numbers<[1], [0], [0], [1], [0, 0, 1, 1], [], []>} : vector<1x32xf32>, vector<32x128xf32>, vector<1x128xf32> -> vector<1x128xf32>
    %84 = arith.addf %82, %83 : vector<1x128xf32>
    %85 = vector.extract_strided_slice %84 {offsets = [0, 0], sizes = [1, 32], strides = [1, 1]} : vector<1x128xf32> to vector<1x32xf32>
    %86 = arith.negf %85 : vector<1x32xf32>
    %87 = math.exp %86 : vector<1x32xf32>
    %cst_41 = arith.constant 1.000000e+00 : f32
    %88 = vector.broadcast %cst_41 : f32 to vector<1x32xf32>
    %89 = arith.addf %88, %87 : vector<1x32xf32>
    %90 = arith.divf %88, %89 : vector<1x32xf32>
    %91 = vector.extract_strided_slice %84 {offsets = [0, 32], sizes = [1, 32], strides = [1, 1]} : vector<1x128xf32> to vector<1x32xf32>
    %92 = arith.negf %91 : vector<1x32xf32>
    %93 = math.exp %92 : vector<1x32xf32>
    %cst_42 = arith.constant 1.000000e+00 : f32
    %94 = vector.broadcast %cst_42 : f32 to vector<1x32xf32>
    %95 = arith.addf %94, %93 : vector<1x32xf32>
    %96 = arith.divf %94, %95 : vector<1x32xf32>
    %97 = vector.extract_strided_slice %84 {offsets = [0, 64], sizes = [1, 32], strides = [1, 1]} : vector<1x128xf32> to vector<1x32xf32>
    %98 = math.tanh %97 : vector<1x32xf32>
    %99 = vector.extract_strided_slice %84 {offsets = [0, 96], sizes = [1, 32], strides = [1, 1]} : vector<1x128xf32> to vector<1x32xf32>
    %100 = arith.negf %99 : vector<1x32xf32>
    %101 = math.exp %100 : vector<1x32xf32>
    %cst_43 = arith.constant 1.000000e+00 : f32
    %102 = vector.broadcast %cst_43 : f32 to vector<1x32xf32>
    %103 = arith.addf %102, %101 : vector<1x32xf32>
    %104 = arith.divf %102, %103 : vector<1x32xf32>
    %105 = arith.mulf %96, %46 : vector<1x32xf32>
    %106 = arith.mulf %90, %98 : vector<1x32xf32>
    %107 = arith.addf %105, %106 : vector<1x32xf32>
    %108 = math.tanh %107 : vector<1x32xf32>
    %109 = arith.mulf %104, %108 : vector<1x32xf32>
    %cst_44 = arith.constant dense<0.000000e+00> : vector<1x128xf32>
    %110 = tpu.matmul %109, %12, %cst_44 {dimension_numbers = #tpu.dot_dimension_numbers<[1], [0], [0], [1], [0, 0, 1, 1], [], []>} : vector<1x32xf32>, vector<32x128xf32>, vector<1x128xf32> -> vector<1x128xf32>
    %cst_45 = arith.constant dense<0.000000e+00> : vector<1x128xf32>
    %111 = tpu.matmul %77, %13, %cst_45 {dimension_numbers = #tpu.dot_dimension_numbers<[1], [0], [0], [1], [0, 0, 1, 1], [], []>} : vector<1x32xf32>, vector<32x128xf32>, vector<1x128xf32> -> vector<1x128xf32>
    %112 = arith.addf %110, %111 : vector<1x128xf32>
    %113 = arith.addf %112, %14 : vector<1x128xf32>
    %114 = vector.extract_strided_slice %113 {offsets = [0, 0], sizes = [1, 32], strides = [1, 1]} : vector<1x128xf32> to vector<1x32xf32>
    %115 = arith.negf %114 : vector<1x32xf32>
    %116 = math.exp %115 : vector<1x32xf32>
    %cst_46 = arith.constant 1.000000e+00 : f32
    %117 = vector.broadcast %cst_46 : f32 to vector<1x32xf32>
    %118 = arith.addf %117, %116 : vector<1x32xf32>
    %119 = arith.divf %117, %118 : vector<1x32xf32>
    %120 = vector.extract_strided_slice %113 {offsets = [0, 32], sizes = [1, 32], strides = [1, 1]} : vector<1x128xf32> to vector<1x32xf32>
    %121 = arith.negf %120 : vector<1x32xf32>
    %122 = math.exp %121 : vector<1x32xf32>
    %cst_47 = arith.constant 1.000000e+00 : f32
    %123 = vector.broadcast %cst_47 : f32 to vector<1x32xf32>
    %124 = arith.addf %123, %122 : vector<1x32xf32>
    %125 = arith.divf %123, %124 : vector<1x32xf32>
    %126 = vector.extract_strided_slice %113 {offsets = [0, 64], sizes = [1, 32], strides = [1, 1]} : vector<1x128xf32> to vector<1x32xf32>
    %127 = math.tanh %126 : vector<1x32xf32>
    %128 = vector.extract_strided_slice %113 {offsets = [0, 96], sizes = [1, 32], strides = [1, 1]} : vector<1x128xf32> to vector<1x32xf32>
    %129 = arith.negf %128 : vector<1x32xf32>
    %130 = math.exp %129 : vector<1x32xf32>
    %cst_48 = arith.constant 1.000000e+00 : f32
    %131 = vector.broadcast %cst_48 : f32 to vector<1x32xf32>
    %132 = arith.addf %131, %130 : vector<1x32xf32>
    %133 = arith.divf %131, %132 : vector<1x32xf32>
    %134 = arith.mulf %125, %75 : vector<1x32xf32>
    %135 = arith.mulf %119, %127 : vector<1x32xf32>
    %136 = arith.addf %134, %135 : vector<1x32xf32>
    %137 = math.tanh %136 : vector<1x32xf32>
    %138 = arith.mulf %133, %137 : vector<1x32xf32>
    %139 = arith.index_cast %80 : i32 to index
    %c0_49 = arith.constant 0 : index
    %140 = vector.load %arg17[%139, %c0_49] : memref<8x32xf32, #tpu.memory_space<vmem>>, vector<1x32xf32>
    tpu.vector_store %arg17[%139, %c0_49], %138 {strides = array<i32>} : memref<8x32xf32, #tpu.memory_space<vmem>>, vector<1x32xf32>,
    %c2_i32 = arith.constant 2 : i32
    %c1_i32_50 = arith.constant 1 : i32
    %141 = arith.muli %c2_i32, %c1_i32_50 : i32
    %142 = arith.index_cast %141 : i32 to index
    %c0_51 = arith.constant 0 : index
    %143 = vector.load %arg16[%142, %c0_51] : memref<8x128xf32, #tpu.memory_space<vmem>>, vector<1x128xf32>
    %cst_52 = arith.constant dense<0.000000e+00> : vector<1x128xf32>
    %144 = tpu.matmul %109, %11, %cst_52 {dimension_numbers = #tpu.dot_dimension_numbers<[1], [0], [0], [1], [0, 0, 1, 1], [], []>} : vector<1x32xf32>, vector<32x128xf32>, vector<1x128xf32> -> vector<1x128xf32>
    %145 = arith.addf %143, %144 : vector<1x128xf32>
    %146 = vector.extract_strided_slice %145 {offsets = [0, 0], sizes = [1, 32], strides = [1, 1]} : vector<1x128xf32> to vector<1x32xf32>
    %147 = arith.negf %146 : vector<1x32xf32>
    %148 = math.exp %147 : vector<1x32xf32>
    %cst_53 = arith.constant 1.000000e+00 : f32
    %149 = vector.broadcast %cst_53 : f32 to vector<1x32xf32>
    %150 = arith.addf %149, %148 : vector<1x32xf32>
    %151 = arith.divf %149, %150 : vector<1x32xf32>
    %152 = vector.extract_strided_slice %145 {offsets = [0, 32], sizes = [1, 32], strides = [1, 1]} : vector<1x128xf32> to vector<1x32xf32>
    %153 = arith.negf %152 : vector<1x32xf32>
    %154 = math.exp %153 : vector<1x32xf32>
    %cst_54 = arith.constant 1.000000e+00 : f32
    %155 = vector.broadcast %cst_54 : f32 to vector<1x32xf32>
    %156 = arith.addf %155, %154 : vector<1x32xf32>
    %157 = arith.divf %155, %156 : vector<1x32xf32>
    %158 = vector.extract_strided_slice %145 {offsets = [0, 64], sizes = [1, 32], strides = [1, 1]} : vector<1x128xf32> to vector<1x32xf32>
    %159 = math.tanh %158 : vector<1x32xf32>
    %160 = vector.extract_strided_slice %145 {offsets = [0, 96], sizes = [1, 32], strides = [1, 1]} : vector<1x128xf32> to vector<1x32xf32>
    %161 = arith.negf %160 : vector<1x32xf32>
    %162 = math.exp %161 : vector<1x32xf32>
    %cst_55 = arith.constant 1.000000e+00 : f32
    %163 = vector.broadcast %cst_55 : f32 to vector<1x32xf32>
    %164 = arith.addf %163, %162 : vector<1x32xf32>
    %165 = arith.divf %163, %164 : vector<1x32xf32>
    %166 = arith.mulf %157, %107 : vector<1x32xf32>
    %167 = arith.mulf %151, %159 : vector<1x32xf32>
    %168 = arith.addf %166, %167 : vector<1x32xf32>
    %169 = math.tanh %168 : vector<1x32xf32>
    %170 = arith.mulf %165, %169 : vector<1x32xf32>
    %cst_56 = arith.constant dense<0.000000e+00> : vector<1x128xf32>
    %171 = tpu.matmul %170, %12, %cst_56 {dimension_numbers = #tpu.dot_dimension_numbers<[1], [0], [0], [1], [0, 0, 1, 1], [], []>} : vector<1x32xf32>, vector<32x128xf32>, vector<1x128xf32> -> vector<1x128xf32>
    %cst_57 = arith.constant dense<0.000000e+00> : vector<1x128xf32>
    %172 = tpu.matmul %138, %13, %cst_57 {dimension_numbers = #tpu.dot_dimension_numbers<[1], [0], [0], [1], [0, 0, 1, 1], [], []>} : vector<1x32xf32>, vector<32x128xf32>, vector<1x128xf32> -> vector<1x128xf32>
    %173 = arith.addf %171, %172 : vector<1x128xf32>
    %174 = arith.addf %173, %14 : vector<1x128xf32>
    %175 = vector.extract_strided_slice %174 {offsets = [0, 0], sizes = [1, 32], strides = [1, 1]} : vector<1x128xf32> to vector<1x32xf32>
    %176 = arith.negf %175 : vector<1x32xf32>
    %177 = math.exp %176 : vector<1x32xf32>
    %cst_58 = arith.constant 1.000000e+00 : f32
    %178 = vector.broadcast %cst_58 : f32 to vector<1x32xf32>
    %179 = arith.addf %178, %177 : vector<1x32xf32>
    %180 = arith.divf %178, %179 : vector<1x32xf32>
    %181 = vector.extract_strided_slice %174 {offsets = [0, 32], sizes = [1, 32], strides = [1, 1]} : vector<1x128xf32> to vector<1x32xf32>
    %182 = arith.negf %181 : vector<1x32xf32>
    %183 = math.exp %182 : vector<1x32xf32>
    %cst_59 = arith.constant 1.000000e+00 : f32
    %184 = vector.broadcast %cst_59 : f32 to vector<1x32xf32>
    %185 = arith.addf %184, %183 : vector<1x32xf32>
    %186 = arith.divf %184, %185 : vector<1x32xf32>
    %187 = vector.extract_strided_slice %174 {offsets = [0, 64], sizes = [1, 32], strides = [1, 1]} : vector<1x128xf32> to vector<1x32xf32>
    %188 = math.tanh %187 : vector<1x32xf32>
    %189 = vector.extract_strided_slice %174 {offsets = [0, 96], sizes = [1, 32], strides = [1, 1]} : vector<1x128xf32> to vector<1x32xf32>
    %190 = arith.negf %189 : vector<1x32xf32>
    %191 = math.exp %190 : vector<1x32xf32>
    %cst_60 = arith.constant 1.000000e+00 : f32
    %192 = vector.broadcast %cst_60 : f32 to vector<1x32xf32>
    %193 = arith.addf %192, %191 : vector<1x32xf32>
    %194 = arith.divf %192, %193 : vector<1x32xf32>
    %195 = arith.mulf %186, %136 : vector<1x32xf32>
    %196 = arith.mulf %180, %188 : vector<1x32xf32>
    %197 = arith.addf %195, %196 : vector<1x32xf32>
    %198 = math.tanh %197 : vector<1x32xf32>
    %199 = arith.mulf %194, %198 : vector<1x32xf32>
    %200 = arith.index_cast %141 : i32 to index
    %c0_61 = arith.constant 0 : index
    %201 = vector.load %arg17[%200, %c0_61] : memref<8x32xf32, #tpu.memory_space<vmem>>, vector<1x32xf32>
    tpu.vector_store %arg17[%200, %c0_61], %199 {strides = array<i32>} : memref<8x32xf32, #tpu.memory_space<vmem>>, vector<1x32xf32>,
    %c3_i32 = arith.constant 3 : i32
    %c1_i32_62 = arith.constant 1 : i32
    %202 = arith.muli %c3_i32, %c1_i32_62 : i32
    %203 = arith.index_cast %202 : i32 to index
    %c0_63 = arith.constant 0 : index
    %204 = vector.load %arg16[%203, %c0_63] : memref<8x128xf32, #tpu.memory_space<vmem>>, vector<1x128xf32>
    %cst_64 = arith.constant dense<0.000000e+00> : vector<1x128xf32>
    %205 = tpu.matmul %170, %11, %cst_64 {dimension_numbers = #tpu.dot_dimension_numbers<[1], [0], [0], [1], [0, 0, 1, 1], [], []>} : vector<1x32xf32>, vector<32x128xf32>, vector<1x128xf32> -> vector<1x128xf32>
    %206 = arith.addf %204, %205 : vector<1x128xf32>
    %207 = vector.extract_strided_slice %206 {offsets = [0, 0], sizes = [1, 32], strides = [1, 1]} : vector<1x128xf32> to vector<1x32xf32>
    %208 = arith.negf %207 : vector<1x32xf32>
    %209 = math.exp %208 : vector<1x32xf32>
    %cst_65 = arith.constant 1.000000e+00 : f32
    %210 = vector.broadcast %cst_65 : f32 to vector<1x32xf32>
    %211 = arith.addf %210, %209 : vector<1x32xf32>
    %212 = arith.divf %210, %211 : vector<1x32xf32>
    %213 = vector.extract_strided_slice %206 {offsets = [0, 32], sizes = [1, 32], strides = [1, 1]} : vector<1x128xf32> to vector<1x32xf32>
    %214 = arith.negf %213 : vector<1x32xf32>
    %215 = math.exp %214 : vector<1x32xf32>
    %cst_66 = arith.constant 1.000000e+00 : f32
    %216 = vector.broadcast %cst_66 : f32 to vector<1x32xf32>
    %217 = arith.addf %216, %215 : vector<1x32xf32>
    %218 = arith.divf %216, %217 : vector<1x32xf32>
    %219 = vector.extract_strided_slice %206 {offsets = [0, 64], sizes = [1, 32], strides = [1, 1]} : vector<1x128xf32> to vector<1x32xf32>
    %220 = math.tanh %219 : vector<1x32xf32>
    %221 = vector.extract_strided_slice %206 {offsets = [0, 96], sizes = [1, 32], strides = [1, 1]} : vector<1x128xf32> to vector<1x32xf32>
    %222 = arith.negf %221 : vector<1x32xf32>
    %223 = math.exp %222 : vector<1x32xf32>
    %cst_67 = arith.constant 1.000000e+00 : f32
    %224 = vector.broadcast %cst_67 : f32 to vector<1x32xf32>
    %225 = arith.addf %224, %223 : vector<1x32xf32>
    %226 = arith.divf %224, %225 : vector<1x32xf32>
    %227 = arith.mulf %218, %168 : vector<1x32xf32>
    %228 = arith.mulf %212, %220 : vector<1x32xf32>
    %229 = arith.addf %227, %228 : vector<1x32xf32>
    %230 = math.tanh %229 : vector<1x32xf32>
    %231 = arith.mulf %226, %230 : vector<1x32xf32>
    %cst_68 = arith.constant dense<0.000000e+00> : vector<1x128xf32>
    %232 = tpu.matmul %231, %12, %cst_68 {dimension_numbers = #tpu.dot_dimension_numbers<[1], [0], [0], [1], [0, 0, 1, 1], [], []>} : vector<1x32xf32>, vector<32x128xf32>, vector<1x128xf32> -> vector<1x128xf32>
    %cst_69 = arith.constant dense<0.000000e+00> : vector<1x128xf32>
    %233 = tpu.matmul %199, %13, %cst_69 {dimension_numbers = #tpu.dot_dimension_numbers<[1], [0], [0], [1], [0, 0, 1, 1], [], []>} : vector<1x32xf32>, vector<32x128xf32>, vector<1x128xf32> -> vector<1x128xf32>
    %234 = arith.addf %232, %233 : vector<1x128xf32>
    %235 = arith.addf %234, %14 : vector<1x128xf32>
    %236 = vector.extract_strided_slice %235 {offsets = [0, 0], sizes = [1, 32], strides = [1, 1]} : vector<1x128xf32> to vector<1x32xf32>
    %237 = arith.negf %236 : vector<1x32xf32>
    %238 = math.exp %237 : vector<1x32xf32>
    %cst_70 = arith.constant 1.000000e+00 : f32
    %239 = vector.broadcast %cst_70 : f32 to vector<1x32xf32>
    %240 = arith.addf %239, %238 : vector<1x32xf32>
    %241 = arith.divf %239, %240 : vector<1x32xf32>
    %242 = vector.extract_strided_slice %235 {offsets = [0, 32], sizes = [1, 32], strides = [1, 1]} : vector<1x128xf32> to vector<1x32xf32>
    %243 = arith.negf %242 : vector<1x32xf32>
    %244 = math.exp %243 : vector<1x32xf32>
    %cst_71 = arith.constant 1.000000e+00 : f32
    %245 = vector.broadcast %cst_71 : f32 to vector<1x32xf32>
    %246 = arith.addf %245, %244 : vector<1x32xf32>
    %247 = arith.divf %245, %246 : vector<1x32xf32>
    %248 = vector.extract_strided_slice %235 {offsets = [0, 64], sizes = [1, 32], strides = [1, 1]} : vector<1x128xf32> to vector<1x32xf32>
    %249 = math.tanh %248 : vector<1x32xf32>
    %250 = vector.extract_strided_slice %235 {offsets = [0, 96], sizes = [1, 32], strides = [1, 1]} : vector<1x128xf32> to vector<1x32xf32>
    %251 = arith.negf %250 : vector<1x32xf32>
    %252 = math.exp %251 : vector<1x32xf32>
    %cst_72 = arith.constant 1.000000e+00 : f32
    %253 = vector.broadcast %cst_72 : f32 to vector<1x32xf32>
    %254 = arith.addf %253, %252 : vector<1x32xf32>
    %255 = arith.divf %253, %254 : vector<1x32xf32>
    %256 = arith.mulf %247, %197 : vector<1x32xf32>
    %257 = arith.mulf %241, %249 : vector<1x32xf32>
    %258 = arith.addf %256, %257 : vector<1x32xf32>
    %259 = math.tanh %258 : vector<1x32xf32>
    %260 = arith.mulf %255, %259 : vector<1x32xf32>
    %261 = arith.index_cast %202 : i32 to index
    %c0_73 = arith.constant 0 : index
    %262 = vector.load %arg17[%261, %c0_73] : memref<8x32xf32, #tpu.memory_space<vmem>>, vector<1x32xf32>
    tpu.vector_store %arg17[%261, %c0_73], %260 {strides = array<i32>} : memref<8x32xf32, #tpu.memory_space<vmem>>, vector<1x32xf32>,
    %c4_i32 = arith.constant 4 : i32
    %c1_i32_74 = arith.constant 1 : i32
    %263 = arith.muli %c4_i32, %c1_i32_74 : i32
    %264 = arith.index_cast %263 : i32 to index
    %c0_75 = arith.constant 0 : index
    %265 = vector.load %arg16[%264, %c0_75] : memref<8x128xf32, #tpu.memory_space<vmem>>, vector<1x128xf32>
    %cst_76 = arith.constant dense<0.000000e+00> : vector<1x128xf32>
    %266 = tpu.matmul %231, %11, %cst_76 {dimension_numbers = #tpu.dot_dimension_numbers<[1], [0], [0], [1], [0, 0, 1, 1], [], []>} : vector<1x32xf32>, vector<32x128xf32>, vector<1x128xf32> -> vector<1x128xf32>
    %267 = arith.addf %265, %266 : vector<1x128xf32>
    %268 = vector.extract_strided_slice %267 {offsets = [0, 0], sizes = [1, 32], strides = [1, 1]} : vector<1x128xf32> to vector<1x32xf32>
    %269 = arith.negf %268 : vector<1x32xf32>
    %270 = math.exp %269 : vector<1x32xf32>
    %cst_77 = arith.constant 1.000000e+00 : f32
    %271 = vector.broadcast %cst_77 : f32 to vector<1x32xf32>
    %272 = arith.addf %271, %270 : vector<1x32xf32>
    %273 = arith.divf %271, %272 : vector<1x32xf32>
    %274 = vector.extract_strided_slice %267 {offsets = [0, 32], sizes = [1, 32], strides = [1, 1]} : vector<1x128xf32> to vector<1x32xf32>
    %275 = arith.negf %274 : vector<1x32xf32>
    %276 = math.exp %275 : vector<1x32xf32>
    %cst_78 = arith.constant 1.000000e+00 : f32
    %277 = vector.broadcast %cst_78 : f32 to vector<1x32xf32>
    %278 = arith.addf %277, %276 : vector<1x32xf32>
    %279 = arith.divf %277, %278 : vector<1x32xf32>
    %280 = vector.extract_strided_slice %267 {offsets = [0, 64], sizes = [1, 32], strides = [1, 1]} : vector<1x128xf32> to vector<1x32xf32>
    %281 = math.tanh %280 : vector<1x32xf32>
    %282 = vector.extract_strided_slice %267 {offsets = [0, 96], sizes = [1, 32], strides = [1, 1]} : vector<1x128xf32> to vector<1x32xf32>
    %283 = arith.negf %282 : vector<1x32xf32>
    %284 = math.exp %283 : vector<1x32xf32>
    %cst_79 = arith.constant 1.000000e+00 : f32
    %285 = vector.broadcast %cst_79 : f32 to vector<1x32xf32>
    %286 = arith.addf %285, %284 : vector<1x32xf32>
    %287 = arith.divf %285, %286 : vector<1x32xf32>
    %288 = arith.mulf %279, %229 : vector<1x32xf32>
    %289 = arith.mulf %273, %281 : vector<1x32xf32>
    %290 = arith.addf %288, %289 : vector<1x32xf32>
    %291 = math.tanh %290 : vector<1x32xf32>
    %292 = arith.mulf %287, %291 : vector<1x32xf32>
    %cst_80 = arith.constant dense<0.000000e+00> : vector<1x128xf32>
    %293 = tpu.matmul %292, %12, %cst_80 {dimension_numbers = #tpu.dot_dimension_numbers<[1], [0], [0], [1], [0, 0, 1, 1], [], []>} : vector<1x32xf32>, vector<32x128xf32>, vector<1x128xf32> -> vector<1x128xf32>
    %cst_81 = arith.constant dense<0.000000e+00> : vector<1x128xf32>
    %294 = tpu.matmul %260, %13, %cst_81 {dimension_numbers = #tpu.dot_dimension_numbers<[1], [0], [0], [1], [0, 0, 1, 1], [], []>} : vector<1x32xf32>, vector<32x128xf32>, vector<1x128xf32> -> vector<1x128xf32>
    %295 = arith.addf %293, %294 : vector<1x128xf32>
    %296 = arith.addf %295, %14 : vector<1x128xf32>
    %297 = vector.extract_strided_slice %296 {offsets = [0, 0], sizes = [1, 32], strides = [1, 1]} : vector<1x128xf32> to vector<1x32xf32>
    %298 = arith.negf %297 : vector<1x32xf32>
    %299 = math.exp %298 : vector<1x32xf32>
    %cst_82 = arith.constant 1.000000e+00 : f32
    %300 = vector.broadcast %cst_82 : f32 to vector<1x32xf32>
    %301 = arith.addf %300, %299 : vector<1x32xf32>
    %302 = arith.divf %300, %301 : vector<1x32xf32>
    %303 = vector.extract_strided_slice %296 {offsets = [0, 32], sizes = [1, 32], strides = [1, 1]} : vector<1x128xf32> to vector<1x32xf32>
    %304 = arith.negf %303 : vector<1x32xf32>
    %305 = math.exp %304 : vector<1x32xf32>
    %cst_83 = arith.constant 1.000000e+00 : f32
    %306 = vector.broadcast %cst_83 : f32 to vector<1x32xf32>
    %307 = arith.addf %306, %305 : vector<1x32xf32>
    %308 = arith.divf %306, %307 : vector<1x32xf32>
    %309 = vector.extract_strided_slice %296 {offsets = [0, 64], sizes = [1, 32], strides = [1, 1]} : vector<1x128xf32> to vector<1x32xf32>
    %310 = math.tanh %309 : vector<1x32xf32>
    %311 = vector.extract_strided_slice %296 {offsets = [0, 96], sizes = [1, 32], strides = [1, 1]} : vector<1x128xf32> to vector<1x32xf32>
    %312 = arith.negf %311 : vector<1x32xf32>
    %313 = math.exp %312 : vector<1x32xf32>
    %cst_84 = arith.constant 1.000000e+00 : f32
    %314 = vector.broadcast %cst_84 : f32 to vector<1x32xf32>
    %315 = arith.addf %314, %313 : vector<1x32xf32>
    %316 = arith.divf %314, %315 : vector<1x32xf32>
    %317 = arith.mulf %308, %258 : vector<1x32xf32>
    %318 = arith.mulf %302, %310 : vector<1x32xf32>
    %319 = arith.addf %317, %318 : vector<1x32xf32>
    %320 = math.tanh %319 : vector<1x32xf32>
    %321 = arith.mulf %316, %320 : vector<1x32xf32>
    %322 = arith.index_cast %263 : i32 to index
    %c0_85 = arith.constant 0 : index
    %323 = vector.load %arg17[%322, %c0_85] : memref<8x32xf32, #tpu.memory_space<vmem>>, vector<1x32xf32>
    tpu.vector_store %arg17[%322, %c0_85], %321 {strides = array<i32>} : memref<8x32xf32, #tpu.memory_space<vmem>>, vector<1x32xf32>,
    %c5_i32 = arith.constant 5 : i32
    %c1_i32_86 = arith.constant 1 : i32
    %324 = arith.muli %c5_i32, %c1_i32_86 : i32
    %325 = arith.index_cast %324 : i32 to index
    %c0_87 = arith.constant 0 : index
    %326 = vector.load %arg16[%325, %c0_87] : memref<8x128xf32, #tpu.memory_space<vmem>>, vector<1x128xf32>
    %cst_88 = arith.constant dense<0.000000e+00> : vector<1x128xf32>
    %327 = tpu.matmul %292, %11, %cst_88 {dimension_numbers = #tpu.dot_dimension_numbers<[1], [0], [0], [1], [0, 0, 1, 1], [], []>} : vector<1x32xf32>, vector<32x128xf32>, vector<1x128xf32> -> vector<1x128xf32>
    %328 = arith.addf %326, %327 : vector<1x128xf32>
    %329 = vector.extract_strided_slice %328 {offsets = [0, 0], sizes = [1, 32], strides = [1, 1]} : vector<1x128xf32> to vector<1x32xf32>
    %330 = arith.negf %329 : vector<1x32xf32>
    %331 = math.exp %330 : vector<1x32xf32>
    %cst_89 = arith.constant 1.000000e+00 : f32
    %332 = vector.broadcast %cst_89 : f32 to vector<1x32xf32>
    %333 = arith.addf %332, %331 : vector<1x32xf32>
    %334 = arith.divf %332, %333 : vector<1x32xf32>
    %335 = vector.extract_strided_slice %328 {offsets = [0, 32], sizes = [1, 32], strides = [1, 1]} : vector<1x128xf32> to vector<1x32xf32>
    %336 = arith.negf %335 : vector<1x32xf32>
    %337 = math.exp %336 : vector<1x32xf32>
    %cst_90 = arith.constant 1.000000e+00 : f32
    %338 = vector.broadcast %cst_90 : f32 to vector<1x32xf32>
    %339 = arith.addf %338, %337 : vector<1x32xf32>
    %340 = arith.divf %338, %339 : vector<1x32xf32>
    %341 = vector.extract_strided_slice %328 {offsets = [0, 64], sizes = [1, 32], strides = [1, 1]} : vector<1x128xf32> to vector<1x32xf32>
    %342 = math.tanh %341 : vector<1x32xf32>
    %343 = vector.extract_strided_slice %328 {offsets = [0, 96], sizes = [1, 32], strides = [1, 1]} : vector<1x128xf32> to vector<1x32xf32>
    %344 = arith.negf %343 : vector<1x32xf32>
    %345 = math.exp %344 : vector<1x32xf32>
    %cst_91 = arith.constant 1.000000e+00 : f32
    %346 = vector.broadcast %cst_91 : f32 to vector<1x32xf32>
    %347 = arith.addf %346, %345 : vector<1x32xf32>
    %348 = arith.divf %346, %347 : vector<1x32xf32>
    %349 = arith.mulf %340, %290 : vector<1x32xf32>
    %350 = arith.mulf %334, %342 : vector<1x32xf32>
    %351 = arith.addf %349, %350 : vector<1x32xf32>
    %352 = math.tanh %351 : vector<1x32xf32>
    %353 = arith.mulf %348, %352 : vector<1x32xf32>
    %cst_92 = arith.constant dense<0.000000e+00> : vector<1x128xf32>
    %354 = tpu.matmul %353, %12, %cst_92 {dimension_numbers = #tpu.dot_dimension_numbers<[1], [0], [0], [1], [0, 0, 1, 1], [], []>} : vector<1x32xf32>, vector<32x128xf32>, vector<1x128xf32> -> vector<1x128xf32>
    %cst_93 = arith.constant dense<0.000000e+00> : vector<1x128xf32>
    %355 = tpu.matmul %321, %13, %cst_93 {dimension_numbers = #tpu.dot_dimension_numbers<[1], [0], [0], [1], [0, 0, 1, 1], [], []>} : vector<1x32xf32>, vector<32x128xf32>, vector<1x128xf32> -> vector<1x128xf32>
    %356 = arith.addf %354, %355 : vector<1x128xf32>
    %357 = arith.addf %356, %14 : vector<1x128xf32>
    %358 = vector.extract_strided_slice %357 {offsets = [0, 0], sizes = [1, 32], strides = [1, 1]} : vector<1x128xf32> to vector<1x32xf32>
    %359 = arith.negf %358 : vector<1x32xf32>
    %360 = math.exp %359 : vector<1x32xf32>
    %cst_94 = arith.constant 1.000000e+00 : f32
    %361 = vector.broadcast %cst_94 : f32 to vector<1x32xf32>
    %362 = arith.addf %361, %360 : vector<1x32xf32>
    %363 = arith.divf %361, %362 : vector<1x32xf32>
    %364 = vector.extract_strided_slice %357 {offsets = [0, 32], sizes = [1, 32], strides = [1, 1]} : vector<1x128xf32> to vector<1x32xf32>
    %365 = arith.negf %364 : vector<1x32xf32>
    %366 = math.exp %365 : vector<1x32xf32>
    %cst_95 = arith.constant 1.000000e+00 : f32
    %367 = vector.broadcast %cst_95 : f32 to vector<1x32xf32>
    %368 = arith.addf %367, %366 : vector<1x32xf32>
    %369 = arith.divf %367, %368 : vector<1x32xf32>
    %370 = vector.extract_strided_slice %357 {offsets = [0, 64], sizes = [1, 32], strides = [1, 1]} : vector<1x128xf32> to vector<1x32xf32>
    %371 = math.tanh %370 : vector<1x32xf32>
    %372 = vector.extract_strided_slice %357 {offsets = [0, 96], sizes = [1, 32], strides = [1, 1]} : vector<1x128xf32> to vector<1x32xf32>
    %373 = arith.negf %372 : vector<1x32xf32>
    %374 = math.exp %373 : vector<1x32xf32>
    %cst_96 = arith.constant 1.000000e+00 : f32
    %375 = vector.broadcast %cst_96 : f32 to vector<1x32xf32>
    %376 = arith.addf %375, %374 : vector<1x32xf32>
    %377 = arith.divf %375, %376 : vector<1x32xf32>
    %378 = arith.mulf %369, %319 : vector<1x32xf32>
    %379 = arith.mulf %363, %371 : vector<1x32xf32>
    %380 = arith.addf %378, %379 : vector<1x32xf32>
    %381 = math.tanh %380 : vector<1x32xf32>
    %382 = arith.mulf %377, %381 : vector<1x32xf32>
    %383 = arith.index_cast %324 : i32 to index
    %c0_97 = arith.constant 0 : index
    %384 = vector.load %arg17[%383, %c0_97] : memref<8x32xf32, #tpu.memory_space<vmem>>, vector<1x32xf32>
    tpu.vector_store %arg17[%383, %c0_97], %382 {strides = array<i32>} : memref<8x32xf32, #tpu.memory_space<vmem>>, vector<1x32xf32>,
    %c6_i32 = arith.constant 6 : i32
    %c1_i32_98 = arith.constant 1 : i32
    %385 = arith.muli %c6_i32, %c1_i32_98 : i32
    %386 = arith.index_cast %385 : i32 to index
    %c0_99 = arith.constant 0 : index
    %387 = vector.load %arg16[%386, %c0_99] : memref<8x128xf32, #tpu.memory_space<vmem>>, vector<1x128xf32>
    %cst_100 = arith.constant dense<0.000000e+00> : vector<1x128xf32>
    %388 = tpu.matmul %353, %11, %cst_100 {dimension_numbers = #tpu.dot_dimension_numbers<[1], [0], [0], [1], [0, 0, 1, 1], [], []>} : vector<1x32xf32>, vector<32x128xf32>, vector<1x128xf32> -> vector<1x128xf32>
    %389 = arith.addf %387, %388 : vector<1x128xf32>
    %390 = vector.extract_strided_slice %389 {offsets = [0, 0], sizes = [1, 32], strides = [1, 1]} : vector<1x128xf32> to vector<1x32xf32>
    %391 = arith.negf %390 : vector<1x32xf32>
    %392 = math.exp %391 : vector<1x32xf32>
    %cst_101 = arith.constant 1.000000e+00 : f32
    %393 = vector.broadcast %cst_101 : f32 to vector<1x32xf32>
    %394 = arith.addf %393, %392 : vector<1x32xf32>
    %395 = arith.divf %393, %394 : vector<1x32xf32>
    %396 = vector.extract_strided_slice %389 {offsets = [0, 32], sizes = [1, 32], strides = [1, 1]} : vector<1x128xf32> to vector<1x32xf32>
    %397 = arith.negf %396 : vector<1x32xf32>
    %398 = math.exp %397 : vector<1x32xf32>
    %cst_102 = arith.constant 1.000000e+00 : f32
    %399 = vector.broadcast %cst_102 : f32 to vector<1x32xf32>
    %400 = arith.addf %399, %398 : vector<1x32xf32>
    %401 = arith.divf %399, %400 : vector<1x32xf32>
    %402 = vector.extract_strided_slice %389 {offsets = [0, 64], sizes = [1, 32], strides = [1, 1]} : vector<1x128xf32> to vector<1x32xf32>
    %403 = math.tanh %402 : vector<1x32xf32>
    %404 = vector.extract_strided_slice %389 {offsets = [0, 96], sizes = [1, 32], strides = [1, 1]} : vector<1x128xf32> to vector<1x32xf32>
    %405 = arith.negf %404 : vector<1x32xf32>
    %406 = math.exp %405 : vector<1x32xf32>
    %cst_103 = arith.constant 1.000000e+00 : f32
    %407 = vector.broadcast %cst_103 : f32 to vector<1x32xf32>
    %408 = arith.addf %407, %406 : vector<1x32xf32>
    %409 = arith.divf %407, %408 : vector<1x32xf32>
    %410 = arith.mulf %401, %351 : vector<1x32xf32>
    %411 = arith.mulf %395, %403 : vector<1x32xf32>
    %412 = arith.addf %410, %411 : vector<1x32xf32>
    %413 = math.tanh %412 : vector<1x32xf32>
    %414 = arith.mulf %409, %413 : vector<1x32xf32>
    %cst_104 = arith.constant dense<0.000000e+00> : vector<1x128xf32>
    %415 = tpu.matmul %414, %12, %cst_104 {dimension_numbers = #tpu.dot_dimension_numbers<[1], [0], [0], [1], [0, 0, 1, 1], [], []>} : vector<1x32xf32>, vector<32x128xf32>, vector<1x128xf32> -> vector<1x128xf32>
    %cst_105 = arith.constant dense<0.000000e+00> : vector<1x128xf32>
    %416 = tpu.matmul %382, %13, %cst_105 {dimension_numbers = #tpu.dot_dimension_numbers<[1], [0], [0], [1], [0, 0, 1, 1], [], []>} : vector<1x32xf32>, vector<32x128xf32>, vector<1x128xf32> -> vector<1x128xf32>
    %417 = arith.addf %415, %416 : vector<1x128xf32>
    %418 = arith.addf %417, %14 : vector<1x128xf32>
    %419 = vector.extract_strided_slice %418 {offsets = [0, 0], sizes = [1, 32], strides = [1, 1]} : vector<1x128xf32> to vector<1x32xf32>
    %420 = arith.negf %419 : vector<1x32xf32>
    %421 = math.exp %420 : vector<1x32xf32>
    %cst_106 = arith.constant 1.000000e+00 : f32
    %422 = vector.broadcast %cst_106 : f32 to vector<1x32xf32>
    %423 = arith.addf %422, %421 : vector<1x32xf32>
    %424 = arith.divf %422, %423 : vector<1x32xf32>
    %425 = vector.extract_strided_slice %418 {offsets = [0, 32], sizes = [1, 32], strides = [1, 1]} : vector<1x128xf32> to vector<1x32xf32>
    %426 = arith.negf %425 : vector<1x32xf32>
    %427 = math.exp %426 : vector<1x32xf32>
    %cst_107 = arith.constant 1.000000e+00 : f32
    %428 = vector.broadcast %cst_107 : f32 to vector<1x32xf32>
    %429 = arith.addf %428, %427 : vector<1x32xf32>
    %430 = arith.divf %428, %429 : vector<1x32xf32>
    %431 = vector.extract_strided_slice %418 {offsets = [0, 64], sizes = [1, 32], strides = [1, 1]} : vector<1x128xf32> to vector<1x32xf32>
    %432 = math.tanh %431 : vector<1x32xf32>
    %433 = vector.extract_strided_slice %418 {offsets = [0, 96], sizes = [1, 32], strides = [1, 1]} : vector<1x128xf32> to vector<1x32xf32>
    %434 = arith.negf %433 : vector<1x32xf32>
    %435 = math.exp %434 : vector<1x32xf32>
    %cst_108 = arith.constant 1.000000e+00 : f32
    %436 = vector.broadcast %cst_108 : f32 to vector<1x32xf32>
    %437 = arith.addf %436, %435 : vector<1x32xf32>
    %438 = arith.divf %436, %437 : vector<1x32xf32>
    %439 = arith.mulf %430, %380 : vector<1x32xf32>
    %440 = arith.mulf %424, %432 : vector<1x32xf32>
    %441 = arith.addf %439, %440 : vector<1x32xf32>
    %442 = math.tanh %441 : vector<1x32xf32>
    %443 = arith.mulf %438, %442 : vector<1x32xf32>
    %444 = arith.index_cast %385 : i32 to index
    %c0_109 = arith.constant 0 : index
    %445 = vector.load %arg17[%444, %c0_109] : memref<8x32xf32, #tpu.memory_space<vmem>>, vector<1x32xf32>
    tpu.vector_store %arg17[%444, %c0_109], %443 {strides = array<i32>} : memref<8x32xf32, #tpu.memory_space<vmem>>, vector<1x32xf32>,
    %c7_i32 = arith.constant 7 : i32
    %c1_i32_110 = arith.constant 1 : i32
    %446 = arith.muli %c7_i32, %c1_i32_110 : i32
    %447 = arith.index_cast %446 : i32 to index
    %c0_111 = arith.constant 0 : index
    %448 = vector.load %arg16[%447, %c0_111] : memref<8x128xf32, #tpu.memory_space<vmem>>, vector<1x128xf32>
    %cst_112 = arith.constant dense<0.000000e+00> : vector<1x128xf32>
    %449 = tpu.matmul %414, %11, %cst_112 {dimension_numbers = #tpu.dot_dimension_numbers<[1], [0], [0], [1], [0, 0, 1, 1], [], []>} : vector<1x32xf32>, vector<32x128xf32>, vector<1x128xf32> -> vector<1x128xf32>
    %450 = arith.addf %448, %449 : vector<1x128xf32>
    %451 = vector.extract_strided_slice %450 {offsets = [0, 0], sizes = [1, 32], strides = [1, 1]} : vector<1x128xf32> to vector<1x32xf32>
    %452 = arith.negf %451 : vector<1x32xf32>
    %453 = math.exp %452 : vector<1x32xf32>
    %cst_113 = arith.constant 1.000000e+00 : f32
    %454 = vector.broadcast %cst_113 : f32 to vector<1x32xf32>
    %455 = arith.addf %454, %453 : vector<1x32xf32>
    %456 = arith.divf %454, %455 : vector<1x32xf32>
    %457 = vector.extract_strided_slice %450 {offsets = [0, 32], sizes = [1, 32], strides = [1, 1]} : vector<1x128xf32> to vector<1x32xf32>
    %458 = arith.negf %457 : vector<1x32xf32>
    %459 = math.exp %458 : vector<1x32xf32>
    %cst_114 = arith.constant 1.000000e+00 : f32
    %460 = vector.broadcast %cst_114 : f32 to vector<1x32xf32>
    %461 = arith.addf %460, %459 : vector<1x32xf32>
    %462 = arith.divf %460, %461 : vector<1x32xf32>
    %463 = vector.extract_strided_slice %450 {offsets = [0, 64], sizes = [1, 32], strides = [1, 1]} : vector<1x128xf32> to vector<1x32xf32>
    %464 = math.tanh %463 : vector<1x32xf32>
    %465 = vector.extract_strided_slice %450 {offsets = [0, 96], sizes = [1, 32], strides = [1, 1]} : vector<1x128xf32> to vector<1x32xf32>
    %466 = arith.negf %465 : vector<1x32xf32>
    %467 = math.exp %466 : vector<1x32xf32>
    %cst_115 = arith.constant 1.000000e+00 : f32
    %468 = vector.broadcast %cst_115 : f32 to vector<1x32xf32>
    %469 = arith.addf %468, %467 : vector<1x32xf32>
    %470 = arith.divf %468, %469 : vector<1x32xf32>
    %471 = arith.mulf %462, %412 : vector<1x32xf32>
    %472 = arith.mulf %456, %464 : vector<1x32xf32>
    %473 = arith.addf %471, %472 : vector<1x32xf32>
    %474 = math.tanh %473 : vector<1x32xf32>
    %475 = arith.mulf %470, %474 : vector<1x32xf32>
    %cst_116 = arith.constant dense<0.000000e+00> : vector<1x128xf32>
    %476 = tpu.matmul %475, %12, %cst_116 {dimension_numbers = #tpu.dot_dimension_numbers<[1], [0], [0], [1], [0, 0, 1, 1], [], []>} : vector<1x32xf32>, vector<32x128xf32>, vector<1x128xf32> -> vector<1x128xf32>
    %cst_117 = arith.constant dense<0.000000e+00> : vector<1x128xf32>
    %477 = tpu.matmul %443, %13, %cst_117 {dimension_numbers = #tpu.dot_dimension_numbers<[1], [0], [0], [1], [0, 0, 1, 1], [], []>} : vector<1x32xf32>, vector<32x128xf32>, vector<1x128xf32> -> vector<1x128xf32>
    %478 = arith.addf %476, %477 : vector<1x128xf32>
    %479 = arith.addf %478, %14 : vector<1x128xf32>
    %480 = vector.extract_strided_slice %479 {offsets = [0, 0], sizes = [1, 32], strides = [1, 1]} : vector<1x128xf32> to vector<1x32xf32>
    %481 = arith.negf %480 : vector<1x32xf32>
    %482 = math.exp %481 : vector<1x32xf32>
    %cst_118 = arith.constant 1.000000e+00 : f32
    %483 = vector.broadcast %cst_118 : f32 to vector<1x32xf32>
    %484 = arith.addf %483, %482 : vector<1x32xf32>
    %485 = arith.divf %483, %484 : vector<1x32xf32>
    %486 = vector.extract_strided_slice %479 {offsets = [0, 32], sizes = [1, 32], strides = [1, 1]} : vector<1x128xf32> to vector<1x32xf32>
    %487 = arith.negf %486 : vector<1x32xf32>
    %488 = math.exp %487 : vector<1x32xf32>
    %cst_119 = arith.constant 1.000000e+00 : f32
    %489 = vector.broadcast %cst_119 : f32 to vector<1x32xf32>
    %490 = arith.addf %489, %488 : vector<1x32xf32>
    %491 = arith.divf %489, %490 : vector<1x32xf32>
    %492 = vector.extract_strided_slice %479 {offsets = [0, 64], sizes = [1, 32], strides = [1, 1]} : vector<1x128xf32> to vector<1x32xf32>
    %493 = math.tanh %492 : vector<1x32xf32>
    %494 = vector.extract_strided_slice %479 {offsets = [0, 96], sizes = [1, 32], strides = [1, 1]} : vector<1x128xf32> to vector<1x32xf32>
    %495 = arith.negf %494 : vector<1x32xf32>
    %496 = math.exp %495 : vector<1x32xf32>
    %cst_120 = arith.constant 1.000000e+00 : f32
    %497 = vector.broadcast %cst_120 : f32 to vector<1x32xf32>
    %498 = arith.addf %497, %496 : vector<1x32xf32>
    %499 = arith.divf %497, %498 : vector<1x32xf32>
    %500 = arith.mulf %491, %441 : vector<1x32xf32>
    %501 = arith.mulf %485, %493 : vector<1x32xf32>
    %502 = arith.addf %500, %501 : vector<1x32xf32>
    %503 = math.tanh %502 : vector<1x32xf32>
    %504 = arith.mulf %499, %503 : vector<1x32xf32>
    %505 = arith.index_cast %446 : i32 to index
    %c0_121 = arith.constant 0 : index
    %506 = vector.load %arg17[%505, %c0_121] : memref<8x32xf32, #tpu.memory_space<vmem>>, vector<1x32xf32>
    tpu.vector_store %arg17[%505, %c0_121], %504 {strides = array<i32>} : memref<8x32xf32, #tpu.memory_space<vmem>>, vector<1x32xf32>,
    %c8_i32 = arith.constant 8 : i32
    %c0_122 = arith.constant 0 : index
    %c0_123 = arith.constant 0 : index
    %507 = vector.load %arg12[%c0_122, %c0_123] : memref<1x32xf32, #tpu.memory_space<vmem>>, vector<1x32xf32>
    tpu.vector_store %arg12[%c0_122, %c0_123], %475 {strides = array<i32>} : memref<1x32xf32, #tpu.memory_space<vmem>>, vector<1x32xf32>,
    %c0_124 = arith.constant 0 : index
    %c0_125 = arith.constant 0 : index
    %508 = vector.load %arg13[%c0_124, %c0_125] : memref<1x32xf32, #tpu.memory_space<vmem>>, vector<1x32xf32>
    tpu.vector_store %arg13[%c0_124, %c0_125], %473 {strides = array<i32>} : memref<1x32xf32, #tpu.memory_space<vmem>>, vector<1x32xf32>,
    %c0_126 = arith.constant 0 : index
    %c0_127 = arith.constant 0 : index
    %509 = vector.load %arg14[%c0_126, %c0_127] : memref<1x32xf32, #tpu.memory_space<vmem>>, vector<1x32xf32>
    tpu.vector_store %arg14[%c0_126, %c0_127], %504 {strides = array<i32>} : memref<1x32xf32, #tpu.memory_space<vmem>>, vector<1x32xf32>,
    %c0_128 = arith.constant 0 : index
    %c0_129 = arith.constant 0 : index
    %510 = vector.load %arg15[%c0_128, %c0_129] : memref<1x32xf32, #tpu.memory_space<vmem>>, vector<1x32xf32>
    tpu.vector_store %arg15[%c0_128, %c0_129], %502 {strides = array<i32>} : memref<1x32xf32, #tpu.memory_space<vmem>>, vector<1x32xf32>,
    %c0_130 = arith.constant 0 : index
    %c0_131 = arith.constant 0 : index
    %511 = vector.load %arg9[%c0_130, %c0_131] : memref<32x16xf32, #tpu.memory_space<vmem>>, vector<32x16xf32>
    %c0_132 = arith.constant 0 : index
    %c0_133 = arith.constant 0 : index
    %512 = vector.load %arg17[%c0_132, %c0_133] : memref<8x32xf32, #tpu.memory_space<vmem>>, vector<8x32xf32>
    %cst_134 = arith.constant dense<0.000000e+00> : vector<8x16xf32>
    %513 = tpu.matmul %512, %511, %cst_134 {dimension_numbers = #tpu.dot_dimension_numbers<[1], [0], [0], [1], [0, 0, 1, 1], [], []>} : vector<8x32xf32>, vector<32x16xf32>, vector<8x16xf32> -> vector<8x16xf32>
    %c0_135 = arith.constant 0 : index
    %c0_136 = arith.constant 0 : index
    %514 = vector.load %arg10[%c0_135, %c0_136] : memref<1x16xf32, #tpu.memory_space<vmem>>, vector<1x16xf32>
    %515 = vector.broadcast %514 : vector<1x16xf32> to vector<8x16xf32>
    %516 = arith.addf %513, %515 : vector<8x16xf32>
    %c0_137 = arith.constant 0 : index
    %c0_138 = arith.constant 0 : index
    %c0_139 = arith.constant 0 : index
    %517 = vector.load %arg11[%c0_137, %c0_138, %c0_139] : memref<1x8x16xf32, #tpu.memory_space<vmem>>, vector<1x8x16xf32>
    %518 = vector.shape_cast %517 : vector<1x8x16xf32> to vector<8x16xf32>
    %519 = vector.shape_cast %516 : vector<8x16xf32> to vector<1x8x16xf32>
    tpu.vector_store %arg11[%c0_137, %c0_138, %c0_139], %519 {strides = array<i32>} : memref<1x8x16xf32, #tpu.memory_space<vmem>>, vector<1x8x16xf32>,
    return
  }
  func.func @transform_0(%arg0: i32, %arg1: i32) -> (i32, i32, i32) {
    %c0_i32 = arith.constant 0 : i32
    %c0_i32_0 = arith.constant 0 : i32
    return %arg0, %arg1, %c0_i32 : i32, i32, i32
  }
  func.func @transform_1(%arg0: i32, %arg1: i32) -> (i32, i32) {
    %c0_i32 = arith.constant 0 : i32
    %c0_i32_0 = arith.constant 0 : i32
    %c0_i32_1 = arith.constant 0 : i32
    return %c0_i32, %c0_i32_0 : i32, i32
  }
  func.func @transform_2(%arg0: i32, %arg1: i32) -> (i32, i32) {
    %c0_i32 = arith.constant 0 : i32
    %c0_i32_0 = arith.constant 0 : i32
    %c0_i32_1 = arith.constant 0 : i32
    return %c0_i32, %c0_i32_0 : i32, i32
  }
  func.func @transform_3(%arg0: i32, %arg1: i32) -> (i32, i32) {
    %c0_i32 = arith.constant 0 : i32
    %c0_i32_0 = arith.constant 0 : i32
    %c0_i32_1 = arith.constant 0 : i32
    return %c0_i32, %c0_i32_0 : i32, i32
  }
  func.func @transform_4(%arg0: i32, %arg1: i32) -> (i32, i32) {
    %c0_i32 = arith.constant 0 : i32
    %c0_i32_0 = arith.constant 0 : i32
    %c0_i32_1 = arith.constant 0 : i32
    return %c0_i32, %c0_i32_0 : i32, i32
  }
  func.func @transform_5(%arg0: i32, %arg1: i32) -> (i32, i32) {
    %c0_i32 = arith.constant 0 : i32
    %c0_i32_0 = arith.constant 0 : i32
    %c0_i32_1 = arith.constant 0 : i32
    return %c0_i32, %c0_i32_0 : i32, i32
  }
  func.func @transform_6(%arg0: i32, %arg1: i32) -> (i32, i32) {
    %c0_i32 = arith.constant 0 : i32
    %c0_i32_0 = arith.constant 0 : i32
    %c0_i32_1 = arith.constant 0 : i32
    return %c0_i32, %c0_i32_0 : i32, i32
  }
  func.func @transform_7(%arg0: i32, %arg1: i32) -> (i32, i32) {
    %c0_i32 = arith.constant 0 : i32
    %c0_i32_0 = arith.constant 0 : i32
    %c0_i32_1 = arith.constant 0 : i32
    return %c0_i32, %c0_i32_0 : i32, i32
  }
  func.func @transform_8(%arg0: i32, %arg1: i32) -> (i32, i32) {
    %c0_i32 = arith.constant 0 : i32
    %c0_i32_0 = arith.constant 0 : i32
    %c0_i32_1 = arith.constant 0 : i32
    return %c0_i32, %c0_i32_0 : i32, i32
  }
  func.func @transform_9(%arg0: i32, %arg1: i32) -> (i32, i32, i32) {
    %c0_i32 = arith.constant 0 : i32
    %c0_i32_0 = arith.constant 0 : i32
    return %arg0, %arg1, %c0_i32 : i32, i32, i32
  }
}

module attributes {stable_mosaic.version = 11 : i64} {
  func.func @lstm_kernel(%arg0: i32, %arg1: i32, %arg2: memref<1x8x32xf32, #tpu.memory_space<vmem>>, %arg3: memref<32x128xf32, #tpu.memory_space<vmem>>, %arg4: memref<32x128xf32, #tpu.memory_space<vmem>>, %arg5: memref<1x128xf32, #tpu.memory_space<vmem>>, %arg6: memref<32x128xf32, #tpu.memory_space<vmem>>, %arg7: memref<32x128xf32, #tpu.memory_space<vmem>>, %arg8: memref<1x128xf32, #tpu.memory_space<vmem>>, %arg9: memref<32x16xf32, #tpu.memory_space<vmem>>, %arg10: memref<1x16xf32, #tpu.memory_space<vmem>>, %arg11: memref<1x8x16xf32, #tpu.memory_space<vmem>>, %arg12: memref<1x32xf32, #tpu.memory_space<vmem>>, %arg13: memref<1x32xf32, #tpu.memory_space<vmem>>, %arg14: memref<1x32xf32, #tpu.memory_space<vmem>>, %arg15: memref<1x32xf32, #tpu.memory_space<vmem>>, %arg16: memref<8x128xf32, #tpu.memory_space<vmem>>, %arg17: memref<8x32xf32, #tpu.memory_space<vmem>>) attributes {dimension_semantics = [#tpu.dimension_semantics<parallel>, #tpu.dimension_semantics<arbitrary>], iteration_bounds = array<i64: 2, 2>, scalar_prefetch = 0 : i64, scratch_operands = 6 : i64, tpu.core_type = #tpu.core_type<tc>, window_params = [{transform_indices = @transform_0, window_bounds = array<i64: 1, 8, 32>}, {pipeline_mode = #tpu.pipeline_mode<synchronous>, transform_indices = @transform_1, window_bounds = array<i64: 32, 128>}, {pipeline_mode = #tpu.pipeline_mode<synchronous>, transform_indices = @transform_2, window_bounds = array<i64: 32, 128>}, {pipeline_mode = #tpu.pipeline_mode<synchronous>, transform_indices = @transform_3, window_bounds = array<i64: 1, 128>}, {pipeline_mode = #tpu.pipeline_mode<synchronous>, transform_indices = @transform_4, window_bounds = array<i64: 32, 128>}, {pipeline_mode = #tpu.pipeline_mode<synchronous>, transform_indices = @transform_5, window_bounds = array<i64: 32, 128>}, {pipeline_mode = #tpu.pipeline_mode<synchronous>, transform_indices = @transform_6, window_bounds = array<i64: 1, 128>}, {pipeline_mode = #tpu.pipeline_mode<synchronous>, transform_indices = @transform_7, window_bounds = array<i64: 32, 16>}, {pipeline_mode = #tpu.pipeline_mode<synchronous>, transform_indices = @transform_8, window_bounds = array<i64: 1, 16>}, {transform_indices = @transform_9, window_bounds = array<i64: 1, 8, 16>}]} {
    %c0_i32 = arith.constant 0 : i32
    %0 = arith.cmpi eq, %arg1, %c0_i32 : i32
    %1 = arith.extui %0 : i1 to i32
    %c0_i32_0 = arith.constant 0 : i32
    %2 = arith.cmpi ne, %1, %c0_i32_0 : i32
    scf.if %2 {
      %cst_140 = arith.constant 0.000000e+00 : f32
      %520 = vector.broadcast %cst_140 : f32 to vector<1x32xf32>
      %c0_141 = arith.constant 0 : index
      %c0_142 = arith.constant 0 : index
      %521 = vector.load %arg12[%c0_141, %c0_142] : memref<1x32xf32, #tpu.memory_space<vmem>>, vector<1x32xf32>
      tpu.vector_store %arg12[%c0_141, %c0_142], %520 {strides = array<i32>} : memref<1x32xf32, #tpu.memory_space<vmem>>, vector<1x32xf32>,
      %cst_143 = arith.constant 0.000000e+00 : f32
      %522 = vector.broadcast %cst_143 : f32 to vector<1x32xf32>
      %c0_144 = arith.constant 0 : index
      %c0_145 = arith.constant 0 : index
      %523 = vector.load %arg13[%c0_144, %c0_145] : memref<1x32xf32, #tpu.memory_space<vmem>>, vector<1x32xf32>
      tpu.vector_store %arg13[%c0_144, %c0_145], %522 {strides = array<i32>} : memref<1x32xf32, #tpu.memory_space<vmem>>, vector<1x32xf32>,
      %cst_146 = arith.constant 0.000000e+00 : f32
      %524 = vector.broadcast %cst_146 : f32 to vector<1x32xf32>
      %c0_147 = arith.constant 0 : index
      %c0_148 = arith.constant 0 : index
      %525 = vector.load %arg14[%c0_147, %c0_148] : memref<1x32xf32, #tpu.memory_space<vmem>>, vector<1x32xf32>
      tpu.vector_store %arg14[%c0_147, %c0_148], %524 {strides = array<i32>} : memref<1x32xf32, #tpu.memory_space<vmem>>, vector<1x32xf32>,
      %cst_149 = arith.constant 0.000000e+00 : f32
      %526 = vector.broadcast %cst_149 : f32 to vector<1x32xf32>
      %c0_150 = arith.constant 0 : index
      %c0_151 = arith.constant 0 : index
      %527 = vector.load %arg15[%c0_150, %c0_151] : memref<1x32xf32, #tpu.memory_space<vmem>>, vector<1x32xf32>
      tpu.vector_store %arg15[%c0_150, %c0_151], %526 {strides = array<i32>} : memref<1x32xf32, #tpu.memory_space<vmem>>, vector<1x32xf32>,
    } else {
    }
    %c0 = arith.constant 0 : index
    %c0_1 = arith.constant 0 : index
    %3 = vector.load %arg3[%c0, %c0_1] : memref<32x128xf32, #tpu.memory_space<vmem>>, vector<32x128xf32>
    %c0_2 = arith.constant 0 : index
    %c0_3 = arith.constant 0 : index
    %c0_4 = arith.constant 0 : index
    %4 = vector.load %arg2[%c0_2, %c0_3, %c0_4] : memref<1x8x32xf32, #tpu.memory_space<vmem>>, vector<1x8x32xf32>
    %5 = vector.shape_cast %4 : vector<1x8x32xf32> to vector<8x32xf32>
    %cst = arith.constant dense<0.000000e+00> : vector<8x128xf32>
    %6 = tpu.matmul %5, %3, %cst {dimension_numbers = #tpu.dot_dimension_numbers<[1], [0], [0], [1], [0, 0, 1, 1], [], []>} : vector<8x32xf32>, vector<32x128xf32>, vector<8x128xf32> -> vector<8x128xf32>
    %c0_5 = arith.constant 0 : index
    %c0_6 = arith.constant 0 : index
    %7 = vector.load %arg5[%c0_5, %c0_6] : memref<1x128xf32, #tpu.memory_space<vmem>>, vector<1x128xf32>
    %8 = vector.broadcast %7 : vector<1x128xf32> to vector<8x128xf32>
    %9 = arith.addf %6, %8 : vector<8x128xf32>
    %c0_7 = arith.constant 0 : index
    %c0_8 = arith.constant 0 : index
    %10 = vector.load %arg16[%c0_7, %c0_8] : memref<8x128xf32, #tpu.memory_space<vmem>>, vector<8x128xf32>
    tpu.vector_store %arg16[%c0_7, %c0_8], %9 {strides = array<i32>} : memref<8x128xf32, #tpu.memory_space<vmem>>, vector<8x128xf32>,
    %c0_9 = arith.constant 0 : index
    %c0_10 = arith.constant 0 : index
    %11 = vector.load %arg4[%c0_9, %c0_10] : memref<32x128xf32, #tpu.memory_space<vmem>>, vector<32x128xf32>
    %c0_11 = arith.constant 0 : index
    %c0_12 = arith.constant 0 : index
    %12 = vector.load %arg6[%c0_11, %c0_12] : memref<32x128xf32, #tpu.memory_space<vmem>>, vector<32x128xf32>
    %c0_13 = arith.constant 0 : index
    %c0_14 = arith.constant 0 : index
    %13 = vector.load %arg7[%c0_13, %c0_14] : memref<32x128xf32, #tpu.memory_space<vmem>>, vector<32x128xf32>
    %c0_15 = arith.constant 0 : index
    %c0_16 = arith.constant 0 : index
    %14 = vector.load %arg8[%c0_15, %c0_16] : memref<1x128xf32, #tpu.memory_space<vmem>>, vector<1x128xf32>
    %c0_17 = arith.constant 0 : index
    %c0_18 = arith.constant 0 : index
    %15 = vector.load %arg12[%c0_17, %c0_18] : memref<1x32xf32, #tpu.memory_space<vmem>>, vector<1x32xf32>
    %c0_19 = arith.constant 0 : index
    %c0_20 = arith.constant 0 : index
    %16 = vector.load %arg13[%c0_19, %c0_20] : memref<1x32xf32, #tpu.memory_space<vmem>>, vector<1x32xf32>
    %c0_21 = arith.constant 0 : index
    %c0_22 = arith.constant 0 : index
    %17 = vector.load %arg14[%c0_21, %c0_22] : memref<1x32xf32, #tpu.memory_space<vmem>>, vector<1x32xf32>
    %c0_23 = arith.constant 0 : index
    %c0_24 = arith.constant 0 : index
    %18 = vector.load %arg15[%c0_23, %c0_24] : memref<1x32xf32, #tpu.memory_space<vmem>>, vector<1x32xf32>
    %c0_i32_25 = arith.constant 0 : i32
    %c1_i32 = arith.constant 1 : i32
    %19 = arith.muli %c0_i32_25, %c1_i32 : i32
    %20 = arith.index_cast %19 : i32 to index
    %c0_26 = arith.constant 0 : index
    %21 = vector.load %arg16[%20, %c0_26] : memref<8x128xf32, #tpu.memory_space<vmem>>, vector<1x128xf32>
    %cst_27 = arith.constant dense<0.000000e+00> : vector<1x128xf32>
    %22 = tpu.matmul %15, %11, %cst_27 {dimension_numbers = #tpu.dot_dimension_numbers<[1], [0], [0], [1], [0, 0, 1, 1], [], []>} : vector<1x32xf32>, vector<32x128xf32>, vector<1x128xf32> -> vector<1x128xf32>
    %23 = arith.addf %21, %22 : vector<1x128xf32>
    %24 = vector.extract_strided_slice %23 {offsets = [0, 0], sizes = [1, 32], strides = [1, 1]} : vector<1x128xf32> to vector<1x32xf32>
    %25 = arith.negf %24 : vector<1x32xf32>
    %26 = math.exp %25 : vector<1x32xf32>
    %cst_28 = arith.constant 1.000000e+00 : f32
    %27 = vector.broadcast %cst_28 : f32 to vector<1x32xf32>
    %28 = arith.addf %27, %26 : vector<1x32xf32>
    %29 = arith.divf %27, %28 : vector<1x32xf32>
    %30 = vector.extract_strided_slice %23 {offsets = [0, 32], sizes = [1, 32], strides = [1, 1]} : vector<1x128xf32> to vector<1x32xf32>
    %31 = arith.negf %30 : vector<1x32xf32>
    %32 = math.exp %31 : vector<1x32xf32>
    %cst_29 = arith.constant 1.000000e+00 : f32
    %33 = vector.broadcast %cst_29 : f32 to vector<1x32xf32>
    %34 = arith.addf %33, %32 : vector<1x32xf32>
    %35 = arith.divf %33, %34 : vector<1x32xf32>
    %36 = vector.extract_strided_slice %23 {offsets = [0, 64], sizes = [1, 32], strides = [1, 1]} : vector<1x128xf32> to vector<1x32xf32>
    %37 = math.tanh %36 : vector<1x32xf32>
    %38 = vector.extract_strided_slice %23 {offsets = [0, 96], sizes = [1, 32], strides = [1, 1]} : vector<1x128xf32> to vector<1x32xf32>
    %39 = arith.negf %38 : vector<1x32xf32>
    %40 = math.exp %39 : vector<1x32xf32>
    %cst_30 = arith.constant 1.000000e+00 : f32
    %41 = vector.broadcast %cst_30 : f32 to vector<1x32xf32>
    %42 = arith.addf %41, %40 : vector<1x32xf32>
    %43 = arith.divf %41, %42 : vector<1x32xf32>
    %44 = arith.mulf %35, %16 : vector<1x32xf32>
    %45 = arith.mulf %29, %37 : vector<1x32xf32>
    %46 = arith.addf %44, %45 : vector<1x32xf32>
    %47 = math.tanh %46 : vector<1x32xf32>
    %48 = arith.mulf %43, %47 : vector<1x32xf32>
    %cst_31 = arith.constant dense<0.000000e+00> : vector<1x128xf32>
    %49 = tpu.matmul %48, %12, %cst_31 {dimension_numbers = #tpu.dot_dimension_numbers<[1], [0], [0], [1], [0, 0, 1, 1], [], []>} : vector<1x32xf32>, vector<32x128xf32>, vector<1x128xf32> -> vector<1x128xf32>
    %cst_32 = arith.constant dense<0.000000e+00> : vector<1x128xf32>
    %50 = tpu.matmul %17, %13, %cst_32 {dimension_numbers = #tpu.dot_dimension_numbers<[1], [0], [0], [1], [0, 0, 1, 1], [], []>} : vector<1x32xf32>, vector<32x128xf32>, vector<1x128xf32> -> vector<1x128xf32>
    %51 = arith.addf %49, %50 : vector<1x128xf32>
    %52 = arith.addf %51, %14 : vector<1x128xf32>
    %53 = vector.extract_strided_slice %52 {offsets = [0, 0], sizes = [1, 32], strides = [1, 1]} : vector<1x128xf32> to vector<1x32xf32>
    %54 = arith.negf %53 : vector<1x32xf32>
    %55 = math.exp %54 : vector<1x32xf32>
    %cst_33 = arith.constant 1.000000e+00 : f32
    %56 = vector.broadcast %cst_33 : f32 to vector<1x32xf32>
    %57 = arith.addf %56, %55 : vector<1x32xf32>
    %58 = arith.divf %56, %57 : vector<1x32xf32>
    %59 = vector.extract_strided_slice %52 {offsets = [0, 32], sizes = [1, 32], strides = [1, 1]} : vector<1x128xf32> to vector<1x32xf32>
    %60 = arith.negf %59 : vector<1x32xf32>
    %61 = math.exp %60 : vector<1x32xf32>
    %cst_34 = arith.constant 1.000000e+00 : f32
    %62 = vector.broadcast %cst_34 : f32 to vector<1x32xf32>
    %63 = arith.addf %62, %61 : vector<1x32xf32>
    %64 = arith.divf %62, %63 : vector<1x32xf32>
    %65 = vector.extract_strided_slice %52 {offsets = [0, 64], sizes = [1, 32], strides = [1, 1]} : vector<1x128xf32> to vector<1x32xf32>
    %66 = math.tanh %65 : vector<1x32xf32>
    %67 = vector.extract_strided_slice %52 {offsets = [0, 96], sizes = [1, 32], strides = [1, 1]} : vector<1x128xf32> to vector<1x32xf32>
    %68 = arith.negf %67 : vector<1x32xf32>
    %69 = math.exp %68 : vector<1x32xf32>
    %cst_35 = arith.constant 1.000000e+00 : f32
    %70 = vector.broadcast %cst_35 : f32 to vector<1x32xf32>
    %71 = arith.addf %70, %69 : vector<1x32xf32>
    %72 = arith.divf %70, %71 : vector<1x32xf32>
    %73 = arith.mulf %64, %18 : vector<1x32xf32>
    %74 = arith.mulf %58, %66 : vector<1x32xf32>
    %75 = arith.addf %73, %74 : vector<1x32xf32>
    %76 = math.tanh %75 : vector<1x32xf32>
    %77 = arith.mulf %72, %76 : vector<1x32xf32>
    %78 = arith.index_cast %19 : i32 to index
    %c0_36 = arith.constant 0 : index
    %79 = vector.load %arg17[%78, %c0_36] : memref<8x32xf32, #tpu.memory_space<vmem>>, vector<1x32xf32>
    tpu.vector_store %arg17[%78, %c0_36], %77 {strides = array<i32>} : memref<8x32xf32, #tpu.memory_space<vmem>>, vector<1x32xf32>,
    %c1_i32_37 = arith.constant 1 : i32
    %c1_i32_38 = arith.constant 1 : i32
    %80 = arith.muli %c1_i32_37, %c1_i32_38 : i32
    %81 = arith.index_cast %80 : i32 to index
    %c0_39 = arith.constant 0 : index
    %82 = vector.load %arg16[%81, %c0_39] : memref<8x128xf32, #tpu.memory_space<vmem>>, vector<1x128xf32>
    %cst_40 = arith.constant dense<0.000000e+00> : vector<1x128xf32>
    %83 = tpu.matmul %48, %11, %cst_40 {dimension_numbers = #tpu.dot_dimension_numbers<[1], [0], [0], [1], [0, 0, 1, 1], [], []>} : vector<1x32xf32>, vector<32x128xf32>, vector<1x128xf32> -> vector<1x128xf32>
    %84 = arith.addf %82, %83 : vector<1x128xf32>
    %85 = vector.extract_strided_slice %84 {offsets = [0, 0], sizes = [1, 32], strides = [1, 1]} : vector<1x128xf32> to vector<1x32xf32>
    %86 = arith.negf %85 : vector<1x32xf32>
    %87 = math.exp %86 : vector<1x32xf32>
    %cst_41 = arith.constant 1.000000e+00 : f32
    %88 = vector.broadcast %cst_41 : f32 to vector<1x32xf32>
    %89 = arith.addf %88, %87 : vector<1x32xf32>
    %90 = arith.divf %88, %89 : vector<1x32xf32>
    %91 = vector.extract_strided_slice %84 {offsets = [0, 32], sizes = [1, 32], strides = [1, 1]} : vector<1x128xf32> to vector<1x32xf32>
    %92 = arith.negf %91 : vector<1x32xf32>
    %93 = math.exp %92 : vector<1x32xf32>
    %cst_42 = arith.constant 1.000000e+00 : f32
    %94 = vector.broadcast %cst_42 : f32 to vector<1x32xf32>
    %95 = arith.addf %94, %93 : vector<1x32xf32>
    %96 = arith.divf %94, %95 : vector<1x32xf32>
    %97 = vector.extract_strided_slice %84 {offsets = [0, 64], sizes = [1, 32], strides = [1, 1]} : vector<1x128xf32> to vector<1x32xf32>
    %98 = math.tanh %97 : vector<1x32xf32>
    %99 = vector.extract_strided_slice %84 {offsets = [0, 96], sizes = [1, 32], strides = [1, 1]} : vector<1x128xf32> to vector<1x32xf32>
    %100 = arith.negf %99 : vector<1x32xf32>
    %101 = math.exp %100 : vector<1x32xf32>
    %cst_43 = arith.constant 1.000000e+00 : f32
    %102 = vector.broadcast %cst_43 : f32 to vector<1x32xf32>
    %103 = arith.addf %102, %101 : vector<1x32xf32>
    %104 = arith.divf %102, %103 : vector<1x32xf32>
    %105 = arith.mulf %96, %46 : vector<1x32xf32>
    %106 = arith.mulf %90, %98 : vector<1x32xf32>
    %107 = arith.addf %105, %106 : vector<1x32xf32>
    %108 = math.tanh %107 : vector<1x32xf32>
    %109 = arith.mulf %104, %108 : vector<1x32xf32>
    %cst_44 = arith.constant dense<0.000000e+00> : vector<1x128xf32>
    %110 = tpu.matmul %109, %12, %cst_44 {dimension_numbers = #tpu.dot_dimension_numbers<[1], [0], [0], [1], [0, 0, 1, 1], [], []>} : vector<1x32xf32>, vector<32x128xf32>, vector<1x128xf32> -> vector<1x128xf32>
    %cst_45 = arith.constant dense<0.000000e+00> : vector<1x128xf32>
    %111 = tpu.matmul %77, %13, %cst_45 {dimension_numbers = #tpu.dot_dimension_numbers<[1], [0], [0], [1], [0, 0, 1, 1], [], []>} : vector<1x32xf32>, vector<32x128xf32>, vector<1x128xf32> -> vector<1x128xf32>
    %112 = arith.addf %110, %111 : vector<1x128xf32>
    %113 = arith.addf %112, %14 : vector<1x128xf32>
    %114 = vector.extract_strided_slice %113 {offsets = [0, 0], sizes = [1, 32], strides = [1, 1]} : vector<1x128xf32> to vector<1x32xf32>
    %115 = arith.negf %114 : vector<1x32xf32>
    %116 = math.exp %115 : vector<1x32xf32>
    %cst_46 = arith.constant 1.000000e+00 : f32
    %117 = vector.broadcast %cst_46 : f32 to vector<1x32xf32>
    %118 = arith.addf %117, %116 : vector<1x32xf32>
    %119 = arith.divf %117, %118 : vector<1x32xf32>
    %120 = vector.extract_strided_slice %113 {offsets = [0, 32], sizes = [1, 32], strides = [1, 1]} : vector<1x128xf32> to vector<1x32xf32>
    %121 = arith.negf %120 : vector<1x32xf32>
    %122 = math.exp %121 : vector<1x32xf32>
    %cst_47 = arith.constant 1.000000e+00 : f32
    %123 = vector.broadcast %cst_47 : f32 to vector<1x32xf32>
    %124 = arith.addf %123, %122 : vector<1x32xf32>
    %125 = arith.divf %123, %124 : vector<1x32xf32>
    %126 = vector.extract_strided_slice %113 {offsets = [0, 64], sizes = [1, 32], strides = [1, 1]} : vector<1x128xf32> to vector<1x32xf32>
    %127 = math.tanh %126 : vector<1x32xf32>
    %128 = vector.extract_strided_slice %113 {offsets = [0, 96], sizes = [1, 32], strides = [1, 1]} : vector<1x128xf32> to vector<1x32xf32>
    %129 = arith.negf %128 : vector<1x32xf32>
    %130 = math.exp %129 : vector<1x32xf32>
    %cst_48 = arith.constant 1.000000e+00 : f32
    %131 = vector.broadcast %cst_48 : f32 to vector<1x32xf32>
    %132 = arith.addf %131, %130 : vector<1x32xf32>
    %133 = arith.divf %131, %132 : vector<1x32xf32>
    %134 = arith.mulf %125, %75 : vector<1x32xf32>
    %135 = arith.mulf %119, %127 : vector<1x32xf32>
    %136 = arith.addf %134, %135 : vector<1x32xf32>
    %137 = math.tanh %136 : vector<1x32xf32>
    %138 = arith.mulf %133, %137 : vector<1x32xf32>
    %139 = arith.index_cast %80 : i32 to index
    %c0_49 = arith.constant 0 : index
    %140 = vector.load %arg17[%139, %c0_49] : memref<8x32xf32, #tpu.memory_space<vmem>>, vector<1x32xf32>
    tpu.vector_store %arg17[%139, %c0_49], %138 {strides = array<i32>} : memref<8x32xf32, #tpu.memory_space<vmem>>, vector<1x32xf32>,
    %c2_i32 = arith.constant 2 : i32
    %c1_i32_50 = arith.constant 1 : i32
    %141 = arith.muli %c2_i32, %c1_i32_50 : i32
    %142 = arith.index_cast %141 : i32 to index
    %c0_51 = arith.constant 0 : index
    %143 = vector.load %arg16[%142, %c0_51] : memref<8x128xf32, #tpu.memory_space<vmem>>, vector<1x128xf32>
    %cst_52 = arith.constant dense<0.000000e+00> : vector<1x128xf32>
    %144 = tpu.matmul %109, %11, %cst_52 {dimension_numbers = #tpu.dot_dimension_numbers<[1], [0], [0], [1], [0, 0, 1, 1], [], []>} : vector<1x32xf32>, vector<32x128xf32>, vector<1x128xf32> -> vector<1x128xf32>
    %145 = arith.addf %143, %144 : vector<1x128xf32>
    %146 = vector.extract_strided_slice %145 {offsets = [0, 0], sizes = [1, 32], strides = [1, 1]} : vector<1x128xf32> to vector<1x32xf32>
    %147 = arith.negf %146 : vector<1x32xf32>
    %148 = math.exp %147 : vector<1x32xf32>
    %cst_53 = arith.constant 1.000000e+00 : f32
    %149 = vector.broadcast %cst_53 : f32 to vector<1x32xf32>
    %150 = arith.addf %149, %148 : vector<1x32xf32>
    %151 = arith.divf %149, %150 : vector<1x32xf32>
    %152 = vector.extract_strided_slice %145 {offsets = [0, 32], sizes = [1, 32], strides = [1, 1]} : vector<1x128xf32> to vector<1x32xf32>
    %153 = arith.negf %152 : vector<1x32xf32>
    %154 = math.exp %153 : vector<1x32xf32>
    %cst_54 = arith.constant 1.000000e+00 : f32
    %155 = vector.broadcast %cst_54 : f32 to vector<1x32xf32>
    %156 = arith.addf %155, %154 : vector<1x32xf32>
    %157 = arith.divf %155, %156 : vector<1x32xf32>
    %158 = vector.extract_strided_slice %145 {offsets = [0, 64], sizes = [1, 32], strides = [1, 1]} : vector<1x128xf32> to vector<1x32xf32>
    %159 = math.tanh %158 : vector<1x32xf32>
    %160 = vector.extract_strided_slice %145 {offsets = [0, 96], sizes = [1, 32], strides = [1, 1]} : vector<1x128xf32> to vector<1x32xf32>
    %161 = arith.negf %160 : vector<1x32xf32>
    %162 = math.exp %161 : vector<1x32xf32>
    %cst_55 = arith.constant 1.000000e+00 : f32
    %163 = vector.broadcast %cst_55 : f32 to vector<1x32xf32>
    %164 = arith.addf %163, %162 : vector<1x32xf32>
    %165 = arith.divf %163, %164 : vector<1x32xf32>
    %166 = arith.mulf %157, %107 : vector<1x32xf32>
    %167 = arith.mulf %151, %159 : vector<1x32xf32>
    %168 = arith.addf %166, %167 : vector<1x32xf32>
    %169 = math.tanh %168 : vector<1x32xf32>
    %170 = arith.mulf %165, %169 : vector<1x32xf32>
    %cst_56 = arith.constant dense<0.000000e+00> : vector<1x128xf32>
    %171 = tpu.matmul %170, %12, %cst_56 {dimension_numbers = #tpu.dot_dimension_numbers<[1], [0], [0], [1], [0, 0, 1, 1], [], []>} : vector<1x32xf32>, vector<32x128xf32>, vector<1x128xf32> -> vector<1x128xf32>
    %cst_57 = arith.constant dense<0.000000e+00> : vector<1x128xf32>
    %172 = tpu.matmul %138, %13, %cst_57 {dimension_numbers = #tpu.dot_dimension_numbers<[1], [0], [0], [1], [0, 0, 1, 1], [], []>} : vector<1x32xf32>, vector<32x128xf32>, vector<1x128xf32> -> vector<1x128xf32>
    %173 = arith.addf %171, %172 : vector<1x128xf32>
    %174 = arith.addf %173, %14 : vector<1x128xf32>
    %175 = vector.extract_strided_slice %174 {offsets = [0, 0], sizes = [1, 32], strides = [1, 1]} : vector<1x128xf32> to vector<1x32xf32>
    %176 = arith.negf %175 : vector<1x32xf32>
    %177 = math.exp %176 : vector<1x32xf32>
    %cst_58 = arith.constant 1.000000e+00 : f32
    %178 = vector.broadcast %cst_58 : f32 to vector<1x32xf32>
    %179 = arith.addf %178, %177 : vector<1x32xf32>
    %180 = arith.divf %178, %179 : vector<1x32xf32>
    %181 = vector.extract_strided_slice %174 {offsets = [0, 32], sizes = [1, 32], strides = [1, 1]} : vector<1x128xf32> to vector<1x32xf32>
    %182 = arith.negf %181 : vector<1x32xf32>
    %183 = math.exp %182 : vector<1x32xf32>
    %cst_59 = arith.constant 1.000000e+00 : f32
    %184 = vector.broadcast %cst_59 : f32 to vector<1x32xf32>
    %185 = arith.addf %184, %183 : vector<1x32xf32>
    %186 = arith.divf %184, %185 : vector<1x32xf32>
    %187 = vector.extract_strided_slice %174 {offsets = [0, 64], sizes = [1, 32], strides = [1, 1]} : vector<1x128xf32> to vector<1x32xf32>
    %188 = math.tanh %187 : vector<1x32xf32>
    %189 = vector.extract_strided_slice %174 {offsets = [0, 96], sizes = [1, 32], strides = [1, 1]} : vector<1x128xf32> to vector<1x32xf32>
    %190 = arith.negf %189 : vector<1x32xf32>
    %191 = math.exp %190 : vector<1x32xf32>
    %cst_60 = arith.constant 1.000000e+00 : f32
    %192 = vector.broadcast %cst_60 : f32 to vector<1x32xf32>
    %193 = arith.addf %192, %191 : vector<1x32xf32>
    %194 = arith.divf %192, %193 : vector<1x32xf32>
    %195 = arith.mulf %186, %136 : vector<1x32xf32>
    %196 = arith.mulf %180, %188 : vector<1x32xf32>
    %197 = arith.addf %195, %196 : vector<1x32xf32>
    %198 = math.tanh %197 : vector<1x32xf32>
    %199 = arith.mulf %194, %198 : vector<1x32xf32>
    %200 = arith.index_cast %141 : i32 to index
    %c0_61 = arith.constant 0 : index
    %201 = vector.load %arg17[%200, %c0_61] : memref<8x32xf32, #tpu.memory_space<vmem>>, vector<1x32xf32>
    tpu.vector_store %arg17[%200, %c0_61], %199 {strides = array<i32>} : memref<8x32xf32, #tpu.memory_space<vmem>>, vector<1x32xf32>,
    %c3_i32 = arith.constant 3 : i32
    %c1_i32_62 = arith.constant 1 : i32
    %202 = arith.muli %c3_i32, %c1_i32_62 : i32
    %203 = arith.index_cast %202 : i32 to index
    %c0_63 = arith.constant 0 : index
    %204 = vector.load %arg16[%203, %c0_63] : memref<8x128xf32, #tpu.memory_space<vmem>>, vector<1x128xf32>
    %cst_64 = arith.constant dense<0.000000e+00> : vector<1x128xf32>
    %205 = tpu.matmul %170, %11, %cst_64 {dimension_numbers = #tpu.dot_dimension_numbers<[1], [0], [0], [1], [0, 0, 1, 1], [], []>} : vector<1x32xf32>, vector<32x128xf32>, vector<1x128xf32> -> vector<1x128xf32>
    %206 = arith.addf %204, %205 : vector<1x128xf32>
    %207 = vector.extract_strided_slice %206 {offsets = [0, 0], sizes = [1, 32], strides = [1, 1]} : vector<1x128xf32> to vector<1x32xf32>
    %208 = arith.negf %207 : vector<1x32xf32>
    %209 = math.exp %208 : vector<1x32xf32>
    %cst_65 = arith.constant 1.000000e+00 : f32
    %210 = vector.broadcast %cst_65 : f32 to vector<1x32xf32>
    %211 = arith.addf %210, %209 : vector<1x32xf32>
    %212 = arith.divf %210, %211 : vector<1x32xf32>
    %213 = vector.extract_strided_slice %206 {offsets = [0, 32], sizes = [1, 32], strides = [1, 1]} : vector<1x128xf32> to vector<1x32xf32>
    %214 = arith.negf %213 : vector<1x32xf32>
    %215 = math.exp %214 : vector<1x32xf32>
    %cst_66 = arith.constant 1.000000e+00 : f32
    %216 = vector.broadcast %cst_66 : f32 to vector<1x32xf32>
    %217 = arith.addf %216, %215 : vector<1x32xf32>
    %218 = arith.divf %216, %217 : vector<1x32xf32>
    %219 = vector.extract_strided_slice %206 {offsets = [0, 64], sizes = [1, 32], strides = [1, 1]} : vector<1x128xf32> to vector<1x32xf32>
    %220 = math.tanh %219 : vector<1x32xf32>
    %221 = vector.extract_strided_slice %206 {offsets = [0, 96], sizes = [1, 32], strides = [1, 1]} : vector<1x128xf32> to vector<1x32xf32>
    %222 = arith.negf %221 : vector<1x32xf32>
    %223 = math.exp %222 : vector<1x32xf32>
    %cst_67 = arith.constant 1.000000e+00 : f32
    %224 = vector.broadcast %cst_67 : f32 to vector<1x32xf32>
    %225 = arith.addf %224, %223 : vector<1x32xf32>
    %226 = arith.divf %224, %225 : vector<1x32xf32>
    %227 = arith.mulf %218, %168 : vector<1x32xf32>
    %228 = arith.mulf %212, %220 : vector<1x32xf32>
    %229 = arith.addf %227, %228 : vector<1x32xf32>
    %230 = math.tanh %229 : vector<1x32xf32>
    %231 = arith.mulf %226, %230 : vector<1x32xf32>
    %cst_68 = arith.constant dense<0.000000e+00> : vector<1x128xf32>
    %232 = tpu.matmul %231, %12, %cst_68 {dimension_numbers = #tpu.dot_dimension_numbers<[1], [0], [0], [1], [0, 0, 1, 1], [], []>} : vector<1x32xf32>, vector<32x128xf32>, vector<1x128xf32> -> vector<1x128xf32>
    %cst_69 = arith.constant dense<0.000000e+00> : vector<1x128xf32>
    %233 = tpu.matmul %199, %13, %cst_69 {dimension_numbers = #tpu.dot_dimension_numbers<[1], [0], [0], [1], [0, 0, 1, 1], [], []>} : vector<1x32xf32>, vector<32x128xf32>, vector<1x128xf32> -> vector<1x128xf32>
    %234 = arith.addf %232, %233 : vector<1x128xf32>
    %235 = arith.addf %234, %14 : vector<1x128xf32>
    %236 = vector.extract_strided_slice %235 {offsets = [0, 0], sizes = [1, 32], strides = [1, 1]} : vector<1x128xf32> to vector<1x32xf32>
    %237 = arith.negf %236 : vector<1x32xf32>
    %238 = math.exp %237 : vector<1x32xf32>
    %cst_70 = arith.constant 1.000000e+00 : f32
    %239 = vector.broadcast %cst_70 : f32 to vector<1x32xf32>
    %240 = arith.addf %239, %238 : vector<1x32xf32>
    %241 = arith.divf %239, %240 : vector<1x32xf32>
    %242 = vector.extract_strided_slice %235 {offsets = [0, 32], sizes = [1, 32], strides = [1, 1]} : vector<1x128xf32> to vector<1x32xf32>
    %243 = arith.negf %242 : vector<1x32xf32>
    %244 = math.exp %243 : vector<1x32xf32>
    %cst_71 = arith.constant 1.000000e+00 : f32
    %245 = vector.broadcast %cst_71 : f32 to vector<1x32xf32>
    %246 = arith.addf %245, %244 : vector<1x32xf32>
    %247 = arith.divf %245, %246 : vector<1x32xf32>
    %248 = vector.extract_strided_slice %235 {offsets = [0, 64], sizes = [1, 32], strides = [1, 1]} : vector<1x128xf32> to vector<1x32xf32>
    %249 = math.tanh %248 : vector<1x32xf32>
    %250 = vector.extract_strided_slice %235 {offsets = [0, 96], sizes = [1, 32], strides = [1, 1]} : vector<1x128xf32> to vector<1x32xf32>
    %251 = arith.negf %250 : vector<1x32xf32>
    %252 = math.exp %251 : vector<1x32xf32>
    %cst_72 = arith.constant 1.000000e+00 : f32
    %253 = vector.broadcast %cst_72 : f32 to vector<1x32xf32>
    %254 = arith.addf %253, %252 : vector<1x32xf32>
    %255 = arith.divf %253, %254 : vector<1x32xf32>
    %256 = arith.mulf %247, %197 : vector<1x32xf32>
    %257 = arith.mulf %241, %249 : vector<1x32xf32>
    %258 = arith.addf %256, %257 : vector<1x32xf32>
    %259 = math.tanh %258 : vector<1x32xf32>
    %260 = arith.mulf %255, %259 : vector<1x32xf32>
    %261 = arith.index_cast %202 : i32 to index
    %c0_73 = arith.constant 0 : index
    %262 = vector.load %arg17[%261, %c0_73] : memref<8x32xf32, #tpu.memory_space<vmem>>, vector<1x32xf32>
    tpu.vector_store %arg17[%261, %c0_73], %260 {strides = array<i32>} : memref<8x32xf32, #tpu.memory_space<vmem>>, vector<1x32xf32>,
    %c4_i32 = arith.constant 4 : i32
    %c1_i32_74 = arith.constant 1 : i32
    %263 = arith.muli %c4_i32, %c1_i32_74 : i32
    %264 = arith.index_cast %263 : i32 to index
    %c0_75 = arith.constant 0 : index
    %265 = vector.load %arg16[%264, %c0_75] : memref<8x128xf32, #tpu.memory_space<vmem>>, vector<1x128xf32>
    %cst_76 = arith.constant dense<0.000000e+00> : vector<1x128xf32>
    %266 = tpu.matmul %231, %11, %cst_76 {dimension_numbers = #tpu.dot_dimension_numbers<[1], [0], [0], [1], [0, 0, 1, 1], [], []>} : vector<1x32xf32>, vector<32x128xf32>, vector<1x128xf32> -> vector<1x128xf32>
    %267 = arith.addf %265, %266 : vector<1x128xf32>
    %268 = vector.extract_strided_slice %267 {offsets = [0, 0], sizes = [1, 32], strides = [1, 1]} : vector<1x128xf32> to vector<1x32xf32>
    %269 = arith.negf %268 : vector<1x32xf32>
    %270 = math.exp %269 : vector<1x32xf32>
    %cst_77 = arith.constant 1.000000e+00 : f32
    %271 = vector.broadcast %cst_77 : f32 to vector<1x32xf32>
    %272 = arith.addf %271, %270 : vector<1x32xf32>
    %273 = arith.divf %271, %272 : vector<1x32xf32>
    %274 = vector.extract_strided_slice %267 {offsets = [0, 32], sizes = [1, 32], strides = [1, 1]} : vector<1x128xf32> to vector<1x32xf32>
    %275 = arith.negf %274 : vector<1x32xf32>
    %276 = math.exp %275 : vector<1x32xf32>
    %cst_78 = arith.constant 1.000000e+00 : f32
    %277 = vector.broadcast %cst_78 : f32 to vector<1x32xf32>
    %278 = arith.addf %277, %276 : vector<1x32xf32>
    %279 = arith.divf %277, %278 : vector<1x32xf32>
    %280 = vector.extract_strided_slice %267 {offsets = [0, 64], sizes = [1, 32], strides = [1, 1]} : vector<1x128xf32> to vector<1x32xf32>
    %281 = math.tanh %280 : vector<1x32xf32>
    %282 = vector.extract_strided_slice %267 {offsets = [0, 96], sizes = [1, 32], strides = [1, 1]} : vector<1x128xf32> to vector<1x32xf32>
    %283 = arith.negf %282 : vector<1x32xf32>
    %284 = math.exp %283 : vector<1x32xf32>
    %cst_79 = arith.constant 1.000000e+00 : f32
    %285 = vector.broadcast %cst_79 : f32 to vector<1x32xf32>
    %286 = arith.addf %285, %284 : vector<1x32xf32>
    %287 = arith.divf %285, %286 : vector<1x32xf32>
    %288 = arith.mulf %279, %229 : vector<1x32xf32>
    %289 = arith.mulf %273, %281 : vector<1x32xf32>
    %290 = arith.addf %288, %289 : vector<1x32xf32>
    %291 = math.tanh %290 : vector<1x32xf32>
    %292 = arith.mulf %287, %291 : vector<1x32xf32>
    %cst_80 = arith.constant dense<0.000000e+00> : vector<1x128xf32>
    %293 = tpu.matmul %292, %12, %cst_80 {dimension_numbers = #tpu.dot_dimension_numbers<[1], [0], [0], [1], [0, 0, 1, 1], [], []>} : vector<1x32xf32>, vector<32x128xf32>, vector<1x128xf32> -> vector<1x128xf32>
    %cst_81 = arith.constant dense<0.000000e+00> : vector<1x128xf32>
    %294 = tpu.matmul %260, %13, %cst_81 {dimension_numbers = #tpu.dot_dimension_numbers<[1], [0], [0], [1], [0, 0, 1, 1], [], []>} : vector<1x32xf32>, vector<32x128xf32>, vector<1x128xf32> -> vector<1x128xf32>
    %295 = arith.addf %293, %294 : vector<1x128xf32>
    %296 = arith.addf %295, %14 : vector<1x128xf32>
    %297 = vector.extract_strided_slice %296 {offsets = [0, 0], sizes = [1, 32], strides = [1, 1]} : vector<1x128xf32> to vector<1x32xf32>
    %298 = arith.negf %297 : vector<1x32xf32>
    %299 = math.exp %298 : vector<1x32xf32>
    %cst_82 = arith.constant 1.000000e+00 : f32
    %300 = vector.broadcast %cst_82 : f32 to vector<1x32xf32>
    %301 = arith.addf %300, %299 : vector<1x32xf32>
    %302 = arith.divf %300, %301 : vector<1x32xf32>
    %303 = vector.extract_strided_slice %296 {offsets = [0, 32], sizes = [1, 32], strides = [1, 1]} : vector<1x128xf32> to vector<1x32xf32>
    %304 = arith.negf %303 : vector<1x32xf32>
    %305 = math.exp %304 : vector<1x32xf32>
    %cst_83 = arith.constant 1.000000e+00 : f32
    %306 = vector.broadcast %cst_83 : f32 to vector<1x32xf32>
    %307 = arith.addf %306, %305 : vector<1x32xf32>
    %308 = arith.divf %306, %307 : vector<1x32xf32>
    %309 = vector.extract_strided_slice %296 {offsets = [0, 64], sizes = [1, 32], strides = [1, 1]} : vector<1x128xf32> to vector<1x32xf32>
    %310 = math.tanh %309 : vector<1x32xf32>
    %311 = vector.extract_strided_slice %296 {offsets = [0, 96], sizes = [1, 32], strides = [1, 1]} : vector<1x128xf32> to vector<1x32xf32>
    %312 = arith.negf %311 : vector<1x32xf32>
    %313 = math.exp %312 : vector<1x32xf32>
    %cst_84 = arith.constant 1.000000e+00 : f32
    %314 = vector.broadcast %cst_84 : f32 to vector<1x32xf32>
    %315 = arith.addf %314, %313 : vector<1x32xf32>
    %316 = arith.divf %314, %315 : vector<1x32xf32>
    %317 = arith.mulf %308, %258 : vector<1x32xf32>
    %318 = arith.mulf %302, %310 : vector<1x32xf32>
    %319 = arith.addf %317, %318 : vector<1x32xf32>
    %320 = math.tanh %319 : vector<1x32xf32>
    %321 = arith.mulf %316, %320 : vector<1x32xf32>
    %322 = arith.index_cast %263 : i32 to index
    %c0_85 = arith.constant 0 : index
    %323 = vector.load %arg17[%322, %c0_85] : memref<8x32xf32, #tpu.memory_space<vmem>>, vector<1x32xf32>
    tpu.vector_store %arg17[%322, %c0_85], %321 {strides = array<i32>} : memref<8x32xf32, #tpu.memory_space<vmem>>, vector<1x32xf32>,
    %c5_i32 = arith.constant 5 : i32
    %c1_i32_86 = arith.constant 1 : i32
    %324 = arith.muli %c5_i32, %c1_i32_86 : i32
    %325 = arith.index_cast %324 : i32 to index
    %c0_87 = arith.constant 0 : index
    %326 = vector.load %arg16[%325, %c0_87] : memref<8x128xf32, #tpu.memory_space<vmem>>, vector<1x128xf32>
    %cst_88 = arith.constant dense<0.000000e+00> : vector<1x128xf32>
    %327 = tpu.matmul %292, %11, %cst_88 {dimension_numbers = #tpu.dot_dimension_numbers<[1], [0], [0], [1], [0, 0, 1, 1], [], []>} : vector<1x32xf32>, vector<32x128xf32>, vector<1x128xf32> -> vector<1x128xf32>
    %328 = arith.addf %326, %327 : vector<1x128xf32>
    %329 = vector.extract_strided_slice %328 {offsets = [0, 0], sizes = [1, 32], strides = [1, 1]} : vector<1x128xf32> to vector<1x32xf32>
    %330 = arith.negf %329 : vector<1x32xf32>
    %331 = math.exp %330 : vector<1x32xf32>
    %cst_89 = arith.constant 1.000000e+00 : f32
    %332 = vector.broadcast %cst_89 : f32 to vector<1x32xf32>
    %333 = arith.addf %332, %331 : vector<1x32xf32>
    %334 = arith.divf %332, %333 : vector<1x32xf32>
    %335 = vector.extract_strided_slice %328 {offsets = [0, 32], sizes = [1, 32], strides = [1, 1]} : vector<1x128xf32> to vector<1x32xf32>
    %336 = arith.negf %335 : vector<1x32xf32>
    %337 = math.exp %336 : vector<1x32xf32>
    %cst_90 = arith.constant 1.000000e+00 : f32
    %338 = vector.broadcast %cst_90 : f32 to vector<1x32xf32>
    %339 = arith.addf %338, %337 : vector<1x32xf32>
    %340 = arith.divf %338, %339 : vector<1x32xf32>
    %341 = vector.extract_strided_slice %328 {offsets = [0, 64], sizes = [1, 32], strides = [1, 1]} : vector<1x128xf32> to vector<1x32xf32>
    %342 = math.tanh %341 : vector<1x32xf32>
    %343 = vector.extract_strided_slice %328 {offsets = [0, 96], sizes = [1, 32], strides = [1, 1]} : vector<1x128xf32> to vector<1x32xf32>
    %344 = arith.negf %343 : vector<1x32xf32>
    %345 = math.exp %344 : vector<1x32xf32>
    %cst_91 = arith.constant 1.000000e+00 : f32
    %346 = vector.broadcast %cst_91 : f32 to vector<1x32xf32>
    %347 = arith.addf %346, %345 : vector<1x32xf32>
    %348 = arith.divf %346, %347 : vector<1x32xf32>
    %349 = arith.mulf %340, %290 : vector<1x32xf32>
    %350 = arith.mulf %334, %342 : vector<1x32xf32>
    %351 = arith.addf %349, %350 : vector<1x32xf32>
    %352 = math.tanh %351 : vector<1x32xf32>
    %353 = arith.mulf %348, %352 : vector<1x32xf32>
    %cst_92 = arith.constant dense<0.000000e+00> : vector<1x128xf32>
    %354 = tpu.matmul %353, %12, %cst_92 {dimension_numbers = #tpu.dot_dimension_numbers<[1], [0], [0], [1], [0, 0, 1, 1], [], []>} : vector<1x32xf32>, vector<32x128xf32>, vector<1x128xf32> -> vector<1x128xf32>
    %cst_93 = arith.constant dense<0.000000e+00> : vector<1x128xf32>
    %355 = tpu.matmul %321, %13, %cst_93 {dimension_numbers = #tpu.dot_dimension_numbers<[1], [0], [0], [1], [0, 0, 1, 1], [], []>} : vector<1x32xf32>, vector<32x128xf32>, vector<1x128xf32> -> vector<1x128xf32>
    %356 = arith.addf %354, %355 : vector<1x128xf32>
    %357 = arith.addf %356, %14 : vector<1x128xf32>
    %358 = vector.extract_strided_slice %357 {offsets = [0, 0], sizes = [1, 32], strides = [1, 1]} : vector<1x128xf32> to vector<1x32xf32>
    %359 = arith.negf %358 : vector<1x32xf32>
    %360 = math.exp %359 : vector<1x32xf32>
    %cst_94 = arith.constant 1.000000e+00 : f32
    %361 = vector.broadcast %cst_94 : f32 to vector<1x32xf32>
    %362 = arith.addf %361, %360 : vector<1x32xf32>
    %363 = arith.divf %361, %362 : vector<1x32xf32>
    %364 = vector.extract_strided_slice %357 {offsets = [0, 32], sizes = [1, 32], strides = [1, 1]} : vector<1x128xf32> to vector<1x32xf32>
    %365 = arith.negf %364 : vector<1x32xf32>
    %366 = math.exp %365 : vector<1x32xf32>
    %cst_95 = arith.constant 1.000000e+00 : f32
    %367 = vector.broadcast %cst_95 : f32 to vector<1x32xf32>
    %368 = arith.addf %367, %366 : vector<1x32xf32>
    %369 = arith.divf %367, %368 : vector<1x32xf32>
    %370 = vector.extract_strided_slice %357 {offsets = [0, 64], sizes = [1, 32], strides = [1, 1]} : vector<1x128xf32> to vector<1x32xf32>
    %371 = math.tanh %370 : vector<1x32xf32>
    %372 = vector.extract_strided_slice %357 {offsets = [0, 96], sizes = [1, 32], strides = [1, 1]} : vector<1x128xf32> to vector<1x32xf32>
    %373 = arith.negf %372 : vector<1x32xf32>
    %374 = math.exp %373 : vector<1x32xf32>
    %cst_96 = arith.constant 1.000000e+00 : f32
    %375 = vector.broadcast %cst_96 : f32 to vector<1x32xf32>
    %376 = arith.addf %375, %374 : vector<1x32xf32>
    %377 = arith.divf %375, %376 : vector<1x32xf32>
    %378 = arith.mulf %369, %319 : vector<1x32xf32>
    %379 = arith.mulf %363, %371 : vector<1x32xf32>
    %380 = arith.addf %378, %379 : vector<1x32xf32>
    %381 = math.tanh %380 : vector<1x32xf32>
    %382 = arith.mulf %377, %381 : vector<1x32xf32>
    %383 = arith.index_cast %324 : i32 to index
    %c0_97 = arith.constant 0 : index
    %384 = vector.load %arg17[%383, %c0_97] : memref<8x32xf32, #tpu.memory_space<vmem>>, vector<1x32xf32>
    tpu.vector_store %arg17[%383, %c0_97], %382 {strides = array<i32>} : memref<8x32xf32, #tpu.memory_space<vmem>>, vector<1x32xf32>,
    %c6_i32 = arith.constant 6 : i32
    %c1_i32_98 = arith.constant 1 : i32
    %385 = arith.muli %c6_i32, %c1_i32_98 : i32
    %386 = arith.index_cast %385 : i32 to index
    %c0_99 = arith.constant 0 : index
    %387 = vector.load %arg16[%386, %c0_99] : memref<8x128xf32, #tpu.memory_space<vmem>>, vector<1x128xf32>
    %cst_100 = arith.constant dense<0.000000e+00> : vector<1x128xf32>
    %388 = tpu.matmul %353, %11, %cst_100 {dimension_numbers = #tpu.dot_dimension_numbers<[1], [0], [0], [1], [0, 0, 1, 1], [], []>} : vector<1x32xf32>, vector<32x128xf32>, vector<1x128xf32> -> vector<1x128xf32>
    %389 = arith.addf %387, %388 : vector<1x128xf32>
    %390 = vector.extract_strided_slice %389 {offsets = [0, 0], sizes = [1, 32], strides = [1, 1]} : vector<1x128xf32> to vector<1x32xf32>
    %391 = arith.negf %390 : vector<1x32xf32>
    %392 = math.exp %391 : vector<1x32xf32>
    %cst_101 = arith.constant 1.000000e+00 : f32
    %393 = vector.broadcast %cst_101 : f32 to vector<1x32xf32>
    %394 = arith.addf %393, %392 : vector<1x32xf32>
    %395 = arith.divf %393, %394 : vector<1x32xf32>
    %396 = vector.extract_strided_slice %389 {offsets = [0, 32], sizes = [1, 32], strides = [1, 1]} : vector<1x128xf32> to vector<1x32xf32>
    %397 = arith.negf %396 : vector<1x32xf32>
    %398 = math.exp %397 : vector<1x32xf32>
    %cst_102 = arith.constant 1.000000e+00 : f32
    %399 = vector.broadcast %cst_102 : f32 to vector<1x32xf32>
    %400 = arith.addf %399, %398 : vector<1x32xf32>
    %401 = arith.divf %399, %400 : vector<1x32xf32>
    %402 = vector.extract_strided_slice %389 {offsets = [0, 64], sizes = [1, 32], strides = [1, 1]} : vector<1x128xf32> to vector<1x32xf32>
    %403 = math.tanh %402 : vector<1x32xf32>
    %404 = vector.extract_strided_slice %389 {offsets = [0, 96], sizes = [1, 32], strides = [1, 1]} : vector<1x128xf32> to vector<1x32xf32>
    %405 = arith.negf %404 : vector<1x32xf32>
    %406 = math.exp %405 : vector<1x32xf32>
    %cst_103 = arith.constant 1.000000e+00 : f32
    %407 = vector.broadcast %cst_103 : f32 to vector<1x32xf32>
    %408 = arith.addf %407, %406 : vector<1x32xf32>
    %409 = arith.divf %407, %408 : vector<1x32xf32>
    %410 = arith.mulf %401, %351 : vector<1x32xf32>
    %411 = arith.mulf %395, %403 : vector<1x32xf32>
    %412 = arith.addf %410, %411 : vector<1x32xf32>
    %413 = math.tanh %412 : vector<1x32xf32>
    %414 = arith.mulf %409, %413 : vector<1x32xf32>
    %cst_104 = arith.constant dense<0.000000e+00> : vector<1x128xf32>
    %415 = tpu.matmul %414, %12, %cst_104 {dimension_numbers = #tpu.dot_dimension_numbers<[1], [0], [0], [1], [0, 0, 1, 1], [], []>} : vector<1x32xf32>, vector<32x128xf32>, vector<1x128xf32> -> vector<1x128xf32>
    %cst_105 = arith.constant dense<0.000000e+00> : vector<1x128xf32>
    %416 = tpu.matmul %382, %13, %cst_105 {dimension_numbers = #tpu.dot_dimension_numbers<[1], [0], [0], [1], [0, 0, 1, 1], [], []>} : vector<1x32xf32>, vector<32x128xf32>, vector<1x128xf32> -> vector<1x128xf32>
    %417 = arith.addf %415, %416 : vector<1x128xf32>
    %418 = arith.addf %417, %14 : vector<1x128xf32>
    %419 = vector.extract_strided_slice %418 {offsets = [0, 0], sizes = [1, 32], strides = [1, 1]} : vector<1x128xf32> to vector<1x32xf32>
    %420 = arith.negf %419 : vector<1x32xf32>
    %421 = math.exp %420 : vector<1x32xf32>
    %cst_106 = arith.constant 1.000000e+00 : f32
    %422 = vector.broadcast %cst_106 : f32 to vector<1x32xf32>
    %423 = arith.addf %422, %421 : vector<1x32xf32>
    %424 = arith.divf %422, %423 : vector<1x32xf32>
    %425 = vector.extract_strided_slice %418 {offsets = [0, 32], sizes = [1, 32], strides = [1, 1]} : vector<1x128xf32> to vector<1x32xf32>
    %426 = arith.negf %425 : vector<1x32xf32>
    %427 = math.exp %426 : vector<1x32xf32>
    %cst_107 = arith.constant 1.000000e+00 : f32
    %428 = vector.broadcast %cst_107 : f32 to vector<1x32xf32>
    %429 = arith.addf %428, %427 : vector<1x32xf32>
    %430 = arith.divf %428, %429 : vector<1x32xf32>
    %431 = vector.extract_strided_slice %418 {offsets = [0, 64], sizes = [1, 32], strides = [1, 1]} : vector<1x128xf32> to vector<1x32xf32>
    %432 = math.tanh %431 : vector<1x32xf32>
    %433 = vector.extract_strided_slice %418 {offsets = [0, 96], sizes = [1, 32], strides = [1, 1]} : vector<1x128xf32> to vector<1x32xf32>
    %434 = arith.negf %433 : vector<1x32xf32>
    %435 = math.exp %434 : vector<1x32xf32>
    %cst_108 = arith.constant 1.000000e+00 : f32
    %436 = vector.broadcast %cst_108 : f32 to vector<1x32xf32>
    %437 = arith.addf %436, %435 : vector<1x32xf32>
    %438 = arith.divf %436, %437 : vector<1x32xf32>
    %439 = arith.mulf %430, %380 : vector<1x32xf32>
    %440 = arith.mulf %424, %432 : vector<1x32xf32>
    %441 = arith.addf %439, %440 : vector<1x32xf32>
    %442 = math.tanh %441 : vector<1x32xf32>
    %443 = arith.mulf %438, %442 : vector<1x32xf32>
    %444 = arith.index_cast %385 : i32 to index
    %c0_109 = arith.constant 0 : index
    %445 = vector.load %arg17[%444, %c0_109] : memref<8x32xf32, #tpu.memory_space<vmem>>, vector<1x32xf32>
    tpu.vector_store %arg17[%444, %c0_109], %443 {strides = array<i32>} : memref<8x32xf32, #tpu.memory_space<vmem>>, vector<1x32xf32>,
    %c7_i32 = arith.constant 7 : i32
    %c1_i32_110 = arith.constant 1 : i32
    %446 = arith.muli %c7_i32, %c1_i32_110 : i32
    %447 = arith.index_cast %446 : i32 to index
    %c0_111 = arith.constant 0 : index
    %448 = vector.load %arg16[%447, %c0_111] : memref<8x128xf32, #tpu.memory_space<vmem>>, vector<1x128xf32>
    %cst_112 = arith.constant dense<0.000000e+00> : vector<1x128xf32>
    %449 = tpu.matmul %414, %11, %cst_112 {dimension_numbers = #tpu.dot_dimension_numbers<[1], [0], [0], [1], [0, 0, 1, 1], [], []>} : vector<1x32xf32>, vector<32x128xf32>, vector<1x128xf32> -> vector<1x128xf32>
    %450 = arith.addf %448, %449 : vector<1x128xf32>
    %451 = vector.extract_strided_slice %450 {offsets = [0, 0], sizes = [1, 32], strides = [1, 1]} : vector<1x128xf32> to vector<1x32xf32>
    %452 = arith.negf %451 : vector<1x32xf32>
    %453 = math.exp %452 : vector<1x32xf32>
    %cst_113 = arith.constant 1.000000e+00 : f32
    %454 = vector.broadcast %cst_113 : f32 to vector<1x32xf32>
    %455 = arith.addf %454, %453 : vector<1x32xf32>
    %456 = arith.divf %454, %455 : vector<1x32xf32>
    %457 = vector.extract_strided_slice %450 {offsets = [0, 32], sizes = [1, 32], strides = [1, 1]} : vector<1x128xf32> to vector<1x32xf32>
    %458 = arith.negf %457 : vector<1x32xf32>
    %459 = math.exp %458 : vector<1x32xf32>
    %cst_114 = arith.constant 1.000000e+00 : f32
    %460 = vector.broadcast %cst_114 : f32 to vector<1x32xf32>
    %461 = arith.addf %460, %459 : vector<1x32xf32>
    %462 = arith.divf %460, %461 : vector<1x32xf32>
    %463 = vector.extract_strided_slice %450 {offsets = [0, 64], sizes = [1, 32], strides = [1, 1]} : vector<1x128xf32> to vector<1x32xf32>
    %464 = math.tanh %463 : vector<1x32xf32>
    %465 = vector.extract_strided_slice %450 {offsets = [0, 96], sizes = [1, 32], strides = [1, 1]} : vector<1x128xf32> to vector<1x32xf32>
    %466 = arith.negf %465 : vector<1x32xf32>
    %467 = math.exp %466 : vector<1x32xf32>
    %cst_115 = arith.constant 1.000000e+00 : f32
    %468 = vector.broadcast %cst_115 : f32 to vector<1x32xf32>
    %469 = arith.addf %468, %467 : vector<1x32xf32>
    %470 = arith.divf %468, %469 : vector<1x32xf32>
    %471 = arith.mulf %462, %412 : vector<1x32xf32>
    %472 = arith.mulf %456, %464 : vector<1x32xf32>
    %473 = arith.addf %471, %472 : vector<1x32xf32>
    %474 = math.tanh %473 : vector<1x32xf32>
    %475 = arith.mulf %470, %474 : vector<1x32xf32>
    %cst_116 = arith.constant dense<0.000000e+00> : vector<1x128xf32>
    %476 = tpu.matmul %475, %12, %cst_116 {dimension_numbers = #tpu.dot_dimension_numbers<[1], [0], [0], [1], [0, 0, 1, 1], [], []>} : vector<1x32xf32>, vector<32x128xf32>, vector<1x128xf32> -> vector<1x128xf32>
    %cst_117 = arith.constant dense<0.000000e+00> : vector<1x128xf32>
    %477 = tpu.matmul %443, %13, %cst_117 {dimension_numbers = #tpu.dot_dimension_numbers<[1], [0], [0], [1], [0, 0, 1, 1], [], []>} : vector<1x32xf32>, vector<32x128xf32>, vector<1x128xf32> -> vector<1x128xf32>
    %478 = arith.addf %476, %477 : vector<1x128xf32>
    %479 = arith.addf %478, %14 : vector<1x128xf32>
    %480 = vector.extract_strided_slice %479 {offsets = [0, 0], sizes = [1, 32], strides = [1, 1]} : vector<1x128xf32> to vector<1x32xf32>
    %481 = arith.negf %480 : vector<1x32xf32>
    %482 = math.exp %481 : vector<1x32xf32>
    %cst_118 = arith.constant 1.000000e+00 : f32
    %483 = vector.broadcast %cst_118 : f32 to vector<1x32xf32>
    %484 = arith.addf %483, %482 : vector<1x32xf32>
    %485 = arith.divf %483, %484 : vector<1x32xf32>
    %486 = vector.extract_strided_slice %479 {offsets = [0, 32], sizes = [1, 32], strides = [1, 1]} : vector<1x128xf32> to vector<1x32xf32>
    %487 = arith.negf %486 : vector<1x32xf32>
    %488 = math.exp %487 : vector<1x32xf32>
    %cst_119 = arith.constant 1.000000e+00 : f32
    %489 = vector.broadcast %cst_119 : f32 to vector<1x32xf32>
    %490 = arith.addf %489, %488 : vector<1x32xf32>
    %491 = arith.divf %489, %490 : vector<1x32xf32>
    %492 = vector.extract_strided_slice %479 {offsets = [0, 64], sizes = [1, 32], strides = [1, 1]} : vector<1x128xf32> to vector<1x32xf32>
    %493 = math.tanh %492 : vector<1x32xf32>
    %494 = vector.extract_strided_slice %479 {offsets = [0, 96], sizes = [1, 32], strides = [1, 1]} : vector<1x128xf32> to vector<1x32xf32>
    %495 = arith.negf %494 : vector<1x32xf32>
    %496 = math.exp %495 : vector<1x32xf32>
    %cst_120 = arith.constant 1.000000e+00 : f32
    %497 = vector.broadcast %cst_120 : f32 to vector<1x32xf32>
    %498 = arith.addf %497, %496 : vector<1x32xf32>
    %499 = arith.divf %497, %498 : vector<1x32xf32>
    %500 = arith.mulf %491, %441 : vector<1x32xf32>
    %501 = arith.mulf %485, %493 : vector<1x32xf32>
    %502 = arith.addf %500, %501 : vector<1x32xf32>
    %503 = math.tanh %502 : vector<1x32xf32>
    %504 = arith.mulf %499, %503 : vector<1x32xf32>
    %505 = arith.index_cast %446 : i32 to index
    %c0_121 = arith.constant 0 : index
    %506 = vector.load %arg17[%505, %c0_121] : memref<8x32xf32, #tpu.memory_space<vmem>>, vector<1x32xf32>
    tpu.vector_store %arg17[%505, %c0_121], %504 {strides = array<i32>} : memref<8x32xf32, #tpu.memory_space<vmem>>, vector<1x32xf32>,
    %c8_i32 = arith.constant 8 : i32
    %c0_122 = arith.constant 0 : index
    %c0_123 = arith.constant 0 : index
    %507 = vector.load %arg12[%c0_122, %c0_123] : memref<1x32xf32, #tpu.memory_space<vmem>>, vector<1x32xf32>
    tpu.vector_store %arg12[%c0_122, %c0_123], %475 {strides = array<i32>} : memref<1x32xf32, #tpu.memory_space<vmem>>, vector<1x32xf32>,
    %c0_124 = arith.constant 0 : index
    %c0_125 = arith.constant 0 : index
    %508 = vector.load %arg13[%c0_124, %c0_125] : memref<1x32xf32, #tpu.memory_space<vmem>>, vector<1x32xf32>
    tpu.vector_store %arg13[%c0_124, %c0_125], %473 {strides = array<i32>} : memref<1x32xf32, #tpu.memory_space<vmem>>, vector<1x32xf32>,
    %c0_126 = arith.constant 0 : index
    %c0_127 = arith.constant 0 : index
    %509 = vector.load %arg14[%c0_126, %c0_127] : memref<1x32xf32, #tpu.memory_space<vmem>>, vector<1x32xf32>
    tpu.vector_store %arg14[%c0_126, %c0_127], %504 {strides = array<i32>} : memref<1x32xf32, #tpu.memory_space<vmem>>, vector<1x32xf32>,
    %c0_128 = arith.constant 0 : index
    %c0_129 = arith.constant 0 : index
    %510 = vector.load %arg15[%c0_128, %c0_129] : memref<1x32xf32, #tpu.memory_space<vmem>>, vector<1x32xf32>
    tpu.vector_store %arg15[%c0_128, %c0_129], %502 {strides = array<i32>} : memref<1x32xf32, #tpu.memory_space<vmem>>, vector<1x32xf32>,
    %c0_130 = arith.constant 0 : index
    %c0_131 = arith.constant 0 : index
    %511 = vector.load %arg9[%c0_130, %c0_131] : memref<32x16xf32, #tpu.memory_space<vmem>>, vector<32x16xf32>
    %c0_132 = arith.constant 0 : index
    %c0_133 = arith.constant 0 : index
    %512 = vector.load %arg17[%c0_132, %c0_133] : memref<8x32xf32, #tpu.memory_space<vmem>>, vector<8x32xf32>
    %cst_134 = arith.constant dense<0.000000e+00> : vector<8x16xf32>
    %513 = tpu.matmul %512, %511, %cst_134 {dimension_numbers = #tpu.dot_dimension_numbers<[1], [0], [0], [1], [0, 0, 1, 1], [], []>} : vector<8x32xf32>, vector<32x16xf32>, vector<8x16xf32> -> vector<8x16xf32>
    %c0_135 = arith.constant 0 : index
    %c0_136 = arith.constant 0 : index
    %514 = vector.load %arg10[%c0_135, %c0_136] : memref<1x16xf32, #tpu.memory_space<vmem>>, vector<1x16xf32>
    %515 = vector.broadcast %514 : vector<1x16xf32> to vector<8x16xf32>
    %516 = arith.addf %513, %515 : vector<8x16xf32>
    %c0_137 = arith.constant 0 : index
    %c0_138 = arith.constant 0 : index
    %c0_139 = arith.constant 0 : index
    %517 = vector.load %arg11[%c0_137, %c0_138, %c0_139] : memref<1x8x16xf32, #tpu.memory_space<vmem>>, vector<1x8x16xf32>
    %518 = vector.shape_cast %517 : vector<1x8x16xf32> to vector<8x16xf32>
    %519 = vector.shape_cast %516 : vector<8x16xf32> to vector<1x8x16xf32>
    tpu.vector_store %arg11[%c0_137, %c0_138, %c0_139], %519 {strides = array<i32>} : memref<1x8x16xf32, #tpu.memory_space<vmem>>, vector<1x8x16xf32>,
    return
  }
  func.func @transform_0(%arg0: i32, %arg1: i32) -> (i32, i32, i32) {
    %c0_i32 = arith.constant 0 : i32
    %c0_i32_0 = arith.constant 0 : i32
    return %arg0, %arg1, %c0_i32 : i32, i32, i32
  }
  func.func @transform_1(%arg0: i32, %arg1: i32) -> (i32, i32) {
    %c0_i32 = arith.constant 0 : i32
    %c0_i32_0 = arith.constant 0 : i32
    %c0_i32_1 = arith.constant 0 : i32
    return %c0_i32, %c0_i32_0 : i32, i32
  }
  func.func @transform_2(%arg0: i32, %arg1: i32) -> (i32, i32) {
    %c0_i32 = arith.constant 0 : i32
    %c0_i32_0 = arith.constant 0 : i32
    %c0_i32_1 = arith.constant 0 : i32
    return %c0_i32, %c0_i32_0 : i32, i32
  }
  func.func @transform_3(%arg0: i32, %arg1: i32) -> (i32, i32) {
    %c0_i32 = arith.constant 0 : i32
    %c0_i32_0 = arith.constant 0 : i32
    %c0_i32_1 = arith.constant 0 : i32
    return %c0_i32, %c0_i32_0 : i32, i32
  }
  func.func @transform_4(%arg0: i32, %arg1: i32) -> (i32, i32) {
    %c0_i32 = arith.constant 0 : i32
    %c0_i32_0 = arith.constant 0 : i32
    %c0_i32_1 = arith.constant 0 : i32
    return %c0_i32, %c0_i32_0 : i32, i32
  }
  func.func @transform_5(%arg0: i32, %arg1: i32) -> (i32, i32) {
    %c0_i32 = arith.constant 0 : i32
    %c0_i32_0 = arith.constant 0 : i32
    %c0_i32_1 = arith.constant 0 : i32
    return %c0_i32, %c0_i32_0 : i32, i32
  }
  func.func @transform_6(%arg0: i32, %arg1: i32) -> (i32, i32) {
    %c0_i32 = arith.constant 0 : i32
    %c0_i32_0 = arith.constant 0 : i32
    %c0_i32_1 = arith.constant 0 : i32
    return %c0_i32, %c0_i32_0 : i32, i32
  }
  func.func @transform_7(%arg0: i32, %arg1: i32) -> (i32, i32) {
    %c0_i32 = arith.constant 0 : i32
    %c0_i32_0 = arith.constant 0 : i32
    %c0_i32_1 = arith.constant 0 : i32
    return %c0_i32, %c0_i32_0 : i32, i32
  }
  func.func @transform_8(%arg0: i32, %arg1: i32) -> (i32, i32) {
    %c0_i32 = arith.constant 0 : i32
    %c0_i32_0 = arith.constant 0 : i32
    %c0_i32_1 = arith.constant 0 : i32
    return %c0_i32, %c0_i32_0 : i32, i32
  }
  func.func @transform_9(%arg0: i32, %arg1: i32) -> (i32, i32, i32) {
    %c0_i32 = arith.constant 0 : i32
    %c0_i32_0 = arith.constant 0 : i32
    return %arg0, %arg1, %c0_i32 : i32, i32, i32
  }
}

</mosaic_0001>

<bundles_post_ra>
// kernel: tpu_custom_call.1
= control target key start
LH: loop header
LB: loop body
LE: loop exit
PB: predicated region body
PF: predicated region fallthrough
CT: control target
= control target key end

     0   :  { %s4688_s0 = inlined_call_operand.vmem [shape: f32[2,16,32], index: 0, kind: input, shape index: {}]   ;;  %s4689_s1 = inlined_call_operand.hbm [shape: f32[32,128], index: 1, kind: input, shape index: {}]   ;;  %s4690_s2 = inlined_call_operand.hbm [shape: f32[32,128], index: 2, kind: input, shape index: {}]   ;;  %s4691_s3 = inlined_call_operand.vmem [shape: f32[1,128], index: 3, kind: input, shape index: {}]   ;;  %s4692_s4 = inlined_call_operand.hbm [shape: f32[32,128], index: 4, kind: input, shape index: {}]   ;;  %s4693_s5 = inlined_call_operand.vmem [shape: f32[32,128], index: 5, kind: input, shape index: {}]   ;;  %s4694_s6 = inlined_call_operand.vmem [shape: f32[1,128], index: 6, kind: input, shape index: {}]   ;;  %s4695_s7 = inlined_call_operand.vmem [shape: f32[32,16], index: 7, kind: input, shape index: {}]   ;;  %s4696_s8 = inlined_call_operand.vmem [shape: f32[1,16], index: 8, kind: input, shape index: {}]   ;;  %s4697_s9 = inlined_call_operand.hbm [shape: f32[2,16,16], index: 9, kind: output, shape index: {}]  }
   0x1   :  { %4712 = sst [smem:[#allocation27_spill]] %s4697_s9 }
   0x2   :  { %14 = vsyncpa [#allocation9], 0 }
   0x3   :  { %15 = vsyncpa [#allocation12], 0 }
   0x4   :  { %16 = vsyncpa [#allocation10], 0 }
   0x5   :  { %18 = vsyncpa [#allocation10 + $0x1], 0  ;;  %s4071_s30 = smov 0   ;;  %s4073_s10 = smov 0  }
   0x6   :  { %s4075_s11 = smov 0   ;;  %s4077_s12 = smov 0  }
   0x7   :  { %s4079_s13 = smov 0   ;;  %s4081_s14 = smov 0  }
   0x8   :  { %s4083_s15 = smov 0   ;;  %s4085_s16 = smov 0  }
   0x9 LB: > { %4713 = sst [smem:[#allocation18_spill]] %s3978_s30  ;;  %s2943_s17 = sadd.s32 4294967295, %s4006_s16   ;;  %s4006_s16 = sphi %s4085_s16, %s24_s16   ;;  %s4002_s15 = sphi %s4083_s15, %s4741_s15   ;;  %s3998_s14 = sphi %s4081_s14, %s4740_s14   ;;  %s3994_s13 = sphi %s4079_s13, %s4739_s13   ;;  %s3990_s12 = sphi %s4077_s12, %s4738_s12   ;;  %s3986_s11 = sphi %s4075_s11, %s4737_s11   ;;  %s3982_s10 = sphi %s4073_s10, %s4743_s10   ;;  %s3978_s30 = sphi %s4071_s30, %s4742_s30  }
   0xa   : > { %4714 = sst [smem:[#allocation19_spill]] %s3986_s11  ;;  %s2944_s18 = sadd.s32 4294967294, %s4006_s16  }
   0xb   : > { %4715 = sst [smem:[#allocation20_spill]] %s3998_s14  ;;  %s33_s19 = sadd.s32 1, %s3998_s14 }
   0xc   : > { %4716 = sst [smem:[#allocation21_spill]] %s4002_s15  ;;  %s36_s20 = sadd.s32 1, %s4002_s15 }
   0xd   : > { %4717 = sst [smem:[#allocation22_spill]] %s4006_s16  ;;  %p34_p0 = scmp.ge.s32.totalorder %s33_s19, 2 }
   0xe   : > { %s241_s21 = sadd.s32 1, %s3986_s11  ;;  %p251_p1 = scmp.ne.s32.totalorder %s3986_s11, %s3982_s10 }
   0xf   : > { %p252_p2 = scmp.eq.s32.totalorder %s2943_s17, 3  ;;  %s4745_s19 = smov (%p34_p0, %s33_s19), 0 }
  0x10   : > { %4718 = sst [smem:[#allocation23_spill]] %s4745_s19  ;;  %s4747_s20 = smov (!%p34_p0, %s36_s20), %s4002_s15 }
  0x11   : > { %s237_s22 = ssub.s32 %s3998_s14, %s4745_s19  ;;  %p4123_p3 = por %p252_p2, %p251_p1 }
  0x12   : > { %p38_p4 = scmp.ge.s32.totalorder %s4747_s20, 2  ;;  %p257_p5 = scmp.ne.s32.totalorder %s3982_s10, %s3978_s30 }
  0x13   : > { %s4719_s23 = scalar_select %p4123_p3, 1, 0 }
  0x14   : > { %p258_p6 = scmp.eq.s32.totalorder %s2944_s18, 3  ;;  %p2945_p7 = scmp.ge.s32.totalorder %s4006_s16, 1 }
  0x15   : > { %s4749_s20 = smov (%p38_p4, %s4747_s20), 0  ;;  %p265_p9 = scmp.lt.s32.totalorder %s4006_s16, 5 }
  0x16   : > { %4720 = sst [smem:[#allocation24_spill]] %s4749_s20  ;;  %p4132_p8 = por %p258_p6, %p257_p5 }
  0x17   : > { %s236_s25 = ssub.s32 %s4002_s15, %s4749_s20  ;;  %p4139_p10 = pnand %p2945_p7, %p265_p9 }
  0x18   : > { %s4721_s24 = scalar_select %p4132_p8, 1, 0 }
  0x19   : > { %s238_s26 = sor.u32 %s237_s22, %s236_s25  ;;  %p4143_p12 = scmp.eq.s32.totalorder %s2943_s17, 0 }
  0x1a   : > { %4722 = sst [smem:[#allocation25_spill]] %s4721_s24  ;;  %p239_p11 = scmp.eq.s32.totalorder %s238_s26, 0 }
  0x1b   : > { %s4723_s27 = scalar_select %p4139_p10, 1, 0 }
  0x1c   : > { %s4724_s28 = scalar_select %p4143_p12, 1, 0 }
  0x1d   : > { %p3595_p13 = pneg %p4139_p10  ;;  %s4008_s22 = smov [#allocation11]  }
  0x1e   : > { %s4150_s29 = scalar_select %p239_p11, %s3986_s11, %s241_s21  }
  0x1f   : > { %p4154_p0 = pnand %p4143_p12, %p3595_p13  ;;  %s290_s25 = sshll.u32 %s4008_s22, 4  ;;  %s291_s25 = int_to_ptr.vmem [resolvable:$true] %s290_s25 }
  0x20   : > { %4725 = sst [smem:[#allocation26_spill]] %s4150_s29  ;;  %s3820_s17 = scalar_lea.hbm %s4690_s2, 512 }
  0x21   : > { %p3821_p1 = scmp.ne.s32.totalorder %s4690_s2, %s3820_s17  ;;  %p4166_p2 = pneg %p4154_p0 }
  0x22   : > { %p3827_p6 = scmp.lt.u32.totalorder %s3820_s17, %s4690_s2 }
  0x23   : > { %p3823_p4 = pnand %p4166_p2, %p3821_p1 }
  0x25   : > { %p3824_p5 = pneg %p3823_p4 }
  0x27   : > { %p3829_p7 = pnand %p3827_p6, %p3824_p5 }
  0x29   : > { %3832 = shalt.err (!%p3829_p7)
}
  0x2a   : > { %s3833_s20 = scalar_lea.vmem %s291_s25, 512  ;;  %p3841_p8 = scmp.lt.s32.totalorder %s291_s25, %s291_s25 }
  0x2b   : > { %p3834_p9 = scmp.ne.s32.totalorder %s291_s25, %s3833_s20  ;;  %p3842_p3 = scmp.lt.s32.totalorder %s3833_s20, %s3833_s20 }
  0x2d   : > { %p3836_p11 = pnand %p3834_p9, %p4166_p2  ;;  %p3843_p12 = por %p3842_p3, %p3841_p8 }
  0x2f   : > { %p3837_p13 = pneg %p3836_p11 }
  0x31   : > { %p3844_p10 = pnand %p3843_p12, %p3837_p13 }
  0x33   : > { %3847 = shalt.err (!%p3844_p10)
}
  0x34   : > { %s4009_s15 = smov 128   ;;  %s4010_s19 = smov 8  }
  0x35   : > { %3601 = dma.hbm_to_vmem [thread:$0]  (!%p4154_p0), %s4690_s2, 512, %s291_s25, [#allocation12], %s4009_s15, %s4009_s15, %s4010_s19  }
  0x36   : > { %s4011_s17 = smov [#allocation8]   ;;  %s4012_s29 = smov [#allocation13]  }
  0x37   : > { %s277_s22 = sshll.u32 %s4011_s17, 4  ;;  %s306_s11 = sshll.u32 %s4012_s29, 4  ;;  %s278_s22 = int_to_ptr.vmem [resolvable:$true] %s277_s22  ;;  %s4185_s11 = int_to_ptr.vmem [resolvable:$true] %s306_s11 }
  0x38   : > { %s3848_s30 = scalar_lea.hbm %s4689_s1, 512 }
  0x39   : > { %p3849_p3 = scmp.ne.s32.totalorder %s4689_s1, %s3848_s30  ;;  %p3855_p12 = scmp.lt.u32.totalorder %s3848_s30, %s4689_s1 }
  0x3b   : > { %p3851_p8 = pnand %p3849_p3, %p4166_p2 }
  0x3d   : > { %p3852_p10 = pneg %p3851_p8 }
  0x3f   : > { %p3857_p1 = pnand %p3855_p12, %p3852_p10 }
  0x41   : > { %3860 = shalt.err (!%p3857_p1)
}
  0x42   : > { %s3861_s29 = scalar_lea.vmem %s278_s22, 512  ;;  %p3869_p7 = scmp.lt.s32.totalorder %s278_s22, %s278_s22 }
  0x43   : > { %p3862_p4 = scmp.ne.s32.totalorder %s278_s22, %s3861_s29  ;;  %p3870_p9 = scmp.lt.s32.totalorder %s3861_s29, %s3861_s29 }
  0x45   : > { %p3864_p5 = pnand %p3862_p4, %p4166_p2  ;;  %p3871_p11 = por %p3870_p9, %p3869_p7 }
  0x47   : > { %p3865_p6 = pneg %p3864_p5 }
  0x49   : > { %p3872_p13 = pnand %p3871_p11, %p3865_p6 }
  0x4b   : > { %3875 = shalt.err (!%p3872_p13)
}
  0x4c   : > { %3598 = dma.hbm_to_vmem [thread:$0]  (!%p4154_p0), %s4689_s1, 512, %s278_s22, [#allocation9], %s4009_s15, %s4009_s15, %s4010_s19  }
  0x4d   : > { %s3876_s26 = scalar_lea.hbm %s4692_s4, 512 }
  0x4e   : > { %p3877_p3 = scmp.ne.s32.totalorder %s4692_s4, %s3876_s26  ;;  %p3883_p12 = scmp.lt.u32.totalorder %s3876_s26, %s4692_s4 }
  0x50   : > { %p3879_p8 = pnand %p3877_p3, %p4166_p2 }
  0x52   : > { %p3880_p10 = pneg %p3879_p8 }
  0x54   : > { %p3885_p1 = pnand %p3883_p12, %p3880_p10 }
  0x56   : > { %3888 = shalt.err (!%p3885_p1)
}
  0x57   : > { %s3889_s22 = scalar_lea.vmem %s4185_s11, 512  ;;  %p3897_p7 = scmp.lt.s32.totalorder %s4185_s11, %s4185_s11 }
  0x58   : > { %p3890_p4 = scmp.ne.s32.totalorder %s4185_s11, %s3889_s22  ;;  %p3898_p9 = scmp.lt.s32.totalorder %s3889_s22, %s3889_s22 }
  0x5a   : > { %p3892_p5 = pnand %p3890_p4, %p4166_p2  ;;  %p3899_p11 = por %p3898_p9, %p3897_p7 }
  0x5c   : > { %p3893_p6 = pneg %p3892_p5 }
  0x5e   : > { %p3900_p13 = pnand %p3899_p11, %p3893_p6 }
  0x60   : > { %3903 = shalt.err (!%p3900_p13)
}
  0x61   : > { %3604 = dma.hbm_to_vmem [thread:$0]  (!%p4154_p0), %s4692_s4, 512, %s4185_s11, [#allocation12], %s4009_s15, %s4009_s15, %s4010_s19  }
  0x62   : > { %p4728_p3 = scmp.ne.s32.totalorder %s4723_s27, 0 }
  0x63   : > { %p4729_p2 = scmp.ne.s32.totalorder (!%p4728_p3), %s4724_s28, 0 }
  0x64   : > { %345 = sbr.rel (%p4728_p3) target bundleno = 6733 (0x1a4d), region = 56 }
  0x6b   : > { %3965 = dma.done.wait (%p4729_p2), [#allocation9], 512  }
  0x6c   : > { %3967 = vsyncadd (%p4729_p2), [#allocation9], 4294966784 }
  0x6d   : > { %3969 = dma.done.wait (%p4729_p2), [#allocation12], 1024  }
  0x6e   : > { %3971 = vsyncadd (%p4729_p2), [#allocation12], 4294966272  ;;  %s389_s11 = sand.u32 1, %s3982_s10   ;;  %p392_p0 = scmp.lt.s32.totalorder %s3994_s13, 1 }
  0x6f   : > { %s4248_s27 = sshll.u32 %s389_s11, 3  ;;  %p394_p8 = scmp.lt.s32.totalorder %s3990_s12, 1 }
  0x70   : > { %s393_s18 = scalar_select %p392_p0, %s3994_s13, 1 }
  0x71   : > { %s395_s21 = scalar_select %p394_p8, %s3990_s12, 1 }
  0x72   : > { %s2955_s15 = sshll.u32 %s393_s18, 1  ;;  %s391_s26 = scalar_lea.vmem [#allocation14], %s4248_s27 }
  0x73   : > { %s397_s19 = sadd.s32 %s2955_s15, %s395_s21  ;;  %p2957_p10 = scmp.ne.s32.totalorder %s3990_s12, 0 }
  0x74   : > { %s2956_s30 = sshll.u32 %s397_s19, 3  ;;  %vm404_vm0 = vcmask (!%p2957_p10), 253952   ;;  %v4013_v0 = vmov (!%p2957_p10), 0.0  }
  0x75   : > { %s4256_s24 = scalar_lea.vmem %s4688_s0, %s2956_s30  ;;  %403 = sbr.rel (%p2957_p10) target bundleno = 124 (0x7c), region = 72  ;;  %405 = vst.msk [vmem:[#allocation2] sm:$0x1] (!%p2957_p10), %vm404_vm0, %v4013_v0  ;;  %406 = vst.msk [vmem:[#allocation3] sm:$0x1] (!%p2957_p10), %vm404_vm0, %v4013_v0 }
  0x76   : > { %407 = vst.msk [vmem:[#allocation4] sm:$0x1] (!%p2957_p10), %vm404_vm0, %v4013_v0  ;;  %408 = vst.msk [vmem:[#allocation5] sm:$0x1] (!%p2957_p10), %vm404_vm0, %v4013_v0 }
  0x7c PF: > { %v409_v1 = vld [vmem:[#allocation8] sm:$0xff]  ;;  %v410_v2 = vld [vmem:[#allocation8 + $0x8] sm:$0xff]  ;;  %v411_v3 = vld [vmem:[#allocation8 + $0x10] sm:$0xff]  ;;  %v4014_v4 = vmov 0.0|0.0   ;;  %vm4015_vm1 = vmmov 0   ;;  %v4016_v7 = vmov 0.0  }
  0x7d   : > { %3425 = vmatprep.subr.bf16.mxu0 %v4014_v4  ;;  %v3426_v5 = vpack.c.bf16 %v410_v2, %v409_v1  ;;  %v412_v6 = vld [vmem:[#allocation8 + $0x18] sm:$0xff]  ;;  %3147 = vmatprep.mubr.msk.f32.mxu0 %vm4015_vm1, %v4016_v7  ;;  %v496_v8 = vld [vmem:[#allocation11] sm:$0xff]  ;;  %v497_v9 = vld [vmem:[#allocation11 + $0x8] sm:$0xff]  ;;  %vm421_vm2 = vcmask 261120   ;;  %s4017_s14 = smov 64   ;;  %s4018_s25 = smov 32  }
  0x7e   : > { %3431 = vmatprep.subr.bf16.mxu1 %v4014_v4  ;;  %v498_v10 = vld [vmem:[#allocation11 + $0x10] sm:$0xff]  ;;  %v499_v11 = vld [vmem:[#allocation11 + $0x18] sm:$0xff]  ;;  %3158 = vmatprep.mubr.msk.f32.mxu1 %vm4015_vm1, %v4016_v7  ;;  %v3429_v12 = vpack.c.bf16 %v412_v6, %v411_v3  ;;  %v4266_v13 = vpack.c.bf16 %v497_v9, %v496_v8  ;;  %v509_v16 = vld [vmem:[#allocation2] sm:$0x1]  ;;  %vm805_vm3 = vcmask 253952   ;;  %s3005_s15 = sshll.u32 %s3994_s13, 1 }
  0x7f   : > { %3427 = vmatpush3.bf16.msra.mxu0 %v3426_v5  ;;  %v4270_v14 = vpack.c.bf16 %v499_v11, %v498_v10  ;;  %v413_v15 = vld [vmem:[%s4256_s24] sm:$0xff]  ;;  %v505_v38 = vld [vmem:[%s4693_s5 + $0x8] sm:$0xff]  ;;  %v506_v39 = vld [vmem:[%s4693_s5 + $0x10] sm:$0xff]  ;;  %s4019_s24 = smov 96   ;;  %s2834_s16 = sshll.u32 %s391_s26, 4  ;;  %vm2816_vm4 = vcmask 130048   ;;  %s4633_s16 = int_to_ptr.vmem [resolvable:$true] %s2834_s16 }
  0x80   : > { %3428 = vmatprep.subr.bf16.mxu0 %v4014_v4  ;;  %3433 = vmatpush3.bf16.msra.mxu1 %v4266_v13  ;;  %v2958_v17 = vld [vmem:[%s4691_s3] ss:$0 sm:$0xff]  ;;  %v2962_v26 = vld [vmem:[#allocation3] ss:$0 sm:$0xff]  ;;  %v507_v41 = vld [vmem:[%s4693_s5 + $0x18] sm:$0xff]  ;;  %s4730_s20 = sld [smem:[#allocation27_spill]] }
  0x81   : > { %3434 = vmatprep.subr.bf16.mxu1 %v4014_v4  ;;  %v504_v37 = vld [vmem:[%s4693_s5] sm:$0xff]  ;;  %v500_v42 = vld [vmem:[#allocation13] sm:$0xff]  ;;  %v503_v45 = vld [vmem:[#allocation13 + $0x18] sm:$0xff]  ;;  %v4307_v46 = vpack.c.bf16 %v507_v41, %v506_v39  ;;  %s3904_s13 = scalar_lea.vmem %s4633_s16, 128  ;;  %p4731_p1 = scmp.ne.s32.totalorder %s4719_s23, 0 }
  0x82   : > { %v4301_v40 = vpack.c.bf16 %v505_v38, %v504_v37  ;;  %v501_v43 = vld [vmem:[#allocation13 + $0x8] sm:$0xff]  ;;  %v502_v44 = vld [vmem:[#allocation13 + $0x10] sm:$0xff]  ;;  %p3905_p12 = scmp.ne.s32.totalorder %s4633_s16, %s3904_s13  ;;  %s4020_s29 = smov [#allocation14]  }
  0x83   : > { %3430 = vmatpush3.bf16.msra.mxu0 %v3429_v12  ;;  %v4309_v47 = vpack.c.bf16 %v501_v43, %v500_v42  ;;  %v4313_v48 = vpack.c.bf16 %v503_v45, %v502_v44  ;;  %v511_v49 = vld [vmem:[#allocation4] sm:$0x1]  ;;  %v4346_v56 = vld [vmem:[%s4694_s6] sm:$0x1]  ;;  %v2966_v3 = vld [vmem:[#allocation5] ss:$0 sm:$0xff] }
  0x84   : > { %3437 = vmatprep.subr.bf16.mxu0 %v4014_v4  ;;  %3436 = vmatpush3.bf16.msra.mxu1 %v4270_v14  ;;  %p3906_p4 = pnand %p3905_p12, %p4731_p1  ;;  %s3908_s9 = sshll.u32 %s4020_s29, 4  ;;  %s3909_s9 = int_to_ptr.vmem [resolvable:$false] %s3908_s9 }
  0x85   : > { %3443 = vmatprep.subr.bf16.mxu1 %v4014_v4  ;;  %s3910_s18 = scalar_lea.vmem %s3909_s9, 256  ;;  %p3911_p6 = scmp.lt.s32.totalorder %s4633_s16, %s3909_s9 }
  0x86   : > { %3148 = vmatmul.mubr.msk.f32.vlgmr.msra.gmra.mrb[0].mxu0 %vm421_vm2, %v413_v15  ;;  %p3907_p5 = pneg %p3906_p4  ;;  %p3912_p7 = scmp.lt.s32.totalorder %s3910_s18, %s3904_s13 }
  0x87   : > { %3169 = vmatprep.mubr.msk.f32.mxu0 %vm4015_vm1, %v4016_v7  ;;  %3159 = vmatmul.mubr.msk.f32.vlgmr.msra.gmra.mrb[0].mxu1 %vm421_vm2, %v509_v16 }
  0x88   : > { %3180 = vmatprep.mubr.msk.f32.mxu1 %vm4015_vm1, %v4016_v7  ;;  %3439 = vmatpush3.bf16.msra.mxu0 %v4301_v40  ;;  %p3913_p9 = por %p3912_p7, %p3911_p6 }
  0x89   : > { %3440 = vmatprep.subr.bf16.mxu0 %v4014_v4  ;;  %3445 = vmatpush3.bf16.msra.mxu1 %v4309_v47 }
  0x8a   : > { %3446 = vmatprep.subr.bf16.mxu1 %v4014_v4  ;;  %p3914_p11 = pnand %p3913_p9, %p3907_p5 }
  0x8c   : > { %3442 = vmatpush3.bf16.msra.mxu0 %v4307_v46 }
  0x8d   : > { %3449 = vmatprep.subr.bf16.mxu0 %v4014_v4  ;;  %3448 = vmatpush3.bf16.msra.mxu1 %v4313_v48 }
  0x8e   : > { %3455 = vmatprep.subr.bf16.mxu1 %v4014_v4 }
  0x8f   : > { %3170 = vmatmul.mubr.msk.f32.vlgmr.msra.gmra.mrb[2].mxu0 %vm421_vm2, %v511_v49 }
  0x90   : > { %3451 = vmatpush3.bf16.msra.mxu0 %v4266_v13  ;;  %3191 = vmatprep.mubr.msk.f32.mxu0 %vm4015_vm1, %v4016_v7 }
  0x91   : > { %3452 = vmatprep.subr.bf16.mxu0 %v4014_v4 }
  0x94   : > { %3454 = vmatpush3.bf16.msra.mxu0 %v4270_v14 }
  0x95   : > { %3461 = vmatprep.subr.bf16.mxu0 %v4014_v4 }
 0x159   : > { %v491_v18 = vpop.f32.mrb[0].mxu0 }
 0x15a   : > { %v492_v19 = vadd.f32 %v2958_v17, %v491_v18  ;;  %v3149_v20 = vpop.f32.mrb[1].mxu0  ;;  %v583_v21 = vpop.f32.mrb[0].mxu1 }
 0x15b   : > { %v3160_v22 = vpop.f32.mrb[1].mxu1 }
 0x15c   : > { %495 = vst [vmem:[#allocation6] sm:$0xff] %v492_v19 }
 0x162   : > { %v689_v53 = vpop.f32.mrb[2].mxu0 }
 0x163   : > { %v513_v23 = vld [vmem:[#allocation6] sm:$0x1]  ;;  %v3171_v54 = vpop.f32.mrb[3].mxu0  ;;  %v807_v58 = vld [vmem:[#allocation6 + $0x1] sm:$0x1] }
 0x164   : > { %v587_v24 = vadd.f32 %v583_v21, %v513_v23  ;;  %v1080_v42 = vld [vmem:[#allocation6 + $0x2] sm:$0x1] }
 0x166   : > { %3692 = vtanh.f32 %v587_v24  ;;  %v2961_v27 = vmul.f32 -1.442695, %v587_v24 }
 0x168   : > { %3694 = vpow2.f32 %v2961_v27 }
 0x170   : > { %v3693_v25 = vpop.eup %3692 }
 0x171   : > { %605 = vrot.lane.b32.xlu0 %v3693_v25, %s4017_s14 }
 0x172   : > { %v3695_v28 = vpop.eup %3694 }
 0x173   : > { %v591_v29 = vadd.f32 1.0, %v3695_v28 }
 0x175   : > { %600 = vrot.lane.b32.xlu0 %v2962_v26, %s4018_s25  ;;  %3696 = vrcp.f32 %v591_v29 }
 0x17f   : > { %v3697_v30 = vpop.eup %3696 }
 0x1e3   : > { %v606_v31 = vpop.permute.xlu0 %605 }
 0x1e4   : > { %v608_v32 = vmul.f32 %v3697_v30, %v606_v31 }
 0x1e6   : > { %610 = vrot.lane.b32.xlu1 %v608_v32, %s4018_s25 }
 0x1e7   : > { %v601_v33 = vpop.permute.xlu0 %600 }
 0x1e8   : > { %v603_v34 = vmul.f32 %v3697_v30, %v601_v33 }
 0x258   : > { %v611_v35 = vpop.permute.xlu1 %610 }
 0x259   : > { %v4289_v36 = vadd.f32 %v611_v35, %v603_v34 }
 0x25b   : > { %3698 = vtanh.f32 %v4289_v36 }
 0x265   : > { %v3699_v50 = vpop.eup %3698 }
 0x266   : > { %616 = vrot.lane.b32.xlu1 %v3699_v50, %s4017_s14 }
 0x2d8   : > { %v617_v51 = vpop.permute.xlu1 %616 }
 0x2d9   : > { %v619_v52 = vmul.f32 %v3697_v30, %v617_v51 }
 0x2db   : > { %694 = vrot.lane.b32.xlu0 %v619_v52, %s4018_s25 }
 0x34d   : > { %v695_v55 = vpop.permute.xlu0 %694 }
 0x34e   : > { %3181 = vmatmul.mubr.msk.f32.vlgmr.msra.gmra.mrb[2].mxu1 %vm421_vm2, %v695_v55  ;;  %3192 = vmatmul.mubr.msk.f32.vlgmr.msra.gmra.mrb[4].mxu0 %vm421_vm2, %v695_v55 }
 0x34f   : > { %3463 = vmatpush3.bf16.msra.mxu0 %v4309_v47  ;;  %3457 = vmatpush3.bf16.msra.mxu1 %v4301_v40 }
 0x350   : > { %3464 = vmatprep.subr.bf16.mxu0 %v4014_v4  ;;  %3458 = vmatprep.subr.bf16.mxu1 %v4014_v4 }
 0x351   : > { %3213 = vmatprep.mubr.msk.f32.mxu0 %vm4015_vm1, %v4016_v7  ;;  %3202 = vmatprep.mubr.msk.f32.mxu1 %vm4015_vm1, %v4016_v7 }
 0x353   : > { %3466 = vmatpush3.bf16.msra.mxu0 %v4313_v48  ;;  %3460 = vmatpush3.bf16.msra.mxu1 %v4307_v46 }
 0x354   : > { %3467 = vmatprep.subr.bf16.mxu1 %v4014_v4  ;;  %3473 = vmatprep.subr.bf16.mxu0 %v4014_v4 }
 0x421   : > { %v764_v57 = vpop.f32.mrb[2].mxu1  ;;  %v874_v59 = vpop.f32.mrb[4].mxu0 }
 0x422   : > { %v765_v60 = vadd.f32 %v764_v57, %v689_v53  ;;  %v878_v61 = vadd.f32 %v874_v59, %v807_v58  ;;  %v3182_v62 = vpop.f32.mrb[3].mxu1  ;;  %v3193_v63 = vpop.f32.mrb[5].mxu0 }
 0x424   : > { %v768_v0 = vadd.f32 %v765_v60, %v4346_v56  ;;  %3700 = vtanh.f32 %v878_v61  ;;  %v2968_v5 = vmul.f32 -1.442695, %v878_v61 }
 0x426   : > { %3702 = vtanh.f32 %v768_v0  ;;  %v2965_v6 = vmul.f32 -1.442695, %v768_v0 }
 0x427   : > { %3704 = vpow2.f32 %v2968_v5 }
 0x428   : > { %3706 = vpow2.f32 %v2965_v6 }
 0x42e   : > { %v3701_v1 = vpop.eup %3700 }
 0x42f   : > { %888 = vrot.lane.b32.xlu0 %v3701_v1, %s4017_s14 }
 0x430   : > { %v3703_v2 = vpop.eup %3702 }
 0x431   : > { %786 = vrot.lane.b32.xlu1 %v3703_v2, %s4017_s14  ;;  %v3705_v8 = vpop.eup %3704 }
 0x432   : > { %v3707_v9 = vpop.eup %3706  ;;  %v882_v10 = vadd.f32 1.0, %v3705_v8 }
 0x433   : > { %v772_v11 = vadd.f32 1.0, %v3707_v9 }
 0x434   : > { %3708 = vrcp.f32 %v882_v10 }
 0x435   : > { %781 = vrot.lane.b32.xlu1 %v2966_v3, %s4018_s25  ;;  %3710 = vrcp.f32 %v772_v11 }
 0x43e   : > { %v3709_v12 = vpop.eup %3708 }
 0x43f   : > { %v3711_v17 = vpop.eup %3710  ;;  %v886_v21 = vmul.f32 %v3709_v12, %v4289_v36 }
 0x4a1   : > { %v889_v15 = vpop.permute.xlu0 %888 }
 0x4a2   : > { %v891_v16 = vmul.f32 %v3709_v12, %v889_v15 }
 0x4a3   : > { %v787_v18 = vpop.permute.xlu1 %786 }
 0x4a4   : > { %v789_v19 = vmul.f32 %v3711_v17, %v787_v18  ;;  %893 = vrot.lane.b32.xlu1 %v891_v16, %s4018_s25 }
 0x4a6   : > { %791 = vrot.lane.b32.xlu0 %v789_v19, %s4018_s25 }
 0x4a7   : > { %v782_v20 = vpop.permute.xlu1 %781 }
 0x4a8   : > { %v784_v23 = vmul.f32 %v3711_v17, %v782_v20 }
 0x516   : > { %v894_v22 = vpop.permute.xlu1 %893 }
 0x517   : > { %v4355_v24 = vadd.f32 %v894_v22, %v886_v21 }
 0x518   : > { %v792_v25 = vpop.permute.xlu0 %791 }
 0x519   : > { %3712 = vtanh.f32 %v4355_v24  ;;  %v4358_v26 = vadd.f32 %v792_v25, %v784_v23  ;;  %v1353_v23 = vld [vmem:[#allocation6 + $0x3] sm:$0x1] }
 0x51b   : > { %3714 = vtanh.f32 %v4358_v26 }
 0x523   : > { %v3713_v27 = vpop.eup %3712 }
 0x524   : > { %899 = vrot.lane.b32.xlu1 %v3713_v27, %s4017_s14 }
 0x525   : > { %v3715_v28 = vpop.eup %3714 }
 0x526   : > { %797 = vrot.lane.b32.xlu0 %v3715_v28, %s4017_s14 }
 0x596   : > { %v900_v29 = vpop.permute.xlu1 %899 }
 0x597   : > { %v902_v30 = vmul.f32 %v3709_v12, %v900_v29 }
 0x598   : > { %v798_v31 = vpop.permute.xlu0 %797 }
 0x599   : > { %v800_v32 = vmul.f32 %v3711_v17, %v798_v31  ;;  %976 = vrot.lane.b32.xlu1 %v902_v30, %s4018_s25 }
 0x59b   : > { %802 = vrot.lane.b32.xlu0 %v800_v32, %s4018_s25 }
 0x60b   : > { %v977_v33 = vpop.permute.xlu1 %976 }
 0x60c   : > { %3214 = vmatmul.mubr.msk.f32.vlgmr.msra.gmra.mrb[6].mxu0 %vm421_vm2, %v977_v33 }
 0x60d   : > { %v803_v34 = vpop.permute.xlu0 %802  ;;  %3475 = vmatpush3.bf16.msra.mxu0 %v4301_v40  ;;  %3235 = vmatprep.mubr.msk.f32.mxu0 %vm4015_vm1, %v4016_v7 }
 0x60e   : > { %806 = vst.msk [vmem:[#allocation7] sm:$0x1] %vm805_vm3, %v803_v34  ;;  %3203 = vmatmul.mubr.msk.f32.vlgmr.msra.gmra.mrb[4].mxu1 %vm421_vm2, %v803_v34  ;;  %3476 = vmatprep.subr.bf16.mxu0 %v4014_v4 }
 0x60f   : > { %3469 = vmatpush3.bf16.msra.mxu1 %v4266_v13  ;;  %3224 = vmatprep.mubr.msk.f32.mxu1 %vm4015_vm1, %v4016_v7 }
 0x610   : > { %3470 = vmatprep.subr.bf16.mxu1 %v4014_v4 }
 0x611   : > { %3478 = vmatpush3.bf16.msra.mxu0 %v4307_v46 }
 0x612   : > { %3485 = vmatprep.subr.bf16.mxu0 %v4014_v4 }
 0x613   : > { %3472 = vmatpush3.bf16.msra.mxu1 %v4270_v14 }
 0x614   : > { %3479 = vmatprep.subr.bf16.mxu1 %v4014_v4 }
 0x616   : > { %3225 = vmatmul.mubr.msk.f32.vlgmr.msra.gmra.mrb[6].mxu1 %vm421_vm2, %v977_v33 }
 0x617   : > { %3481 = vmatpush3.bf16.msra.mxu1 %v4309_v47  ;;  %3246 = vmatprep.mubr.msk.f32.mxu1 %vm4015_vm1, %v4016_v7 }
 0x618   : > { %3482 = vmatprep.subr.bf16.mxu1 %v4014_v4 }
 0x61b   : > { %3484 = vmatpush3.bf16.msra.mxu1 %v4313_v48 }
 0x61c   : > { %3491 = vmatprep.subr.bf16.mxu1 %v4014_v4 }
 0x6df   : > { %v1046_v35 = vpop.f32.mrb[6].mxu0 }
 0x6e0   : > { %v3215_v36 = vpop.f32.mrb[7].mxu0 }
 0x6e1   : > { %v971_v37 = vpop.f32.mrb[4].mxu1 }
 0x6e2   : > { %v1047_v38 = vadd.f32 %v1046_v35, %v971_v37  ;;  %v3204_v39 = vpop.f32.mrb[5].mxu1 }
 0x6e4   : > { %v1050_v41 = vadd.f32 %v1047_v38, %v4346_v56 }
 0x6e6   : > { %3716 = vtanh.f32 %v1050_v41  ;;  %v2971_v51 = vmul.f32 -1.442695, %v1050_v41 }
 0x6e9   : > { %v1147_v43 = vpop.f32.mrb[6].mxu1 }
 0x6ea   : > { %v1151_v44 = vadd.f32 %v1147_v43, %v1080_v42  ;;  %v3226_v45 = vpop.f32.mrb[7].mxu1 }
 0x6ec   : > { %3718 = vtanh.f32 %v1151_v44  ;;  %v2973_v52 = vmul.f32 -1.442695, %v1151_v44 }
 0x6ed   : > { %3720 = vpow2.f32 %v2971_v51 }
 0x6ee   : > { %3722 = vpow2.f32 %v2973_v52 }
 0x6f0   : > { %v3717_v49 = vpop.eup %3716 }
 0x6f1   : > { %1060 = vrot.lane.b32.xlu0 %v3717_v49, %s4017_s14 }
 0x6f6   : > { %v3719_v50 = vpop.eup %3718 }
 0x6f7   : > { %1161 = vrot.lane.b32.xlu1 %v3719_v50, %s4017_s14  ;;  %v3721_v53 = vpop.eup %3720 }
 0x6f8   : > { %v1054_v54 = vadd.f32 1.0, %v3721_v53  ;;  %v3723_v55 = vpop.eup %3722 }
 0x6f9   : > { %v1155_v57 = vadd.f32 1.0, %v3723_v55 }
 0x6fa   : > { %3724 = vrcp.f32 %v1054_v54 }
 0x6fb   : > { %3726 = vrcp.f32 %v1155_v57 }
 0x704   : > { %v3725_v58 = vpop.eup %3724 }
 0x705   : > { %v3727_v61 = vpop.eup %3726  ;;  %v1058_v0 = vmul.f32 %v3725_v58, %v4358_v26 }
 0x706   : > { %v1159_v3 = vmul.f32 %v3727_v61, %v4355_v24 }
 0x763   : > { %v1061_v59 = vpop.permute.xlu0 %1060 }
 0x764   : > { %v1063_v60 = vmul.f32 %v3725_v58, %v1061_v59 }
 0x766   : > { %1065 = vrot.lane.b32.xlu0 %v1063_v60, %s4018_s25 }
 0x769   : > { %v1162_v62 = vpop.permute.xlu1 %1161 }
 0x76a   : > { %v1164_v63 = vmul.f32 %v3727_v61, %v1162_v62 }
 0x76c   : > { %1166 = vrot.lane.b32.xlu1 %v1164_v63, %s4018_s25 }
 0x7d8   : > { %v1066_v1 = vpop.permute.xlu0 %1065 }
 0x7d9   : > { %v4393_v2 = vadd.f32 %v1066_v1, %v1058_v0 }
 0x7db   : > { %3728 = vtanh.f32 %v4393_v2 }
 0x7de   : > { %v1167_v5 = vpop.permute.xlu1 %1166 }
 0x7df   : > { %v4397_v6 = vadd.f32 %v1167_v5, %v1159_v3  ;;  %v1626_v3 = vld [vmem:[#allocation6 + $0x4] sm:$0x1] }
 0x7e1   : > { %3730 = vtanh.f32 %v4397_v6 }
 0x7e5   : > { %v3729_v8 = vpop.eup %3728 }
 0x7e6   : > { %1071 = vrot.lane.b32.xlu0 %v3729_v8, %s4017_s14 }
 0x7eb   : > { %v3731_v9 = vpop.eup %3730 }
 0x7ec   : > { %1172 = vrot.lane.b32.xlu1 %v3731_v9, %s4017_s14 }
 0x858   : > { %v1072_v10 = vpop.permute.xlu0 %1071 }
 0x859   : > { %v1074_v11 = vmul.f32 %v3725_v58, %v1072_v10 }
 0x85b   : > { %1076 = vrot.lane.b32.xlu0 %v1074_v11, %s4018_s25 }
 0x85e   : > { %v1173_v12 = vpop.permute.xlu1 %1172 }
 0x85f   : > { %v1175_v15 = vmul.f32 %v3727_v61, %v1173_v12 }
 0x861   : > { %1249 = vrot.lane.b32.xlu1 %v1175_v15, %s4018_s25 }
 0x8cd   : > { %v1077_v16 = vpop.permute.xlu0 %1076 }
 0x8ce   : > { %1079 = vst.msk [vmem:[#allocation7 + $0x1] sm:$0x1] %vm805_vm3, %v1077_v16  ;;  %3236 = vmatmul.mubr.msk.f32.vlgmr.msra.gmra.mrb[8].mxu0 %vm421_vm2, %v1077_v16 }
 0x8cf   : > { %3487 = vmatpush3.bf16.msra.mxu0 %v4266_v13  ;;  %3257 = vmatprep.mubr.msk.f32.mxu0 %vm4015_vm1, %v4016_v7 }
 0x8d0   : > { %3488 = vmatprep.subr.bf16.mxu0 %v4014_v4 }
 0x8d3   : > { %v1250_v17 = vpop.permute.xlu1 %1249  ;;  %3490 = vmatpush3.bf16.msra.mxu0 %v4270_v14 }
 0x8d4   : > { %3247 = vmatmul.mubr.msk.f32.vlgmr.msra.gmra.mrb[8].mxu1 %vm421_vm2, %v1250_v17  ;;  %3497 = vmatprep.subr.bf16.mxu0 %v4014_v4 }
 0x8d5   : > { %3493 = vmatpush3.bf16.msra.mxu1 %v4301_v40  ;;  %3268 = vmatprep.mubr.msk.f32.mxu1 %vm4015_vm1, %v4016_v7 }
 0x8d6   : > { %3258 = vmatmul.mubr.msk.f32.vlgmr.msra.gmra.mrb[10].mxu0 %vm421_vm2, %v1250_v17  ;;  %3494 = vmatprep.subr.bf16.mxu1 %v4014_v4 }
 0x8d7   : > { %3499 = vmatpush3.bf16.msra.mxu0 %v4309_v47  ;;  %3279 = vmatprep.mubr.msk.f32.mxu0 %vm4015_vm1, %v4016_v7 }
 0x8d8   : > { %3500 = vmatprep.subr.bf16.mxu0 %v4014_v4 }
 0x8d9   : > { %3496 = vmatpush3.bf16.msra.mxu1 %v4307_v46 }
 0x8da   : > { %3503 = vmatprep.subr.bf16.mxu1 %v4014_v4 }
 0x8db   : > { %3502 = vmatpush3.bf16.msra.mxu0 %v4313_v48 }
 0x8dc   : > { %3509 = vmatprep.subr.bf16.mxu0 %v4014_v4 }
 0x9a1   : > { %v1244_v18 = vpop.f32.mrb[8].mxu0 }
 0x9a2   : > { %v3237_v19 = vpop.f32.mrb[9].mxu0 }
 0x9a7   : > { %v1319_v20 = vpop.f32.mrb[8].mxu1 }
 0x9a8   : > { %v1320_v21 = vadd.f32 %v1319_v20, %v1244_v18  ;;  %v3248_v22 = vpop.f32.mrb[9].mxu1 }
 0x9a9   : > { %v1420_v24 = vpop.f32.mrb[10].mxu0 }
 0x9aa   : > { %v1323_v25 = vadd.f32 %v1320_v21, %v4346_v56  ;;  %v1424_v26 = vadd.f32 %v1420_v24, %v1353_v23  ;;  %v3259_v27 = vpop.f32.mrb[11].mxu0 }
 0x9ac   : > { %3732 = vtanh.f32 %v1323_v25  ;;  %v2976_v30 = vmul.f32 -1.442695, %v1323_v25  ;;  %v2978_v31 = vmul.f32 -1.442695, %v1424_v26 }
 0x9ad   : > { %3734 = vtanh.f32 %v1424_v26 }
 0x9ae   : > { %3736 = vpow2.f32 %v2976_v30 }
 0x9af   : > { %3738 = vpow2.f32 %v2978_v31 }
 0x9b6   : > { %v3733_v28 = vpop.eup %3732 }
 0x9b7   : > { %v3735_v29 = vpop.eup %3734  ;;  %1333 = vrot.lane.b32.xlu0 %v3733_v28, %s4017_s14 }
 0x9b8   : > { %1434 = vrot.lane.b32.xlu1 %v3735_v29, %s4017_s14  ;;  %v3737_v32 = vpop.eup %3736 }
 0x9b9   : > { %v3739_v33 = vpop.eup %3738  ;;  %v1327_v34 = vadd.f32 1.0, %v3737_v32 }
 0x9ba   : > { %v1428_v35 = vadd.f32 1.0, %v3739_v33 }
 0x9bb   : > { %3740 = vrcp.f32 %v1327_v34 }
 0x9bc   : > { %3742 = vrcp.f32 %v1428_v35 }
 0x9c5   : > { %v3741_v36 = vpop.eup %3740 }
 0x9c6   : > { %v3743_v38 = vpop.eup %3742  ;;  %v1331_v43 = vmul.f32 %v3741_v36, %v4393_v2 }
 0x9c7   : > { %v1432_v45 = vmul.f32 %v3743_v38, %v4397_v6 }
 0xa29   : > { %v1334_v37 = vpop.permute.xlu0 %1333 }
 0xa2a   : > { %v1336_v39 = vmul.f32 %v3741_v36, %v1334_v37  ;;  %v1435_v41 = vpop.permute.xlu1 %1434 }
 0xa2b   : > { %v1437_v42 = vmul.f32 %v3743_v38, %v1435_v41 }
 0xa2c   : > { %1338 = vrot.lane.b32.xlu0 %v1336_v39, %s4018_s25 }
 0xa2d   : > { %1439 = vrot.lane.b32.xlu1 %v1437_v42, %s4018_s25 }
 0xa9e   : > { %v1339_v44 = vpop.permute.xlu0 %1338 }
 0xa9f   : > { %v4433_v49 = vadd.f32 %v1339_v44, %v1331_v43  ;;  %v1440_v50 = vpop.permute.xlu1 %1439 }
 0xaa0   : > { %v4435_v51 = vadd.f32 %v1440_v50, %v1432_v45 }
 0xaa1   : > { %3744 = vtanh.f32 %v4433_v49 }
 0xaa2   : > { %3746 = vtanh.f32 %v4435_v51 }
 0xaab   : > { %v3745_v52 = vpop.eup %3744 }
 0xaac   : > { %v3747_v53 = vpop.eup %3746  ;;  %1344 = vrot.lane.b32.xlu0 %v3745_v52, %s4017_s14 }
 0xaad   : > { %1445 = vrot.lane.b32.xlu1 %v3747_v53, %s4017_s14 }
 0xb1e   : > { %v1345_v54 = vpop.permute.xlu0 %1344 }
 0xb1f   : > { %v1347_v55 = vmul.f32 %v3741_v36, %v1345_v54  ;;  %v1446_v57 = vpop.permute.xlu1 %1445 }
 0xb20   : > { %v1448_v58 = vmul.f32 %v3743_v38, %v1446_v57 }
 0xb21   : > { %1349 = vrot.lane.b32.xlu0 %v1347_v55, %s4018_s25 }
 0xb22   : > { %1522 = vrot.lane.b32.xlu1 %v1448_v58, %s4018_s25 }
 0xb93   : > { %v1350_v59 = vpop.permute.xlu0 %1349 }
 0xb94   : > { %1352 = vst.msk [vmem:[#allocation7 + $0x2] sm:$0x1] %vm805_vm3, %v1350_v59  ;;  %v1523_v60 = vpop.permute.xlu1 %1522  ;;  %3269 = vmatmul.mubr.msk.f32.vlgmr.msra.gmra.mrb[10].mxu1 %vm421_vm2, %v1350_v59 }
 0xb95   : > { %3280 = vmatmul.mubr.msk.f32.vlgmr.msra.gmra.mrb[12].mxu0 %vm421_vm2, %v1523_v60  ;;  %3505 = vmatpush3.bf16.msra.mxu1 %v4266_v13 }
 0xb96   : > { %3506 = vmatprep.subr.bf16.mxu1 %v4014_v4  ;;  %3290 = vmatprep.mubr.msk.f32.mxu1 %vm4015_vm1, %v4016_v7 }
 0xb97   : > { %3511 = vmatpush3.bf16.msra.mxu0 %v4301_v40  ;;  %3301 = vmatprep.mubr.msk.f32.mxu0 %vm4015_vm1, %v4016_v7 }
 0xb98   : > { %3512 = vmatprep.subr.bf16.mxu0 %v4014_v4 }
 0xb99   : > { %3508 = vmatpush3.bf16.msra.mxu1 %v4270_v14 }
 0xb9a   : > { %3515 = vmatprep.subr.bf16.mxu1 %v4014_v4 }
 0xb9b   : > { %3514 = vmatpush3.bf16.msra.mxu0 %v4307_v46 }
 0xb9c   : > { %3291 = vmatmul.mubr.msk.f32.vlgmr.msra.gmra.mrb[12].mxu1 %vm421_vm2, %v1523_v60  ;;  %3521 = vmatprep.subr.bf16.mxu0 %v4014_v4 }
 0xb9d   : > { %3517 = vmatpush3.bf16.msra.mxu1 %v4309_v47  ;;  %3312 = vmatprep.mubr.msk.f32.mxu1 %vm4015_vm1, %v4016_v7 }
 0xb9e   : > { %3518 = vmatprep.subr.bf16.mxu1 %v4014_v4 }
 0xba1   : > { %3520 = vmatpush3.bf16.msra.mxu1 %v4313_v48 }
 0xba2   : > { %3527 = vmatprep.subr.bf16.mxu1 %v4014_v4 }
 0xc67   : > { %v1517_v61 = vpop.f32.mrb[10].mxu1 }
 0xc68   : > { %v1592_v62 = vpop.f32.mrb[12].mxu0  ;;  %v3270_v63 = vpop.f32.mrb[11].mxu1 }
 0xc69   : > { %v1593_v0 = vadd.f32 %v1592_v62, %v1517_v61  ;;  %v3281_v1 = vpop.f32.mrb[13].mxu0 }
 0xc6b   : > { %v1596_v2 = vadd.f32 %v1593_v0, %v4346_v56 }
 0xc6d   : > { %3748 = vtanh.f32 %v1596_v2  ;;  %v2981_v11 = vmul.f32 -1.442695, %v1596_v2 }
 0xc6f   : > { %v1693_v5 = vpop.f32.mrb[12].mxu1 }
 0xc70   : > { %v1697_v6 = vadd.f32 %v1693_v5, %v1626_v3  ;;  %v3292_v8 = vpop.f32.mrb[13].mxu1 }
 0xc72   : > { %3750 = vtanh.f32 %v1697_v6  ;;  %v2983_v12 = vmul.f32 -1.442695, %v1697_v6 }
 0xc73   : > { %3752 = vpow2.f32 %v2981_v11 }
 0xc74   : > { %3754 = vpow2.f32 %v2983_v12 }
 0xc77   : > { %v3749_v9 = vpop.eup %3748 }
 0xc78   : > { %1606 = vrot.lane.b32.xlu0 %v3749_v9, %s4017_s14 }
 0xc7c   : > { %v3751_v10 = vpop.eup %3750 }
 0xc7d   : > { %1707 = vrot.lane.b32.xlu1 %v3751_v10, %s4017_s14  ;;  %v3753_v15 = vpop.eup %3752 }
 0xc7e   : > { %v1600_v16 = vadd.f32 1.0, %v3753_v15  ;;  %v3755_v17 = vpop.eup %3754 }
 0xc7f   : > { %v1701_v18 = vadd.f32 1.0, %v3755_v17 }
 0xc80   : > { %3756 = vrcp.f32 %v1600_v16 }
 0xc81   : > { %3758 = vrcp.f32 %v1701_v18 }
 0xc8a   : > { %v3757_v19 = vpop.eup %3756 }
 0xc8b   : > { %v3759_v22 = vpop.eup %3758  ;;  %v1604_v25 = vmul.f32 %v3757_v19, %v4433_v49  ;;  %v1899_v49 = vld [vmem:[#allocation6 + $0x5] sm:$0x1] }
 0xc8c   : > { %v1705_v28 = vmul.f32 %v3759_v22, %v4435_v51 }
 0xcea   : > { %v1607_v20 = vpop.permute.xlu0 %1606 }
 0xceb   : > { %v1609_v21 = vmul.f32 %v3757_v19, %v1607_v20 }
 0xced   : > { %1611 = vrot.lane.b32.xlu0 %v1609_v21, %s4018_s25 }
 0xcef   : > { %v1708_v23 = vpop.permute.xlu1 %1707 }
 0xcf0   : > { %v1710_v24 = vmul.f32 %v3759_v22, %v1708_v23 }
 0xcf2   : > { %1712 = vrot.lane.b32.xlu1 %v1710_v24, %s4018_s25 }
 0xd5f   : > { %v1612_v26 = vpop.permute.xlu0 %1611 }
 0xd60   : > { %v4471_v27 = vadd.f32 %v1612_v26, %v1604_v25 }
 0xd62   : > { %3760 = vtanh.f32 %v4471_v27 }
 0xd64   : > { %v1713_v29 = vpop.permute.xlu1 %1712 }
 0xd65   : > { %v4475_v30 = vadd.f32 %v1713_v29, %v1705_v28  ;;  %v2172_v28 = vld [vmem:[#allocation6 + $0x6] sm:$0x1] }
 0xd67   : > { %3762 = vtanh.f32 %v4475_v30 }
 0xd6c   : > { %v3761_v31 = vpop.eup %3760 }
 0xd6d   : > { %1617 = vrot.lane.b32.xlu0 %v3761_v31, %s4017_s14 }
 0xd71   : > { %v3763_v32 = vpop.eup %3762 }
 0xd72   : > { %1718 = vrot.lane.b32.xlu1 %v3763_v32, %s4017_s14 }
 0xddf   : > { %v1618_v33 = vpop.permute.xlu0 %1617 }
 0xde0   : > { %v1620_v34 = vmul.f32 %v3757_v19, %v1618_v33 }
 0xde2   : > { %1622 = vrot.lane.b32.xlu0 %v1620_v34, %s4018_s25 }
 0xde4   : > { %v1719_v35 = vpop.permute.xlu1 %1718 }
 0xde5   : > { %v1721_v36 = vmul.f32 %v3759_v22, %v1719_v35 }
 0xde7   : > { %1795 = vrot.lane.b32.xlu1 %v1721_v36, %s4018_s25 }
 0xe54   : > { %v1623_v37 = vpop.permute.xlu0 %1622 }
 0xe55   : > { %1625 = vst.msk [vmem:[#allocation7 + $0x3] sm:$0x1] %vm805_vm3, %v1623_v37  ;;  %3302 = vmatmul.mubr.msk.f32.vlgmr.msra.gmra.mrb[14].mxu0 %vm421_vm2, %v1623_v37 }
 0xe56   : > { %3523 = vmatpush3.bf16.msra.mxu0 %v4266_v13  ;;  %3323 = vmatprep.mubr.msk.f32.mxu0 %vm4015_vm1, %v4016_v7 }
 0xe57   : > { %3524 = vmatprep.subr.bf16.mxu0 %v4014_v4 }
 0xe59   : > { %v1796_v38 = vpop.permute.xlu1 %1795 }
 0xe5a   : > { %3526 = vmatpush3.bf16.msra.mxu0 %v4270_v14  ;;  %3313 = vmatmul.mubr.msk.f32.vlgmr.msra.gmra.mrb[14].mxu1 %vm421_vm2, %v1796_v38 }
 0xe5b   : > { %3529 = vmatpush3.bf16.msra.mxu1 %v4301_v40  ;;  %3533 = vmatprep.subr.bf16.mxu0 %v4014_v4 }
 0xe5c   : > { %3530 = vmatprep.subr.bf16.mxu1 %v4014_v4  ;;  %3334 = vmatprep.mubr.msk.f32.mxu1 %vm4015_vm1, %v4016_v7 }
 0xe5d   : > { %3324 = vmatmul.mubr.msk.f32.vlgmr.msra.gmra.mrb[16].mxu0 %vm421_vm2, %v1796_v38 }
 0xe5e   : > { %3535 = vmatpush3.bf16.msra.mxu0 %v4309_v47  ;;  %3345 = vmatprep.mubr.msk.f32.mxu0 %vm4015_vm1, %v4016_v7 }
 0xe5f   : > { %3532 = vmatpush3.bf16.msra.mxu1 %v4307_v46  ;;  %3536 = vmatprep.subr.bf16.mxu0 %v4014_v4 }
 0xe60   : > { %3539 = vmatprep.subr.bf16.mxu1 %v4014_v4 }
 0xe62   : > { %3538 = vmatpush3.bf16.msra.mxu0 %v4313_v48 }
 0xe63   : > { %3545 = vmatprep.subr.bf16.mxu0 %v4014_v4 }
 0xf28   : > { %v1790_v39 = vpop.f32.mrb[14].mxu0 }
 0xf29   : > { %v3303_v41 = vpop.f32.mrb[15].mxu0 }
 0xf2d   : > { %v1865_v42 = vpop.f32.mrb[14].mxu1 }
 0xf2e   : > { %v1866_v43 = vadd.f32 %v1865_v42, %v1790_v39  ;;  %v3314_v44 = vpop.f32.mrb[15].mxu1 }
 0xf30   : > { %v1869_v45 = vadd.f32 %v1866_v43, %v4346_v56  ;;  %v1966_v50 = vpop.f32.mrb[16].mxu0 }
 0xf31   : > { %v1970_v51 = vadd.f32 %v1966_v50, %v1899_v49  ;;  %v3325_v52 = vpop.f32.mrb[17].mxu0 }
 0xf32   : > { %3764 = vtanh.f32 %v1869_v45  ;;  %v2986_v55 = vmul.f32 -1.442695, %v1869_v45 }
 0xf33   : > { %3766 = vtanh.f32 %v1970_v51  ;;  %v2988_v57 = vmul.f32 -1.442695, %v1970_v51 }
 0xf34   : > { %3768 = vpow2.f32 %v2986_v55 }
 0xf35   : > { %3770 = vpow2.f32 %v2988_v57 }
 0xf3c   : > { %v3765_v53 = vpop.eup %3764 }
 0xf3d   : > { %v3767_v54 = vpop.eup %3766  ;;  %1879 = vrot.lane.b32.xlu0 %v3765_v53, %s4017_s14 }
 0xf3e   : > { %1980 = vrot.lane.b32.xlu1 %v3767_v54, %s4017_s14  ;;  %v3769_v58 = vpop.eup %3768 }
 0xf3f   : > { %v3771_v59 = vpop.eup %3770  ;;  %v1873_v60 = vadd.f32 1.0, %v3769_v58 }
 0xf40   : > { %v1974_v61 = vadd.f32 1.0, %v3771_v59 }
 0xf41   : > { %3772 = vrcp.f32 %v1873_v60 }
 0xf42   : > { %3774 = vrcp.f32 %v1974_v61 }
 0xf4b   : > { %v3773_v62 = vpop.eup %3772 }
 0xf4c   : > { %v3775_v0 = vpop.eup %3774  ;;  %v1877_v5 = vmul.f32 %v3773_v62, %v4471_v27 }
 0xf4d   : > { %v1978_v8 = vmul.f32 %v3775_v0, %v4475_v30 }
 0xfaf   : > { %v1880_v63 = vpop.permute.xlu0 %1879 }
 0xfb0   : > { %v1882_v1 = vmul.f32 %v3773_v62, %v1880_v63  ;;  %v1981_v2 = vpop.permute.xlu1 %1980 }
 0xfb1   : > { %v1983_v3 = vmul.f32 %v3775_v0, %v1981_v2 }
 0xfb2   : > { %1884 = vrot.lane.b32.xlu0 %v1882_v1, %s4018_s25 }
 0xfb3   : > { %1985 = vrot.lane.b32.xlu1 %v1983_v3, %s4018_s25 }
0x1024   : > { %v1885_v6 = vpop.permute.xlu0 %1884 }
0x1025   : > { %v4511_v9 = vadd.f32 %v1885_v6, %v1877_v5  ;;  %v1986_v10 = vpop.permute.xlu1 %1985  ;;  %v2445_v5 = vld [vmem:[#allocation6 + $0x7] sm:$0x1] }
0x1026   : > { %v4513_v11 = vadd.f32 %v1986_v10, %v1978_v8 }
0x1027   : > { %3776 = vtanh.f32 %v4511_v9 }
0x1028   : > { %3778 = vtanh.f32 %v4513_v11 }
0x1031   : > { %v3777_v12 = vpop.eup %3776 }
0x1032   : > { %v3779_v15 = vpop.eup %3778  ;;  %1890 = vrot.lane.b32.xlu0 %v3777_v12, %s4017_s14 }
0x1033   : > { %1991 = vrot.lane.b32.xlu1 %v3779_v15, %s4017_s14 }
0x10a4   : > { %v1891_v16 = vpop.permute.xlu0 %1890 }
0x10a5   : > { %v1893_v17 = vmul.f32 %v3773_v62, %v1891_v16  ;;  %v1992_v18 = vpop.permute.xlu1 %1991 }
0x10a6   : > { %v1994_v19 = vmul.f32 %v3775_v0, %v1992_v18 }
0x10a7   : > { %1895 = vrot.lane.b32.xlu0 %v1893_v17, %s4018_s25 }
0x10a8   : > { %2068 = vrot.lane.b32.xlu1 %v1994_v19, %s4018_s25 }
0x1119   : > { %v1896_v20 = vpop.permute.xlu0 %1895 }
0x111a   : > { %1898 = vst.msk [vmem:[#allocation7 + $0x4] sm:$0x1] %vm805_vm3, %v1896_v20  ;;  %v2069_v21 = vpop.permute.xlu1 %2068  ;;  %3335 = vmatmul.mubr.msk.f32.vlgmr.msra.gmra.mrb[16].mxu1 %vm421_vm2, %v1896_v20 }
0x111b   : > { %3346 = vmatmul.mubr.msk.f32.vlgmr.msra.gmra.mrb[18].mxu0 %vm421_vm2, %v2069_v21  ;;  %3541 = vmatpush3.bf16.msra.mxu1 %v4266_v13 }
0x111c   : > { %3542 = vmatprep.subr.bf16.mxu1 %v4014_v4  ;;  %3356 = vmatprep.mubr.msk.f32.mxu1 %vm4015_vm1, %v4016_v7 }
0x111d   : > { %3547 = vmatpush3.bf16.msra.mxu0 %v4301_v40  ;;  %3367 = vmatprep.mubr.msk.f32.mxu0 %vm4015_vm1, %v4016_v7 }
0x111e   : > { %3548 = vmatprep.subr.bf16.mxu0 %v4014_v4 }
0x111f   : > { %3544 = vmatpush3.bf16.msra.mxu1 %v4270_v14 }
0x1120   : > { %3551 = vmatprep.subr.bf16.mxu1 %v4014_v4 }
0x1121   : > { %3550 = vmatpush3.bf16.msra.mxu0 %v4307_v46 }
0x1122   : > { %3357 = vmatmul.mubr.msk.f32.vlgmr.msra.gmra.mrb[18].mxu1 %vm421_vm2, %v2069_v21  ;;  %3557 = vmatprep.subr.bf16.mxu0 %v4014_v4 }
0x1123   : > { %3553 = vmatpush3.bf16.msra.mxu1 %v4309_v47  ;;  %3378 = vmatprep.mubr.msk.f32.mxu1 %vm4015_vm1, %v4016_v7 }
0x1124   : > { %3554 = vmatprep.subr.bf16.mxu1 %v4014_v4 }
0x1127   : > { %3556 = vmatpush3.bf16.msra.mxu1 %v4313_v48 }
0x1128   : > { %3563 = vmatprep.subr.bf16.mxu1 %v4014_v4 }
0x11ed   : > { %v2063_v22 = vpop.f32.mrb[16].mxu1 }
0x11ee   : > { %v2138_v23 = vpop.f32.mrb[18].mxu0  ;;  %v3336_v24 = vpop.f32.mrb[17].mxu1 }
0x11ef   : > { %v2139_v25 = vadd.f32 %v2138_v23, %v2063_v22  ;;  %v3347_v26 = vpop.f32.mrb[19].mxu0 }
0x11f1   : > { %v2142_v27 = vadd.f32 %v2139_v25, %v4346_v56 }
0x11f3   : > { %3780 = vtanh.f32 %v2142_v27  ;;  %v2991_v34 = vmul.f32 -1.442695, %v2142_v27 }
0x11f5   : > { %v2239_v29 = vpop.f32.mrb[18].mxu1 }
0x11f6   : > { %v2243_v30 = vadd.f32 %v2239_v29, %v2172_v28  ;;  %v3358_v31 = vpop.f32.mrb[19].mxu1 }
0x11f8   : > { %3782 = vtanh.f32 %v2243_v30  ;;  %v2993_v35 = vmul.f32 -1.442695, %v2243_v30 }
0x11f9   : > { %3784 = vpow2.f32 %v2991_v34 }
0x11fa   : > { %3786 = vpow2.f32 %v2993_v35 }
0x11fd   : > { %v3781_v32 = vpop.eup %3780 }
0x11fe   : > { %2152 = vrot.lane.b32.xlu0 %v3781_v32, %s4017_s14 }
0x1202   : > { %v3783_v33 = vpop.eup %3782 }
0x1203   : > { %2253 = vrot.lane.b32.xlu1 %v3783_v33, %s4017_s14  ;;  %v3785_v36 = vpop.eup %3784 }
0x1204   : > { %v2146_v37 = vadd.f32 1.0, %v3785_v36  ;;  %v3787_v38 = vpop.eup %3786 }
0x1205   : > { %v2247_v39 = vadd.f32 1.0, %v3787_v38 }
0x1206   : > { %3788 = vrcp.f32 %v2146_v37 }
0x1207   : > { %3790 = vrcp.f32 %v2247_v39 }
0x1210   : > { %v3789_v41 = vpop.eup %3788 }
0x1211   : > { %v3791_v44 = vpop.eup %3790  ;;  %v2150_v50 = vmul.f32 %v3789_v41, %v4511_v9 }
0x1212   : > { %v2251_v53 = vmul.f32 %v3791_v44, %v4513_v11 }
0x1270   : > { %v2153_v42 = vpop.permute.xlu0 %2152 }
0x1271   : > { %v2155_v43 = vmul.f32 %v3789_v41, %v2153_v42 }
0x1273   : > { %2157 = vrot.lane.b32.xlu0 %v2155_v43, %s4018_s25 }
0x1275   : > { %v2254_v45 = vpop.permute.xlu1 %2253 }
0x1276   : > { %v2256_v49 = vmul.f32 %v3791_v44, %v2254_v45 }
0x1278   : > { %2258 = vrot.lane.b32.xlu1 %v2256_v49, %s4018_s25 }
0x12e5   : > { %v2158_v51 = vpop.permute.xlu0 %2157 }
0x12e6   : > { %v4549_v52 = vadd.f32 %v2158_v51, %v2150_v50 }
0x12e8   : > { %3792 = vtanh.f32 %v4549_v52 }
0x12ea   : > { %v2259_v54 = vpop.permute.xlu1 %2258 }
0x12eb   : > { %v4553_v55 = vadd.f32 %v2259_v54, %v2251_v53 }
0x12ed   : > { %3794 = vtanh.f32 %v4553_v55 }
0x12f2   : > { %v3793_v57 = vpop.eup %3792 }
0x12f3   : > { %2163 = vrot.lane.b32.xlu0 %v3793_v57, %s4017_s14 }
0x12f7   : > { %v3795_v58 = vpop.eup %3794 }
0x12f8   : > { %2264 = vrot.lane.b32.xlu1 %v3795_v58, %s4017_s14  ;;  %v2732_v58 = vld [vmem:[%s4695_s7 + $0x8] sm:$0xff] }
0x1365   : > { %v2164_v59 = vpop.permute.xlu0 %2163 }
0x1366   : > { %v2166_v60 = vmul.f32 %v3789_v41, %v2164_v59 }
0x1368   : > { %2168 = vrot.lane.b32.xlu0 %v2166_v60, %s4018_s25  ;;  %v2733_v60 = vld [vmem:[%s4695_s7 + $0x10] sm:$0xff] }
0x136a   : > { %v2265_v61 = vpop.permute.xlu1 %2264 }
0x136b   : > { %v2267_v62 = vmul.f32 %v3791_v44, %v2265_v61  ;;  %v2734_v61 = vld [vmem:[%s4695_s7 + $0x18] sm:$0xff] }
0x136d   : > { %2341 = vrot.lane.b32.xlu1 %v2267_v62, %s4018_s25  ;;  %v3579_v62 = vpack.c.bf16 %v2734_v61, %v2733_v60 }
0x13da   : > { %v2169_v63 = vpop.permute.xlu0 %2168 }
0x13db   : > { %2171 = vst.msk [vmem:[#allocation7 + $0x5] sm:$0x1] %vm805_vm3, %v2169_v63  ;;  %3368 = vmatmul.mubr.msk.f32.vlgmr.msra.gmra.mrb[20].mxu0 %vm421_vm2, %v2169_v63 }
0x13dc   : > { %3559 = vmatpush3.bf16.msra.mxu0 %v4266_v13  ;;  %3389 = vmatprep.mubr.msk.f32.mxu0 %vm4015_vm1, %v4016_v7 }
0x13dd   : > { %3560 = vmatprep.subr.bf16.mxu0 %v4014_v4 }
0x13df   : > { %v2342_v0 = vpop.permute.xlu1 %2341 }
0x13e0   : > { %3562 = vmatpush3.bf16.msra.mxu0 %v4270_v14  ;;  %3379 = vmatmul.mubr.msk.f32.vlgmr.msra.gmra.mrb[20].mxu1 %vm421_vm2, %v2342_v0 }
0x13e1   : > { %3569 = vmatprep.subr.bf16.mxu0 %v4014_v4  ;;  %3565 = vmatpush3.bf16.msra.mxu1 %v4301_v40 }
0x13e2   : > { %3566 = vmatprep.subr.bf16.mxu1 %v4014_v4  ;;  %3400 = vmatprep.mubr.msk.f32.mxu1 %vm4015_vm1, %v4016_v7 }
0x13e3   : > { %3390 = vmatmul.mubr.msk.f32.vlgmr.msra.gmra.mrb[22].mxu0 %vm421_vm2, %v2342_v0 }
0x13e4   : > { %3571 = vmatpush3.bf16.msra.mxu0 %v4309_v47  ;;  %3411 = vmatprep.mubr.msk.f32.mxu0 %vm4015_vm1, %v4016_v7 }
0x13e5   : > { %3572 = vmatprep.subr.bf16.mxu0 %v4014_v4  ;;  %3568 = vmatpush3.bf16.msra.mxu1 %v4307_v46 }
0x13e6   : > { %3575 = vmatprep.subr.bf16.mxu1 %v4014_v4 }
0x13e8   : > { %3574 = vmatpush3.bf16.msra.mxu0 %v4313_v48 }
0x14ae   : > { %v2336_v13 = vpop.f32.mrb[20].mxu0 }
0x14af   : > { %v3369_v14 = vpop.f32.mrb[21].mxu0 }
0x14b3   : > { %v2411_v40 = vpop.f32.mrb[20].mxu1 }
0x14b4   : > { %v2412_v1 = vadd.f32 %v2411_v40, %v2336_v13  ;;  %v3380_v2 = vpop.f32.mrb[21].mxu1 }
0x14b6   : > { %v2415_v3 = vadd.f32 %v2412_v1, %v4346_v56  ;;  %v2512_v47 = vpop.f32.mrb[22].mxu0  ;;  %v3002_v1 = vld [vmem:[%s4696_s8] ss:$0 sm:$0xff] }
0x14b7   : > { %v2516_v6 = vadd.f32 %v2512_v47, %v2445_v5  ;;  %v3391_v8 = vpop.f32.mrb[23].mxu0 }
0x14b8   : > { %3796 = vtanh.f32 %v2415_v3  ;;  %v2996_v46 = vmul.f32 -1.442695, %v2415_v3 }
0x14b9   : > { %3798 = vtanh.f32 %v2516_v6  ;;  %v2998_v48 = vmul.f32 -1.442695, %v2516_v6 }
0x14ba   : > { %3800 = vpow2.f32 %v2996_v46 }
0x14bb   : > { %3802 = vpow2.f32 %v2998_v48 }
0x14c2   : > { %v3797_v9 = vpop.eup %3796 }
0x14c3   : > { %v3799_v10 = vpop.eup %3798  ;;  %2425 = vrot.lane.b32.xlu0 %v3797_v9, %s4017_s14 }
0x14c4   : > { %2526 = vrot.lane.b32.xlu1 %v3799_v10, %s4017_s14  ;;  %v3801_v11 = vpop.eup %3800 }
0x14c5   : > { %v3803_v12 = vpop.eup %3802  ;;  %v2419_v15 = vadd.f32 1.0, %v3801_v11 }
0x14c6   : > { %v2520_v16 = vadd.f32 1.0, %v3803_v12 }
0x14c7   : > { %3804 = vrcp.f32 %v2419_v15 }
0x14c8   : > { %3806 = vrcp.f32 %v2520_v16 }
0x14d1   : > { %v3805_v17 = vpop.eup %3804 }
0x14d2   : > { %v3807_v19 = vpop.eup %3806  ;;  %v2423_v23 = vmul.f32 %v3805_v17, %v4549_v52 }
0x14d3   : > { %v2524_v25 = vmul.f32 %v3807_v19, %v4553_v55 }
0x1535   : > { %v2426_v18 = vpop.permute.xlu0 %2425 }
0x1536   : > { %v2428_v20 = vmul.f32 %v3805_v17, %v2426_v18  ;;  %v2527_v21 = vpop.permute.xlu1 %2526 }
0x1537   : > { %v2529_v22 = vmul.f32 %v3807_v19, %v2527_v21 }
0x1538   : > { %2430 = vrot.lane.b32.xlu0 %v2428_v20, %s4018_s25 }
0x1539   : > { %2531 = vrot.lane.b32.xlu1 %v2529_v22, %s4018_s25 }
0x15aa   : > { %v2431_v24 = vpop.permute.xlu0 %2430 }
0x15ab   : > { %v2433_v26 = vadd.f32 %v2431_v24, %v2423_v23  ;;  %v2532_v27 = vpop.permute.xlu1 %2531 }
0x15ac   : > { %v2534_v28 = vadd.f32 %v2532_v27, %v2524_v25 }
0x15ad   : > { %3808 = vtanh.f32 %v2433_v26 }
0x15ae   : > { %3810 = vtanh.f32 %v2534_v28 }
0x15b7   : > { %v3809_v29 = vpop.eup %3808 }
0x15b8   : > { %v3811_v30 = vpop.eup %3810  ;;  %2436 = vrot.lane.b32.xlu0 %v3809_v29, %s4017_s14 }
0x15b9   : > { %2537 = vrot.lane.b32.xlu1 %v3811_v30, %s4017_s14 }
0x162a   : > { %v2437_v31 = vpop.permute.xlu0 %2436 }
0x162b   : > { %v2439_v32 = vmul.f32 %v3805_v17, %v2437_v31  ;;  %v2538_v33 = vpop.permute.xlu1 %2537 }
0x162c   : > { %v2540_v34 = vmul.f32 %v3807_v19, %v2538_v33 }
0x162d   : > { %2441 = vrot.lane.b32.xlu0 %v2439_v32, %s4018_s25 }
0x162e   : > { %2614 = vrot.lane.b32.xlu1 %v2540_v34, %s4018_s25 }
0x169f   : > { %v2442_v35 = vpop.permute.xlu0 %2441 }
0x16a0   : > { %2444 = vst.msk [vmem:[#allocation7 + $0x6] sm:$0x1] %vm805_vm3, %v2442_v35  ;;  %v2615_v36 = vpop.permute.xlu1 %2614  ;;  %3401 = vmatmul.mubr.msk.f32.vlgmr.msra.gmra.mrb[22].mxu1 %vm421_vm2, %v2442_v35 }
0x16a1   : > { %2719 = vst.msk [vmem:[#allocation2] sm:$0x1] %vm805_vm3, %v2615_v36  ;;  %3412 = vmatmul.mubr.msk.f32.vlgmr.msra.gmra.mrb[24].mxu0 %vm421_vm2, %v2615_v36  ;;  %3422 = vmatprep.mubr.msk.f32.mxu1 %vm4015_vm1, %v4016_v7 }
0x1773   : > { %v2609_v37 = vpop.f32.mrb[22].mxu1 }
0x1774   : > { %v2684_v38 = vpop.f32.mrb[24].mxu0  ;;  %v3402_v39 = vpop.f32.mrb[23].mxu1 }
0x1775   : > { %v2685_v41 = vadd.f32 %v2684_v38, %v2609_v37  ;;  %v3413_v42 = vpop.f32.mrb[25].mxu0 }
0x1777   : > { %v2688_v43 = vadd.f32 %v2685_v41, %v4346_v56  ;;  %v2731_v56 = vld [vmem:[%s4695_s7] sm:$0xff] }
0x1778   : > { %v3576_v59 = vpack.c.bf16 %v2732_v58, %v2731_v56 }
0x1779   : > { %3812 = vtanh.f32 %v2688_v43  ;;  %v3001_v45 = vmul.f32 -1.442695, %v2688_v43 }
0x177a   : > { %3577 = vmatpush3.bf16.msra.mxu1 %v3576_v59 }
0x177b   : > { %3814 = vpow2.f32 %v3001_v45  ;;  %3578 = vmatprep.subr.bf16.mxu1 %v4014_v4 }
0x177e   : > { %3580 = vmatpush3.bf16.msra.mxu1 %v3579_v62 }
0x1783   : > { %v3813_v44 = vpop.eup %3812 }
0x1784   : > { %2698 = vrot.lane.b32.xlu0 %v3813_v44, %s4017_s14 }
0x1785   : > { %v3815_v49 = vpop.eup %3814 }
0x1786   : > { %v2692_v50 = vadd.f32 1.0, %v3815_v49 }
0x1788   : > { %3816 = vrcp.f32 %v2692_v50 }
0x1792   : > { %v3817_v51 = vpop.eup %3816 }
0x1793   : > { %v2696_v7 = vmul.f32 %v3817_v51, %v2433_v26 }
0x17f6   : > { %v2699_v52 = vpop.permute.xlu0 %2698 }
0x17f7   : > { %v2701_v53 = vmul.f32 %v3817_v51, %v2699_v52 }
0x17f9   : > { %2703 = vrot.lane.b32.xlu1 %v2701_v53, %s4018_s25 }
0x186b   : > { %v2704_v54 = vpop.permute.xlu1 %2703 }
0x186c   : > { %v2706_v55 = vadd.f32 %v2704_v54, %v2696_v7 }
0x186e   : > { %3818 = vtanh.f32 %v2706_v55 }
0x1878   : > { %v3819_v57 = vpop.eup %3818 }
0x1879   : > { %2709 = vrot.lane.b32.xlu0 %v3819_v57, %s4017_s14 }
0x187d   : > { %2721 = vrot.lane.b32.xlu0 %v2534_v28, %s4019_s24 }
0x18eb   : > { %v2710_v63 = vpop.permute.xlu0 %2709 }
0x18ec   : > { %v2712_v0 = vmul.f32 %v3817_v51, %v2710_v63 }
0x18ee   : > { %2714 = vrot.lane.b32.xlu1 %v2712_v0, %s4018_s25  ;;  %s2830_s25 = sadd.s32 %s3990_s12, %s3005_s15  ;;  %s2819_s12 = scalar_lea.sflag [#allocation10], %s389_s11 }
0x18ef   : > { %v2722_v13 = vpop.permute.xlu0 %2721  ;;  %s3006_s28 = sshll.u32 %s2830_s25, 7 }
0x18f0   : > { %2724 = vst.msk [vmem:[#allocation3] sm:$0x1] %vm805_vm3, %v2722_v13  ;;  %s4631_s22 = scalar_lea.hbm %s4730_s20, %s3006_s28 }
0x18f2   : > { %2727 = vrot.lane.b32.xlu1 %v2706_v55, %s4019_s24 }
0x1960   : > { %v2715_v4 = vpop.permute.xlu1 %2714 }
0x1961   : > { %2717 = vst.msk [vmem:[#allocation7 + $0x7] sm:$0x1] %vm805_vm3, %v2715_v4  ;;  %2725 = vst.msk [vmem:[#allocation4] sm:$0x1] %vm805_vm3, %v2715_v4 }
0x1964   : > { %v2728_v14 = vpop.permute.xlu1 %2727 }
0x1965   : > { %2730 = vst.msk [vmem:[#allocation5] sm:$0x1] %vm805_vm3, %v2728_v14 }
0x1968   : > { %v2735_v40 = vld [vmem:[#allocation7] sm:$0xff] }
0x1969   : > { %3423 = vmatmul.mubr.msk.f32.vlgmr.msra.gmra.mrb[24].mxu1 %vm421_vm2, %v2735_v40 }
0x1a3c   : > { %v2812_v2 = vpop.f32.mrb[24].mxu1 }
0x1a3d   : > { %v2813_v3 = vadd.f32 %v3002_v1, %v2812_v2  ;;  %v3424_v5 = vpop.f32.mrb[25].mxu1 }
0x1a3f   : > { %2817 = vst.msk [vmem:[%s391_s26] sm:$0xff] %vm2816_vm4, %v2813_v3 }
0x1a40   : > { %3917 = shalt.err (!%p3914_p11)
}
0x1a41   : > { %s3918_s11 = scalar_lea.hbm %s4631_s22, 128  ;;  %s3922_s21 = scalar_lea.hbm %s4730_s20, 512 }
0x1a42   : > { %p3919_p13 = scmp.ne.s32.totalorder %s4631_s22, %s3918_s11  ;;  %p3923_p0 = scmp.lt.u32.totalorder %s4631_s22, %s4730_s20 }
0x1a43   : > { %p3924_p8 = scmp.lt.u32.totalorder %s3922_s21, %s3918_s11  ;;  %p3926_p12 = scmp.lt.u32.totalorder %s3918_s11, %s4631_s22 }
0x1a44   : > { %p3920_p3 = pnand %p3919_p13, %p4731_p1 }
0x1a45   : > { %p3925_p10 = por %p3924_p8, %p3923_p0 }
0x1a46   : > { %p3921_p2 = pneg %p3920_p3 }
0x1a47   : > { %p3927_p4 = por %p3926_p12, %p3925_p10 }
0x1a49   : > { %p3928_p5 = pnand %p3927_p4, %p3921_p2 }
0x1a4b   : > { %3931 = shalt.err (!%p3928_p5)
}
0x1a4c   : > { %3593 = dma.vmem_to_hbm [thread:$0]  (%p4731_p1), %s4633_s16, 128, %s4631_s22, %s2819_s12  }
0x1a4d PF: > { %s4732_s25 = sld [smem:[#allocation22_spill]]  ;;  %s4733_s19 = sld [smem:[#allocation18_spill]] }
0x1a4e   : > { %s4734_s30 = sld [smem:[#allocation25_spill]] }
0x1a53   : > { %p3615_p6 = scmp.ge.s32.totalorder %s4732_s25, 2  ;;  %s2846_s28 = sand.u32 1, %s4733_s19  }
0x1a54   : > { %p4735_p7 = scmp.ne.s32.totalorder %s4734_s30, 0  ;;  %s2847_s24 = scalar_lea.sflag [#allocation10], %s2846_s28 }
0x1a56   : > { %p3606_p9 = pnand %p3615_p6, %p4735_p7 }
0x1a58   : > { %3973 = dma.done.wait (!%p3606_p9), %s2847_s24, 128  }
0x1a59   : > { %3975 = vsyncadd (!%p3606_p9), %s2847_s24, 4294967168  ;;  %s24_s16 = sadd.s32 1, %s4732_s25   ;;  %s4736_s17 = sld [smem:[#allocation19_spill]] }
0x1a5a   : > { %p21_p11 = scmp.ge.s32.totalorder %s24_s16, 6   ;;  %s4737_s11 = sld [smem:[#allocation26_spill]] }
0x1a5b   : > { %s4738_s12 = sld [smem:[#allocation20_spill]]  ;;  %s4739_s13 = sld [smem:[#allocation21_spill]] }
0x1a5c   : > { %s4740_s14 = sld [smem:[#allocation23_spill]]  ;;  %s4741_s15 = sld [smem:[#allocation24_spill]] }
0x1a5d   : > { %s4742_s30 = smov %s3982_s10  ;;  %23 = sbr.rel (!%p21_p11) target bundleno = 9 (0x9), region = 108 }
0x1a5f   : > { %s4743_s10 = smov %s4736_s17 }
0x1a64   :  { %2852 = vsyncpa [#allocation9], 1 }
0x1a65   :  { %2854 = vsyncpa [#allocation9 + $0x1], 1 }
0x1a66   :  { %2855 = vsyncpa [#allocation12], 1 }
0x1a67   :  { %2856 = vsyncpa [#allocation10], 1 }
0x1a68   :  { %2858 = vsyncpa [#allocation10 + $0x1], 1 }

// kernel: tpu_custom_call.1
= control target key start
LH: loop header
LB: loop body
LE: loop exit
PB: predicated region body
PF: predicated region fallthrough
CT: control target
= control target key end

     0   :  { %s4688_s0 = inlined_call_operand.vmem [shape: f32[2,16,32], index: 0, kind: input, shape index: {}]   ;;  %s4689_s1 = inlined_call_operand.hbm [shape: f32[32,128], index: 1, kind: input, shape index: {}]   ;;  %s4690_s2 = inlined_call_operand.hbm [shape: f32[32,128], index: 2, kind: input, shape index: {}]   ;;  %s4691_s3 = inlined_call_operand.vmem [shape: f32[1,128], index: 3, kind: input, shape index: {}]   ;;  %s4692_s4 = inlined_call_operand.hbm [shape: f32[32,128], index: 4, kind: input, shape index: {}]   ;;  %s4693_s5 = inlined_call_operand.vmem [shape: f32[32,128], index: 5, kind: input, shape index: {}]   ;;  %s4694_s6 = inlined_call_operand.vmem [shape: f32[1,128], index: 6, kind: input, shape index: {}]   ;;  %s4695_s7 = inlined_call_operand.vmem [shape: f32[32,16], index: 7, kind: input, shape index: {}]   ;;  %s4696_s8 = inlined_call_operand.vmem [shape: f32[1,16], index: 8, kind: input, shape index: {}]   ;;  %s4697_s9 = inlined_call_operand.hbm [shape: f32[2,16,16], index: 9, kind: output, shape index: {}]  }
   0x1   :  { %4712 = sst [smem:[#allocation27_spill]] %s4697_s9 }
   0x2   :  { %14 = vsyncpa [#allocation9], 0 }
   0x3   :  { %15 = vsyncpa [#allocation12], 0 }
   0x4   :  { %16 = vsyncpa [#allocation10], 0 }
   0x5   :  { %18 = vsyncpa [#allocation10 + $0x1], 0  ;;  %s4071_s30 = smov 0   ;;  %s4073_s10 = smov 0  }
   0x6   :  { %s4075_s11 = smov 0   ;;  %s4077_s12 = smov 0  }
   0x7   :  { %s4079_s13 = smov 0   ;;  %s4081_s14 = smov 0  }
   0x8   :  { %s4083_s15 = smov 0   ;;  %s4085_s16 = smov 0  }
   0x9 LB: > { %4713 = sst [smem:[#allocation18_spill]] %s3978_s30  ;;  %s2943_s17 = sadd.s32 4294967295, %s4006_s16   ;;  %s4006_s16 = sphi %s4085_s16, %s24_s16   ;;  %s4002_s15 = sphi %s4083_s15, %s4741_s15   ;;  %s3998_s14 = sphi %s4081_s14, %s4740_s14   ;;  %s3994_s13 = sphi %s4079_s13, %s4739_s13   ;;  %s3990_s12 = sphi %s4077_s12, %s4738_s12   ;;  %s3986_s11 = sphi %s4075_s11, %s4737_s11   ;;  %s3982_s10 = sphi %s4073_s10, %s4743_s10   ;;  %s3978_s30 = sphi %s4071_s30, %s4742_s30  }
   0xa   : > { %4714 = sst [smem:[#allocation19_spill]] %s3986_s11  ;;  %s2944_s18 = sadd.s32 4294967294, %s4006_s16  }
   0xb   : > { %4715 = sst [smem:[#allocation20_spill]] %s3998_s14  ;;  %s33_s19 = sadd.s32 1, %s3998_s14 }
   0xc   : > { %4716 = sst [smem:[#allocation21_spill]] %s4002_s15  ;;  %s36_s20 = sadd.s32 1, %s4002_s15 }
   0xd   : > { %4717 = sst [smem:[#allocation22_spill]] %s4006_s16  ;;  %p34_p0 = scmp.ge.s32.totalorder %s33_s19, 2 }
   0xe   : > { %s241_s21 = sadd.s32 1, %s3986_s11  ;;  %p251_p1 = scmp.ne.s32.totalorder %s3986_s11, %s3982_s10 }
   0xf   : > { %p252_p2 = scmp.eq.s32.totalorder %s2943_s17, 3  ;;  %s4745_s19 = smov (%p34_p0, %s33_s19), 0 }
  0x10   : > { %4718 = sst [smem:[#allocation23_spill]] %s4745_s19  ;;  %s4747_s20 = smov (!%p34_p0, %s36_s20), %s4002_s15 }
  0x11   : > { %s237_s22 = ssub.s32 %s3998_s14, %s4745_s19  ;;  %p4123_p3 = por %p252_p2, %p251_p1 }
  0x12   : > { %p38_p4 = scmp.ge.s32.totalorder %s4747_s20, 2  ;;  %p257_p5 = scmp.ne.s32.totalorder %s3982_s10, %s3978_s30 }
  0x13   : > { %s4719_s23 = scalar_select %p4123_p3, 1, 0 }
  0x14   : > { %p258_p6 = scmp.eq.s32.totalorder %s2944_s18, 3  ;;  %p2945_p7 = scmp.ge.s32.totalorder %s4006_s16, 1 }
  0x15   : > { %s4749_s20 = smov (%p38_p4, %s4747_s20), 0  ;;  %p265_p9 = scmp.lt.s32.totalorder %s4006_s16, 5 }
  0x16   : > { %4720 = sst [smem:[#allocation24_spill]] %s4749_s20  ;;  %p4132_p8 = por %p258_p6, %p257_p5 }
  0x17   : > { %s236_s25 = ssub.s32 %s4002_s15, %s4749_s20  ;;  %p4139_p10 = pnand %p2945_p7, %p265_p9 }
  0x18   : > { %s4721_s24 = scalar_select %p4132_p8, 1, 0 }
  0x19   : > { %s238_s26 = sor.u32 %s237_s22, %s236_s25  ;;  %p4143_p12 = scmp.eq.s32.totalorder %s2943_s17, 0 }
  0x1a   : > { %4722 = sst [smem:[#allocation25_spill]] %s4721_s24  ;;  %p239_p11 = scmp.eq.s32.totalorder %s238_s26, 0 }
  0x1b   : > { %s4723_s27 = scalar_select %p4139_p10, 1, 0 }
  0x1c   : > { %s4724_s28 = scalar_select %p4143_p12, 1, 0 }
  0x1d   : > { %p3595_p13 = pneg %p4139_p10  ;;  %s4008_s22 = smov [#allocation11]  }
  0x1e   : > { %s4150_s29 = scalar_select %p239_p11, %s3986_s11, %s241_s21  }
  0x1f   : > { %p4154_p0 = pnand %p4143_p12, %p3595_p13  ;;  %s290_s25 = sshll.u32 %s4008_s22, 4  ;;  %s291_s25 = int_to_ptr.vmem [resolvable:$true] %s290_s25 }
  0x20   : > { %4725 = sst [smem:[#allocation26_spill]] %s4150_s29  ;;  %s3820_s17 = scalar_lea.hbm %s4690_s2, 512 }
  0x21   : > { %p3821_p1 = scmp.ne.s32.totalorder %s4690_s2, %s3820_s17  ;;  %p4166_p2 = pneg %p4154_p0 }
  0x22   : > { %p3827_p6 = scmp.lt.u32.totalorder %s3820_s17, %s4690_s2 }
  0x23   : > { %p3823_p4 = pnand %p4166_p2, %p3821_p1 }
  0x25   : > { %p3824_p5 = pneg %p3823_p4 }
  0x27   : > { %p3829_p7 = pnand %p3827_p6, %p3824_p5 }
  0x29   : > { %3832 = shalt.err (!%p3829_p7)
}
  0x2a   : > { %s3833_s20 = scalar_lea.vmem %s291_s25, 512  ;;  %p3841_p8 = scmp.lt.s32.totalorder %s291_s25, %s291_s25 }
  0x2b   : > { %p3834_p9 = scmp.ne.s32.totalorder %s291_s25, %s3833_s20  ;;  %p3842_p3 = scmp.lt.s32.totalorder %s3833_s20, %s3833_s20 }
  0x2d   : > { %p3836_p11 = pnand %p3834_p9, %p4166_p2  ;;  %p3843_p12 = por %p3842_p3, %p3841_p8 }
  0x2f   : > { %p3837_p13 = pneg %p3836_p11 }
  0x31   : > { %p3844_p10 = pnand %p3843_p12, %p3837_p13 }
  0x33   : > { %3847 = shalt.err (!%p3844_p10)
}
  0x34   : > { %s4009_s15 = smov 128   ;;  %s4010_s19 = smov 8  }
  0x35   : > { %3601 = dma.hbm_to_vmem [thread:$0]  (!%p4154_p0), %s4690_s2, 512, %s291_s25, [#allocation12], %s4009_s15, %s4009_s15, %s4010_s19  }
  0x36   : > { %s4011_s17 = smov [#allocation8]   ;;  %s4012_s29 = smov [#allocation13]  }
  0x37   : > { %s277_s22 = sshll.u32 %s4011_s17, 4  ;;  %s306_s11 = sshll.u32 %s4012_s29, 4  ;;  %s278_s22 = int_to_ptr.vmem [resolvable:$true] %s277_s22  ;;  %s4185_s11 = int_to_ptr.vmem [resolvable:$true] %s306_s11 }
  0x38   : > { %s3848_s30 = scalar_lea.hbm %s4689_s1, 512 }
  0x39   : > { %p3849_p3 = scmp.ne.s32.totalorder %s4689_s1, %s3848_s30  ;;  %p3855_p12 = scmp.lt.u32.totalorder %s3848_s30, %s4689_s1 }
  0x3b   : > { %p3851_p8 = pnand %p3849_p3, %p4166_p2 }
  0x3d   : > { %p3852_p10 = pneg %p3851_p8 }
  0x3f   : > { %p3857_p1 = pnand %p3855_p12, %p3852_p10 }
  0x41   : > { %3860 = shalt.err (!%p3857_p1)
}
  0x42   : > { %s3861_s29 = scalar_lea.vmem %s278_s22, 512  ;;  %p3869_p7 = scmp.lt.s32.totalorder %s278_s22, %s278_s22 }
  0x43   : > { %p3862_p4 = scmp.ne.s32.totalorder %s278_s22, %s3861_s29  ;;  %p3870_p9 = scmp.lt.s32.totalorder %s3861_s29, %s3861_s29 }
  0x45   : > { %p3864_p5 = pnand %p3862_p4, %p4166_p2  ;;  %p3871_p11 = por %p3870_p9, %p3869_p7 }
  0x47   : > { %p3865_p6 = pneg %p3864_p5 }
  0x49   : > { %p3872_p13 = pnand %p3871_p11, %p3865_p6 }
  0x4b   : > { %3875 = shalt.err (!%p3872_p13)
}
  0x4c   : > { %3598 = dma.hbm_to_vmem [thread:$0]  (!%p4154_p0), %s4689_s1, 512, %s278_s22, [#allocation9], %s4009_s15, %s4009_s15, %s4010_s19  }
  0x4d   : > { %s3876_s26 = scalar_lea.hbm %s4692_s4, 512 }
  0x4e   : > { %p3877_p3 = scmp.ne.s32.totalorder %s4692_s4, %s3876_s26  ;;  %p3883_p12 = scmp.lt.u32.totalorder %s3876_s26, %s4692_s4 }
  0x50   : > { %p3879_p8 = pnand %p3877_p3, %p4166_p2 }
  0x52   : > { %p3880_p10 = pneg %p3879_p8 }
  0x54   : > { %p3885_p1 = pnand %p3883_p12, %p3880_p10 }
  0x56   : > { %3888 = shalt.err (!%p3885_p1)
}
  0x57   : > { %s3889_s22 = scalar_lea.vmem %s4185_s11, 512  ;;  %p3897_p7 = scmp.lt.s32.totalorder %s4185_s11, %s4185_s11 }
  0x58   : > { %p3890_p4 = scmp.ne.s32.totalorder %s4185_s11, %s3889_s22  ;;  %p3898_p9 = scmp.lt.s32.totalorder %s3889_s22, %s3889_s22 }
  0x5a   : > { %p3892_p5 = pnand %p3890_p4, %p4166_p2  ;;  %p3899_p11 = por %p3898_p9, %p3897_p7 }
  0x5c   : > { %p3893_p6 = pneg %p3892_p5 }
  0x5e   : > { %p3900_p13 = pnand %p3899_p11, %p3893_p6 }
  0x60   : > { %3903 = shalt.err (!%p3900_p13)
}
  0x61   : > { %3604 = dma.hbm_to_vmem [thread:$0]  (!%p4154_p0), %s4692_s4, 512, %s4185_s11, [#allocation12], %s4009_s15, %s4009_s15, %s4010_s19  }
  0x62   : > { %p4728_p3 = scmp.ne.s32.totalorder %s4723_s27, 0 }
  0x63   : > { %p4729_p2 = scmp.ne.s32.totalorder (!%p4728_p3), %s4724_s28, 0 }
  0x64   : > { %345 = sbr.rel (%p4728_p3) target bundleno = 6733 (0x1a4d), region = 56 }
  0x6b   : > { %3965 = dma.done.wait (%p4729_p2), [#allocation9], 512  }
  0x6c   : > { %3967 = vsyncadd (%p4729_p2), [#allocation9], 4294966784 }
  0x6d   : > { %3969 = dma.done.wait (%p4729_p2), [#allocation12], 1024  }
  0x6e   : > { %3971 = vsyncadd (%p4729_p2), [#allocation12], 4294966272  ;;  %s389_s11 = sand.u32 1, %s3982_s10   ;;  %p392_p0 = scmp.lt.s32.totalorder %s3994_s13, 1 }
  0x6f   : > { %s4248_s27 = sshll.u32 %s389_s11, 3  ;;  %p394_p8 = scmp.lt.s32.totalorder %s3990_s12, 1 }
  0x70   : > { %s393_s18 = scalar_select %p392_p0, %s3994_s13, 1 }
  0x71   : > { %s395_s21 = scalar_select %p394_p8, %s3990_s12, 1 }
  0x72   : > { %s2955_s15 = sshll.u32 %s393_s18, 1  ;;  %s391_s26 = scalar_lea.vmem [#allocation14], %s4248_s27 }
  0x73   : > { %s397_s19 = sadd.s32 %s2955_s15, %s395_s21  ;;  %p2957_p10 = scmp.ne.s32.totalorder %s3990_s12, 0 }
  0x74   : > { %s2956_s30 = sshll.u32 %s397_s19, 3  ;;  %vm404_vm0 = vcmask (!%p2957_p10), 253952   ;;  %v4013_v0 = vmov (!%p2957_p10), 0.0  }
  0x75   : > { %s4256_s24 = scalar_lea.vmem %s4688_s0, %s2956_s30  ;;  %403 = sbr.rel (%p2957_p10) target bundleno = 124 (0x7c), region = 72  ;;  %405 = vst.msk [vmem:[#allocation2] sm:$0x1] (!%p2957_p10), %vm404_vm0, %v4013_v0  ;;  %406 = vst.msk [vmem:[#allocation3] sm:$0x1] (!%p2957_p10), %vm404_vm0, %v4013_v0 }
  0x76   : > { %407 = vst.msk [vmem:[#allocation4] sm:$0x1] (!%p2957_p10), %vm404_vm0, %v4013_v0  ;;  %408 = vst.msk [vmem:[#allocation5] sm:$0x1] (!%p2957_p10), %vm404_vm0, %v4013_v0 }
  0x7c PF: > { %v409_v1 = vld [vmem:[#allocation8] sm:$0xff]  ;;  %v410_v2 = vld [vmem:[#allocation8 + $0x8] sm:$0xff]  ;;  %v411_v3 = vld [vmem:[#allocation8 + $0x10] sm:$0xff]  ;;  %v4014_v4 = vmov 0.0|0.0   ;;  %vm4015_vm1 = vmmov 0   ;;  %v4016_v7 = vmov 0.0  }
  0x7d   : > { %3425 = vmatprep.subr.bf16.mxu0 %v4014_v4  ;;  %v3426_v5 = vpack.c.bf16 %v410_v2, %v409_v1  ;;  %v412_v6 = vld [vmem:[#allocation8 + $0x18] sm:$0xff]  ;;  %3147 = vmatprep.mubr.msk.f32.mxu0 %vm4015_vm1, %v4016_v7  ;;  %v496_v8 = vld [vmem:[#allocation11] sm:$0xff]  ;;  %v497_v9 = vld [vmem:[#allocation11 + $0x8] sm:$0xff]  ;;  %vm421_vm2 = vcmask 261120   ;;  %s4017_s14 = smov 64   ;;  %s4018_s25 = smov 32  }
  0x7e   : > { %3431 = vmatprep.subr.bf16.mxu1 %v4014_v4  ;;  %v498_v10 = vld [vmem:[#allocation11 + $0x10] sm:$0xff]  ;;  %v499_v11 = vld [vmem:[#allocation11 + $0x18] sm:$0xff]  ;;  %3158 = vmatprep.mubr.msk.f32.mxu1 %vm4015_vm1, %v4016_v7  ;;  %v3429_v12 = vpack.c.bf16 %v412_v6, %v411_v3  ;;  %v4266_v13 = vpack.c.bf16 %v497_v9, %v496_v8  ;;  %v509_v16 = vld [vmem:[#allocation2] sm:$0x1]  ;;  %vm805_vm3 = vcmask 253952   ;;  %s3005_s15 = sshll.u32 %s3994_s13, 1 }
  0x7f   : > { %3427 = vmatpush3.bf16.msra.mxu0 %v3426_v5  ;;  %v4270_v14 = vpack.c.bf16 %v499_v11, %v498_v10  ;;  %v413_v15 = vld [vmem:[%s4256_s24] sm:$0xff]  ;;  %v505_v38 = vld [vmem:[%s4693_s5 + $0x8] sm:$0xff]  ;;  %v506_v39 = vld [vmem:[%s4693_s5 + $0x10] sm:$0xff]  ;;  %s4019_s24 = smov 96   ;;  %s2834_s16 = sshll.u32 %s391_s26, 4  ;;  %vm2816_vm4 = vcmask 130048   ;;  %s4633_s16 = int_to_ptr.vmem [resolvable:$true] %s2834_s16 }
  0x80   : > { %3428 = vmatprep.subr.bf16.mxu0 %v4014_v4  ;;  %3433 = vmatpush3.bf16.msra.mxu1 %v4266_v13  ;;  %v2958_v17 = vld [vmem:[%s4691_s3] ss:$0 sm:$0xff]  ;;  %v2962_v26 = vld [vmem:[#allocation3] ss:$0 sm:$0xff]  ;;  %v507_v41 = vld [vmem:[%s4693_s5 + $0x18] sm:$0xff]  ;;  %s4730_s20 = sld [smem:[#allocation27_spill]] }
  0x81   : > { %3434 = vmatprep.subr.bf16.mxu1 %v4014_v4  ;;  %v504_v37 = vld [vmem:[%s4693_s5] sm:$0xff]  ;;  %v500_v42 = vld [vmem:[#allocation13] sm:$0xff]  ;;  %v503_v45 = vld [vmem:[#allocation13 + $0x18] sm:$0xff]  ;;  %v4307_v46 = vpack.c.bf16 %v507_v41, %v506_v39  ;;  %s3904_s13 = scalar_lea.vmem %s4633_s16, 128  ;;  %p4731_p1 = scmp.ne.s32.totalorder %s4719_s23, 0 }
  0x82   : > { %v4301_v40 = vpack.c.bf16 %v505_v38, %v504_v37  ;;  %v501_v43 = vld [vmem:[#allocation13 + $0x8] sm:$0xff]  ;;  %v502_v44 = vld [vmem:[#allocation13 + $0x10] sm:$0xff]  ;;  %p3905_p12 = scmp.ne.s32.totalorder %s4633_s16, %s3904_s13  ;;  %s4020_s29 = smov [#allocation14]  }
  0x83   : > { %3430 = vmatpush3.bf16.msra.mxu0 %v3429_v12  ;;  %v4309_v47 = vpack.c.bf16 %v501_v43, %v500_v42  ;;  %v4313_v48 = vpack.c.bf16 %v503_v45, %v502_v44  ;;  %v511_v49 = vld [vmem:[#allocation4] sm:$0x1]  ;;  %v4346_v56 = vld [vmem:[%s4694_s6] sm:$0x1]  ;;  %v2966_v3 = vld [vmem:[#allocation5] ss:$0 sm:$0xff] }
  0x84   : > { %3437 = vmatprep.subr.bf16.mxu0 %v4014_v4  ;;  %3436 = vmatpush3.bf16.msra.mxu1 %v4270_v14  ;;  %p3906_p4 = pnand %p3905_p12, %p4731_p1  ;;  %s3908_s9 = sshll.u32 %s4020_s29, 4  ;;  %s3909_s9 = int_to_ptr.vmem [resolvable:$false] %s3908_s9 }
  0x85   : > { %3443 = vmatprep.subr.bf16.mxu1 %v4014_v4  ;;  %s3910_s18 = scalar_lea.vmem %s3909_s9, 256  ;;  %p3911_p6 = scmp.lt.s32.totalorder %s4633_s16, %s3909_s9 }
  0x86   : > { %3148 = vmatmul.mubr.msk.f32.vlgmr.msra.gmra.mrb[0].mxu0 %vm421_vm2, %v413_v15  ;;  %p3907_p5 = pneg %p3906_p4  ;;  %p3912_p7 = scmp.lt.s32.totalorder %s3910_s18, %s3904_s13 }
  0x87   : > { %3169 = vmatprep.mubr.msk.f32.mxu0 %vm4015_vm1, %v4016_v7  ;;  %3159 = vmatmul.mubr.msk.f32.vlgmr.msra.gmra.mrb[0].mxu1 %vm421_vm2, %v509_v16 }
  0x88   : > { %3180 = vmatprep.mubr.msk.f32.mxu1 %vm4015_vm1, %v4016_v7  ;;  %3439 = vmatpush3.bf16.msra.mxu0 %v4301_v40  ;;  %p3913_p9 = por %p3912_p7, %p3911_p6 }
  0x89   : > { %3440 = vmatprep.subr.bf16.mxu0 %v4014_v4  ;;  %3445 = vmatpush3.bf16.msra.mxu1 %v4309_v47 }
  0x8a   : > { %3446 = vmatprep.subr.bf16.mxu1 %v4014_v4  ;;  %p3914_p11 = pnand %p3913_p9, %p3907_p5 }
  0x8c   : > { %3442 = vmatpush3.bf16.msra.mxu0 %v4307_v46 }
  0x8d   : > { %3449 = vmatprep.subr.bf16.mxu0 %v4014_v4  ;;  %3448 = vmatpush3.bf16.msra.mxu1 %v4313_v48 }
  0x8e   : > { %3455 = vmatprep.subr.bf16.mxu1 %v4014_v4 }
  0x8f   : > { %3170 = vmatmul.mubr.msk.f32.vlgmr.msra.gmra.mrb[2].mxu0 %vm421_vm2, %v511_v49 }
  0x90   : > { %3451 = vmatpush3.bf16.msra.mxu0 %v4266_v13  ;;  %3191 = vmatprep.mubr.msk.f32.mxu0 %vm4015_vm1, %v4016_v7 }
  0x91   : > { %3452 = vmatprep.subr.bf16.mxu0 %v4014_v4 }
  0x94   : > { %3454 = vmatpush3.bf16.msra.mxu0 %v4270_v14 }
  0x95   : > { %3461 = vmatprep.subr.bf16.mxu0 %v4014_v4 }
 0x159   : > { %v491_v18 = vpop.f32.mrb[0].mxu0 }
 0x15a   : > { %v492_v19 = vadd.f32 %v2958_v17, %v491_v18  ;;  %v3149_v20 = vpop.f32.mrb[1].mxu0  ;;  %v583_v21 = vpop.f32.mrb[0].mxu1 }
 0x15b   : > { %v3160_v22 = vpop.f32.mrb[1].mxu1 }
 0x15c   : > { %495 = vst [vmem:[#allocation6] sm:$0xff] %v492_v19 }
 0x162   : > { %v689_v53 = vpop.f32.mrb[2].mxu0 }
 0x163   : > { %v513_v23 = vld [vmem:[#allocation6] sm:$0x1]  ;;  %v3171_v54 = vpop.f32.mrb[3].mxu0  ;;  %v807_v58 = vld [vmem:[#allocation6 + $0x1] sm:$0x1] }
 0x164   : > { %v587_v24 = vadd.f32 %v583_v21, %v513_v23  ;;  %v1080_v42 = vld [vmem:[#allocation6 + $0x2] sm:$0x1] }
 0x166   : > { %3692 = vtanh.f32 %v587_v24  ;;  %v2961_v27 = vmul.f32 -1.442695, %v587_v24 }
 0x168   : > { %3694 = vpow2.f32 %v2961_v27 }
 0x170   : > { %v3693_v25 = vpop.eup %3692 }
 0x171   : > { %605 = vrot.lane.b32.xlu0 %v3693_v25, %s4017_s14 }
 0x172   : > { %v3695_v28 = vpop.eup %3694 }
 0x173   : > { %v591_v29 = vadd.f32 1.0, %v3695_v28 }
 0x175   : > { %600 = vrot.lane.b32.xlu0 %v2962_v26, %s4018_s25  ;;  %3696 = vrcp.f32 %v591_v29 }
 0x17f   : > { %v3697_v30 = vpop.eup %3696 }
 0x1e3   : > { %v606_v31 = vpop.permute.xlu0 %605 }
 0x1e4   : > { %v608_v32 = vmul.f32 %v3697_v30, %v606_v31 }
 0x1e6   : > { %610 = vrot.lane.b32.xlu1 %v608_v32, %s4018_s25 }
 0x1e7   : > { %v601_v33 = vpop.permute.xlu0 %600 }
 0x1e8   : > { %v603_v34 = vmul.f32 %v3697_v30, %v601_v33 }
 0x258   : > { %v611_v35 = vpop.permute.xlu1 %610 }
 0x259   : > { %v4289_v36 = vadd.f32 %v611_v35, %v603_v34 }
 0x25b   : > { %3698 = vtanh.f32 %v4289_v36 }
 0x265   : > { %v3699_v50 = vpop.eup %3698 }
 0x266   : > { %616 = vrot.lane.b32.xlu1 %v3699_v50, %s4017_s14 }
 0x2d8   : > { %v617_v51 = vpop.permute.xlu1 %616 }
 0x2d9   : > { %v619_v52 = vmul.f32 %v3697_v30, %v617_v51 }
 0x2db   : > { %694 = vrot.lane.b32.xlu0 %v619_v52, %s4018_s25 }
 0x34d   : > { %v695_v55 = vpop.permute.xlu0 %694 }
 0x34e   : > { %3181 = vmatmul.mubr.msk.f32.vlgmr.msra.gmra.mrb[2].mxu1 %vm421_vm2, %v695_v55  ;;  %3192 = vmatmul.mubr.msk.f32.vlgmr.msra.gmra.mrb[4].mxu0 %vm421_vm2, %v695_v55 }
 0x34f   : > { %3463 = vmatpush3.bf16.msra.mxu0 %v4309_v47  ;;  %3457 = vmatpush3.bf16.msra.mxu1 %v4301_v40 }
 0x350   : > { %3464 = vmatprep.subr.bf16.mxu0 %v4014_v4  ;;  %3458 = vmatprep.subr.bf16.mxu1 %v4014_v4 }
 0x351   : > { %3213 = vmatprep.mubr.msk.f32.mxu0 %vm4015_vm1, %v4016_v7  ;;  %3202 = vmatprep.mubr.msk.f32.mxu1 %vm4015_vm1, %v4016_v7 }
 0x353   : > { %3466 = vmatpush3.bf16.msra.mxu0 %v4313_v48  ;;  %3460 = vmatpush3.bf16.msra.mxu1 %v4307_v46 }
 0x354   : > { %3467 = vmatprep.subr.bf16.mxu1 %v4014_v4  ;;  %3473 = vmatprep.subr.bf16.mxu0 %v4014_v4 }
 0x421   : > { %v764_v57 = vpop.f32.mrb[2].mxu1  ;;  %v874_v59 = vpop.f32.mrb[4].mxu0 }
 0x422   : > { %v765_v60 = vadd.f32 %v764_v57, %v689_v53  ;;  %v878_v61 = vadd.f32 %v874_v59, %v807_v58  ;;  %v3182_v62 = vpop.f32.mrb[3].mxu1  ;;  %v3193_v63 = vpop.f32.mrb[5].mxu0 }
 0x424   : > { %v768_v0 = vadd.f32 %v765_v60, %v4346_v56  ;;  %3700 = vtanh.f32 %v878_v61  ;;  %v2968_v5 = vmul.f32 -1.442695, %v878_v61 }
 0x426   : > { %3702 = vtanh.f32 %v768_v0  ;;  %v2965_v6 = vmul.f32 -1.442695, %v768_v0 }
 0x427   : > { %3704 = vpow2.f32 %v2968_v5 }
 0x428   : > { %3706 = vpow2.f32 %v2965_v6 }
 0x42e   : > { %v3701_v1 = vpop.eup %3700 }
 0x42f   : > { %888 = vrot.lane.b32.xlu0 %v3701_v1, %s4017_s14 }
 0x430   : > { %v3703_v2 = vpop.eup %3702 }
 0x431   : > { %786 = vrot.lane.b32.xlu1 %v3703_v2, %s4017_s14  ;;  %v3705_v8 = vpop.eup %3704 }
 0x432   : > { %v3707_v9 = vpop.eup %3706  ;;  %v882_v10 = vadd.f32 1.0, %v3705_v8 }
 0x433   : > { %v772_v11 = vadd.f32 1.0, %v3707_v9 }
 0x434   : > { %3708 = vrcp.f32 %v882_v10 }
 0x435   : > { %781 = vrot.lane.b32.xlu1 %v2966_v3, %s4018_s25  ;;  %3710 = vrcp.f32 %v772_v11 }
 0x43e   : > { %v3709_v12 = vpop.eup %3708 }
 0x43f   : > { %v3711_v17 = vpop.eup %3710  ;;  %v886_v21 = vmul.f32 %v3709_v12, %v4289_v36 }
 0x4a1   : > { %v889_v15 = vpop.permute.xlu0 %888 }
 0x4a2   : > { %v891_v16 = vmul.f32 %v3709_v12, %v889_v15 }
 0x4a3   : > { %v787_v18 = vpop.permute.xlu1 %786 }
 0x4a4   : > { %v789_v19 = vmul.f32 %v3711_v17, %v787_v18  ;;  %893 = vrot.lane.b32.xlu1 %v891_v16, %s4018_s25 }
 0x4a6   : > { %791 = vrot.lane.b32.xlu0 %v789_v19, %s4018_s25 }
 0x4a7   : > { %v782_v20 = vpop.permute.xlu1 %781 }
 0x4a8   : > { %v784_v23 = vmul.f32 %v3711_v17, %v782_v20 }
 0x516   : > { %v894_v22 = vpop.permute.xlu1 %893 }
 0x517   : > { %v4355_v24 = vadd.f32 %v894_v22, %v886_v21 }
 0x518   : > { %v792_v25 = vpop.permute.xlu0 %791 }
 0x519   : > { %3712 = vtanh.f32 %v4355_v24  ;;  %v4358_v26 = vadd.f32 %v792_v25, %v784_v23  ;;  %v1353_v23 = vld [vmem:[#allocation6 + $0x3] sm:$0x1] }
 0x51b   : > { %3714 = vtanh.f32 %v4358_v26 }
 0x523   : > { %v3713_v27 = vpop.eup %3712 }
 0x524   : > { %899 = vrot.lane.b32.xlu1 %v3713_v27, %s4017_s14 }
 0x525   : > { %v3715_v28 = vpop.eup %3714 }
 0x526   : > { %797 = vrot.lane.b32.xlu0 %v3715_v28, %s4017_s14 }
 0x596   : > { %v900_v29 = vpop.permute.xlu1 %899 }
 0x597   : > { %v902_v30 = vmul.f32 %v3709_v12, %v900_v29 }
 0x598   : > { %v798_v31 = vpop.permute.xlu0 %797 }
 0x599   : > { %v800_v32 = vmul.f32 %v3711_v17, %v798_v31  ;;  %976 = vrot.lane.b32.xlu1 %v902_v30, %s4018_s25 }
 0x59b   : > { %802 = vrot.lane.b32.xlu0 %v800_v32, %s4018_s25 }
 0x60b   : > { %v977_v33 = vpop.permute.xlu1 %976 }
 0x60c   : > { %3214 = vmatmul.mubr.msk.f32.vlgmr.msra.gmra.mrb[6].mxu0 %vm421_vm2, %v977_v33 }
 0x60d   : > { %v803_v34 = vpop.permute.xlu0 %802  ;;  %3475 = vmatpush3.bf16.msra.mxu0 %v4301_v40  ;;  %3235 = vmatprep.mubr.msk.f32.mxu0 %vm4015_vm1, %v4016_v7 }
 0x60e   : > { %806 = vst.msk [vmem:[#allocation7] sm:$0x1] %vm805_vm3, %v803_v34  ;;  %3203 = vmatmul.mubr.msk.f32.vlgmr.msra.gmra.mrb[4].mxu1 %vm421_vm2, %v803_v34  ;;  %3476 = vmatprep.subr.bf16.mxu0 %v4014_v4 }
 0x60f   : > { %3469 = vmatpush3.bf16.msra.mxu1 %v4266_v13  ;;  %3224 = vmatprep.mubr.msk.f32.mxu1 %vm4015_vm1, %v4016_v7 }
 0x610   : > { %3470 = vmatprep.subr.bf16.mxu1 %v4014_v4 }
 0x611   : > { %3478 = vmatpush3.bf16.msra.mxu0 %v4307_v46 }
 0x612   : > { %3485 = vmatprep.subr.bf16.mxu0 %v4014_v4 }
 0x613   : > { %3472 = vmatpush3.bf16.msra.mxu1 %v4270_v14 }
 0x614   : > { %3479 = vmatprep.subr.bf16.mxu1 %v4014_v4 }
 0x616   : > { %3225 = vmatmul.mubr.msk.f32.vlgmr.msra.gmra.mrb[6].mxu1 %vm421_vm2, %v977_v33 }
 0x617   : > { %3481 = vmatpush3.bf16.msra.mxu1 %v4309_v47  ;;  %3246 = vmatprep.mubr.msk.f32.mxu1 %vm4015_vm1, %v4016_v7 }
 0x618   : > { %3482 = vmatprep.subr.bf16.mxu1 %v4014_v4 }
 0x61b   : > { %3484 = vmatpush3.bf16.msra.mxu1 %v4313_v48 }
 0x61c   : > { %3491 = vmatprep.subr.bf16.mxu1 %v4014_v4 }
 0x6df   : > { %v1046_v35 = vpop.f32.mrb[6].mxu0 }
 0x6e0   : > { %v3215_v36 = vpop.f32.mrb[7].mxu0 }
 0x6e1   : > { %v971_v37 = vpop.f32.mrb[4].mxu1 }
 0x6e2   : > { %v1047_v38 = vadd.f32 %v1046_v35, %v971_v37  ;;  %v3204_v39 = vpop.f32.mrb[5].mxu1 }
 0x6e4   : > { %v1050_v41 = vadd.f32 %v1047_v38, %v4346_v56 }
 0x6e6   : > { %3716 = vtanh.f32 %v1050_v41  ;;  %v2971_v51 = vmul.f32 -1.442695, %v1050_v41 }
 0x6e9   : > { %v1147_v43 = vpop.f32.mrb[6].mxu1 }
 0x6ea   : > { %v1151_v44 = vadd.f32 %v1147_v43, %v1080_v42  ;;  %v3226_v45 = vpop.f32.mrb[7].mxu1 }
 0x6ec   : > { %3718 = vtanh.f32 %v1151_v44  ;;  %v2973_v52 = vmul.f32 -1.442695, %v1151_v44 }
 0x6ed   : > { %3720 = vpow2.f32 %v2971_v51 }
 0x6ee   : > { %3722 = vpow2.f32 %v2973_v52 }
 0x6f0   : > { %v3717_v49 = vpop.eup %3716 }
 0x6f1   : > { %1060 = vrot.lane.b32.xlu0 %v3717_v49, %s4017_s14 }
 0x6f6   : > { %v3719_v50 = vpop.eup %3718 }
 0x6f7   : > { %1161 = vrot.lane.b32.xlu1 %v3719_v50, %s4017_s14  ;;  %v3721_v53 = vpop.eup %3720 }
 0x6f8   : > { %v1054_v54 = vadd.f32 1.0, %v3721_v53  ;;  %v3723_v55 = vpop.eup %3722 }
 0x6f9   : > { %v1155_v57 = vadd.f32 1.0, %v3723_v55 }
 0x6fa   : > { %3724 = vrcp.f32 %v1054_v54 }
 0x6fb   : > { %3726 = vrcp.f32 %v1155_v57 }
 0x704   : > { %v3725_v58 = vpop.eup %3724 }
 0x705   : > { %v3727_v61 = vpop.eup %3726  ;;  %v1058_v0 = vmul.f32 %v3725_v58, %v4358_v26 }
 0x706   : > { %v1159_v3 = vmul.f32 %v3727_v61, %v4355_v24 }
 0x763   : > { %v1061_v59 = vpop.permute.xlu0 %1060 }
 0x764   : > { %v1063_v60 = vmul.f32 %v3725_v58, %v1061_v59 }
 0x766   : > { %1065 = vrot.lane.b32.xlu0 %v1063_v60, %s4018_s25 }
 0x769   : > { %v1162_v62 = vpop.permute.xlu1 %1161 }
 0x76a   : > { %v1164_v63 = vmul.f32 %v3727_v61, %v1162_v62 }
 0x76c   : > { %1166 = vrot.lane.b32.xlu1 %v1164_v63, %s4018_s25 }
 0x7d8   : > { %v1066_v1 = vpop.permute.xlu0 %1065 }
 0x7d9   : > { %v4393_v2 = vadd.f32 %v1066_v1, %v1058_v0 }
 0x7db   : > { %3728 = vtanh.f32 %v4393_v2 }
 0x7de   : > { %v1167_v5 = vpop.permute.xlu1 %1166 }
 0x7df   : > { %v4397_v6 = vadd.f32 %v1167_v5, %v1159_v3  ;;  %v1626_v3 = vld [vmem:[#allocation6 + $0x4] sm:$0x1] }
 0x7e1   : > { %3730 = vtanh.f32 %v4397_v6 }
 0x7e5   : > { %v3729_v8 = vpop.eup %3728 }
 0x7e6   : > { %1071 = vrot.lane.b32.xlu0 %v3729_v8, %s4017_s14 }
 0x7eb   : > { %v3731_v9 = vpop.eup %3730 }
 0x7ec   : > { %1172 = vrot.lane.b32.xlu1 %v3731_v9, %s4017_s14 }
 0x858   : > { %v1072_v10 = vpop.permute.xlu0 %1071 }
 0x859   : > { %v1074_v11 = vmul.f32 %v3725_v58, %v1072_v10 }
 0x85b   : > { %1076 = vrot.lane.b32.xlu0 %v1074_v11, %s4018_s25 }
 0x85e   : > { %v1173_v12 = vpop.permute.xlu1 %1172 }
 0x85f   : > { %v1175_v15 = vmul.f32 %v3727_v61, %v1173_v12 }
 0x861   : > { %1249 = vrot.lane.b32.xlu1 %v1175_v15, %s4018_s25 }
 0x8cd   : > { %v1077_v16 = vpop.permute.xlu0 %1076 }
 0x8ce   : > { %1079 = vst.msk [vmem:[#allocation7 + $0x1] sm:$0x1] %vm805_vm3, %v1077_v16  ;;  %3236 = vmatmul.mubr.msk.f32.vlgmr.msra.gmra.mrb[8].mxu0 %vm421_vm2, %v1077_v16 }
 0x8cf   : > { %3487 = vmatpush3.bf16.msra.mxu0 %v4266_v13  ;;  %3257 = vmatprep.mubr.msk.f32.mxu0 %vm4015_vm1, %v4016_v7 }
 0x8d0   : > { %3488 = vmatprep.subr.bf16.mxu0 %v4014_v4 }
 0x8d3   : > { %v1250_v17 = vpop.permute.xlu1 %1249  ;;  %3490 = vmatpush3.bf16.msra.mxu0 %v4270_v14 }
 0x8d4   : > { %3247 = vmatmul.mubr.msk.f32.vlgmr.msra.gmra.mrb[8].mxu1 %vm421_vm2, %v1250_v17  ;;  %3497 = vmatprep.subr.bf16.mxu0 %v4014_v4 }
 0x8d5   : > { %3493 = vmatpush3.bf16.msra.mxu1 %v4301_v40  ;;  %3268 = vmatprep.mubr.msk.f32.mxu1 %vm4015_vm1, %v4016_v7 }
 0x8d6   : > { %3258 = vmatmul.mubr.msk.f32.vlgmr.msra.gmra.mrb[10].mxu0 %vm421_vm2, %v1250_v17  ;;  %3494 = vmatprep.subr.bf16.mxu1 %v4014_v4 }
 0x8d7   : > { %3499 = vmatpush3.bf16.msra.mxu0 %v4309_v47  ;;  %3279 = vmatprep.mubr.msk.f32.mxu0 %vm4015_vm1, %v4016_v7 }
 0x8d8   : > { %3500 = vmatprep.subr.bf16.mxu0 %v4014_v4 }
 0x8d9   : > { %3496 = vmatpush3.bf16.msra.mxu1 %v4307_v46 }
 0x8da   : > { %3503 = vmatprep.subr.bf16.mxu1 %v4014_v4 }
 0x8db   : > { %3502 = vmatpush3.bf16.msra.mxu0 %v4313_v48 }
 0x8dc   : > { %3509 = vmatprep.subr.bf16.mxu0 %v4014_v4 }
 0x9a1   : > { %v1244_v18 = vpop.f32.mrb[8].mxu0 }
 0x9a2   : > { %v3237_v19 = vpop.f32.mrb[9].mxu0 }
 0x9a7   : > { %v1319_v20 = vpop.f32.mrb[8].mxu1 }
 0x9a8   : > { %v1320_v21 = vadd.f32 %v1319_v20, %v1244_v18  ;;  %v3248_v22 = vpop.f32.mrb[9].mxu1 }
 0x9a9   : > { %v1420_v24 = vpop.f32.mrb[10].mxu0 }
 0x9aa   : > { %v1323_v25 = vadd.f32 %v1320_v21, %v4346_v56  ;;  %v1424_v26 = vadd.f32 %v1420_v24, %v1353_v23  ;;  %v3259_v27 = vpop.f32.mrb[11].mxu0 }
 0x9ac   : > { %3732 = vtanh.f32 %v1323_v25  ;;  %v2976_v30 = vmul.f32 -1.442695, %v1323_v25  ;;  %v2978_v31 = vmul.f32 -1.442695, %v1424_v26 }
 0x9ad   : > { %3734 = vtanh.f32 %v1424_v26 }
 0x9ae   : > { %3736 = vpow2.f32 %v2976_v30 }
 0x9af   : > { %3738 = vpow2.f32 %v2978_v31 }
 0x9b6   : > { %v3733_v28 = vpop.eup %3732 }
 0x9b7   : > { %v3735_v29 = vpop.eup %3734  ;;  %1333 = vrot.lane.b32.xlu0 %v3733_v28, %s4017_s14 }
 0x9b8   : > { %1434 = vrot.lane.b32.xlu1 %v3735_v29, %s4017_s14  ;;  %v3737_v32 = vpop.eup %3736 }
 0x9b9   : > { %v3739_v33 = vpop.eup %3738  ;;  %v1327_v34 = vadd.f32 1.0, %v3737_v32 }
 0x9ba   : > { %v1428_v35 = vadd.f32 1.0, %v3739_v33 }
 0x9bb   : > { %3740 = vrcp.f32 %v1327_v34 }
 0x9bc   : > { %3742 = vrcp.f32 %v1428_v35 }
 0x9c5   : > { %v3741_v36 = vpop.eup %3740 }
 0x9c6   : > { %v3743_v38 = vpop.eup %3742  ;;  %v1331_v43 = vmul.f32 %v3741_v36, %v4393_v2 }
 0x9c7   : > { %v1432_v45 = vmul.f32 %v3743_v38, %v4397_v6 }
 0xa29   : > { %v1334_v37 = vpop.permute.xlu0 %1333 }
 0xa2a   : > { %v1336_v39 = vmul.f32 %v3741_v36, %v1334_v37  ;;  %v1435_v41 = vpop.permute.xlu1 %1434 }
 0xa2b   : > { %v1437_v42 = vmul.f32 %v3743_v38, %v1435_v41 }
 0xa2c   : > { %1338 = vrot.lane.b32.xlu0 %v1336_v39, %s4018_s25 }
 0xa2d   : > { %1439 = vrot.lane.b32.xlu1 %v1437_v42, %s4018_s25 }
 0xa9e   : > { %v1339_v44 = vpop.permute.xlu0 %1338 }
 0xa9f   : > { %v4433_v49 = vadd.f32 %v1339_v44, %v1331_v43  ;;  %v1440_v50 = vpop.permute.xlu1 %1439 }
 0xaa0   : > { %v4435_v51 = vadd.f32 %v1440_v50, %v1432_v45 }
 0xaa1   : > { %3744 = vtanh.f32 %v4433_v49 }
 0xaa2   : > { %3746 = vtanh.f32 %v4435_v51 }
 0xaab   : > { %v3745_v52 = vpop.eup %3744 }
 0xaac   : > { %v3747_v53 = vpop.eup %3746  ;;  %1344 = vrot.lane.b32.xlu0 %v3745_v52, %s4017_s14 }
 0xaad   : > { %1445 = vrot.lane.b32.xlu1 %v3747_v53, %s4017_s14 }
 0xb1e   : > { %v1345_v54 = vpop.permute.xlu0 %1344 }
 0xb1f   : > { %v1347_v55 = vmul.f32 %v3741_v36, %v1345_v54  ;;  %v1446_v57 = vpop.permute.xlu1 %1445 }
 0xb20   : > { %v1448_v58 = vmul.f32 %v3743_v38, %v1446_v57 }
 0xb21   : > { %1349 = vrot.lane.b32.xlu0 %v1347_v55, %s4018_s25 }
 0xb22   : > { %1522 = vrot.lane.b32.xlu1 %v1448_v58, %s4018_s25 }
 0xb93   : > { %v1350_v59 = vpop.permute.xlu0 %1349 }
 0xb94   : > { %1352 = vst.msk [vmem:[#allocation7 + $0x2] sm:$0x1] %vm805_vm3, %v1350_v59  ;;  %v1523_v60 = vpop.permute.xlu1 %1522  ;;  %3269 = vmatmul.mubr.msk.f32.vlgmr.msra.gmra.mrb[10].mxu1 %vm421_vm2, %v1350_v59 }
 0xb95   : > { %3280 = vmatmul.mubr.msk.f32.vlgmr.msra.gmra.mrb[12].mxu0 %vm421_vm2, %v1523_v60  ;;  %3505 = vmatpush3.bf16.msra.mxu1 %v4266_v13 }
 0xb96   : > { %3506 = vmatprep.subr.bf16.mxu1 %v4014_v4  ;;  %3290 = vmatprep.mubr.msk.f32.mxu1 %vm4015_vm1, %v4016_v7 }
 0xb97   : > { %3511 = vmatpush3.bf16.msra.mxu0 %v4301_v40  ;;  %3301 = vmatprep.mubr.msk.f32.mxu0 %vm4015_vm1, %v4016_v7 }
 0xb98   : > { %3512 = vmatprep.subr.bf16.mxu0 %v4014_v4 }
 0xb99   : > { %3508 = vmatpush3.bf16.msra.mxu1 %v4270_v14 }
 0xb9a   : > { %3515 = vmatprep.subr.bf16.mxu1 %v4014_v4 }
 0xb9b   : > { %3514 = vmatpush3.bf16.msra.mxu0 %v4307_v46 }
 0xb9c   : > { %3291 = vmatmul.mubr.msk.f32.vlgmr.msra.gmra.mrb[12].mxu1 %vm421_vm2, %v1523_v60  ;;  %3521 = vmatprep.subr.bf16.mxu0 %v4014_v4 }
 0xb9d   : > { %3517 = vmatpush3.bf16.msra.mxu1 %v4309_v47  ;;  %3312 = vmatprep.mubr.msk.f32.mxu1 %vm4015_vm1, %v4016_v7 }
 0xb9e   : > { %3518 = vmatprep.subr.bf16.mxu1 %v4014_v4 }
 0xba1   : > { %3520 = vmatpush3.bf16.msra.mxu1 %v4313_v48 }
 0xba2   : > { %3527 = vmatprep.subr.bf16.mxu1 %v4014_v4 }
 0xc67   : > { %v1517_v61 = vpop.f32.mrb[10].mxu1 }
 0xc68   : > { %v1592_v62 = vpop.f32.mrb[12].mxu0  ;;  %v3270_v63 = vpop.f32.mrb[11].mxu1 }
 0xc69   : > { %v1593_v0 = vadd.f32 %v1592_v62, %v1517_v61  ;;  %v3281_v1 = vpop.f32.mrb[13].mxu0 }
 0xc6b   : > { %v1596_v2 = vadd.f32 %v1593_v0, %v4346_v56 }
 0xc6d   : > { %3748 = vtanh.f32 %v1596_v2  ;;  %v2981_v11 = vmul.f32 -1.442695, %v1596_v2 }
 0xc6f   : > { %v1693_v5 = vpop.f32.mrb[12].mxu1 }
 0xc70   : > { %v1697_v6 = vadd.f32 %v1693_v5, %v1626_v3  ;;  %v3292_v8 = vpop.f32.mrb[13].mxu1 }
 0xc72   : > { %3750 = vtanh.f32 %v1697_v6  ;;  %v2983_v12 = vmul.f32 -1.442695, %v1697_v6 }
 0xc73   : > { %3752 = vpow2.f32 %v2981_v11 }
 0xc74   : > { %3754 = vpow2.f32 %v2983_v12 }
 0xc77   : > { %v3749_v9 = vpop.eup %3748 }
 0xc78   : > { %1606 = vrot.lane.b32.xlu0 %v3749_v9, %s4017_s14 }
 0xc7c   : > { %v3751_v10 = vpop.eup %3750 }
 0xc7d   : > { %1707 = vrot.lane.b32.xlu1 %v3751_v10, %s4017_s14  ;;  %v3753_v15 = vpop.eup %3752 }
 0xc7e   : > { %v1600_v16 = vadd.f32 1.0, %v3753_v15  ;;  %v3755_v17 = vpop.eup %3754 }
 0xc7f   : > { %v1701_v18 = vadd.f32 1.0, %v3755_v17 }
 0xc80   : > { %3756 = vrcp.f32 %v1600_v16 }
 0xc81   : > { %3758 = vrcp.f32 %v1701_v18 }
 0xc8a   : > { %v3757_v19 = vpop.eup %3756 }
 0xc8b   : > { %v3759_v22 = vpop.eup %3758  ;;  %v1604_v25 = vmul.f32 %v3757_v19, %v4433_v49  ;;  %v1899_v49 = vld [vmem:[#allocation6 + $0x5] sm:$0x1] }
 0xc8c   : > { %v1705_v28 = vmul.f32 %v3759_v22, %v4435_v51 }
 0xcea   : > { %v1607_v20 = vpop.permute.xlu0 %1606 }
 0xceb   : > { %v1609_v21 = vmul.f32 %v3757_v19, %v1607_v20 }
 0xced   : > { %1611 = vrot.lane.b32.xlu0 %v1609_v21, %s4018_s25 }
 0xcef   : > { %v1708_v23 = vpop.permute.xlu1 %1707 }
 0xcf0   : > { %v1710_v24 = vmul.f32 %v3759_v22, %v1708_v23 }
 0xcf2   : > { %1712 = vrot.lane.b32.xlu1 %v1710_v24, %s4018_s25 }
 0xd5f   : > { %v1612_v26 = vpop.permute.xlu0 %1611 }
 0xd60   : > { %v4471_v27 = vadd.f32 %v1612_v26, %v1604_v25 }
 0xd62   : > { %3760 = vtanh.f32 %v4471_v27 }
 0xd64   : > { %v1713_v29 = vpop.permute.xlu1 %1712 }
 0xd65   : > { %v4475_v30 = vadd.f32 %v1713_v29, %v1705_v28  ;;  %v2172_v28 = vld [vmem:[#allocation6 + $0x6] sm:$0x1] }
 0xd67   : > { %3762 = vtanh.f32 %v4475_v30 }
 0xd6c   : > { %v3761_v31 = vpop.eup %3760 }
 0xd6d   : > { %1617 = vrot.lane.b32.xlu0 %v3761_v31, %s4017_s14 }
 0xd71   : > { %v3763_v32 = vpop.eup %3762 }
 0xd72   : > { %1718 = vrot.lane.b32.xlu1 %v3763_v32, %s4017_s14 }
 0xddf   : > { %v1618_v33 = vpop.permute.xlu0 %1617 }
 0xde0   : > { %v1620_v34 = vmul.f32 %v3757_v19, %v1618_v33 }
 0xde2   : > { %1622 = vrot.lane.b32.xlu0 %v1620_v34, %s4018_s25 }
 0xde4   : > { %v1719_v35 = vpop.permute.xlu1 %1718 }
 0xde5   : > { %v1721_v36 = vmul.f32 %v3759_v22, %v1719_v35 }
 0xde7   : > { %1795 = vrot.lane.b32.xlu1 %v1721_v36, %s4018_s25 }
 0xe54   : > { %v1623_v37 = vpop.permute.xlu0 %1622 }
 0xe55   : > { %1625 = vst.msk [vmem:[#allocation7 + $0x3] sm:$0x1] %vm805_vm3, %v1623_v37  ;;  %3302 = vmatmul.mubr.msk.f32.vlgmr.msra.gmra.mrb[14].mxu0 %vm421_vm2, %v1623_v37 }
 0xe56   : > { %3523 = vmatpush3.bf16.msra.mxu0 %v4266_v13  ;;  %3323 = vmatprep.mubr.msk.f32.mxu0 %vm4015_vm1, %v4016_v7 }
 0xe57   : > { %3524 = vmatprep.subr.bf16.mxu0 %v4014_v4 }
 0xe59   : > { %v1796_v38 = vpop.permute.xlu1 %1795 }
 0xe5a   : > { %3526 = vmatpush3.bf16.msra.mxu0 %v4270_v14  ;;  %3313 = vmatmul.mubr.msk.f32.vlgmr.msra.gmra.mrb[14].mxu1 %vm421_vm2, %v1796_v38 }
 0xe5b   : > { %3529 = vmatpush3.bf16.msra.mxu1 %v4301_v40  ;;  %3533 = vmatprep.subr.bf16.mxu0 %v4014_v4 }
 0xe5c   : > { %3530 = vmatprep.subr.bf16.mxu1 %v4014_v4  ;;  %3334 = vmatprep.mubr.msk.f32.mxu1 %vm4015_vm1, %v4016_v7 }
 0xe5d   : > { %3324 = vmatmul.mubr.msk.f32.vlgmr.msra.gmra.mrb[16].mxu0 %vm421_vm2, %v1796_v38 }
 0xe5e   : > { %3535 = vmatpush3.bf16.msra.mxu0 %v4309_v47  ;;  %3345 = vmatprep.mubr.msk.f32.mxu0 %vm4015_vm1, %v4016_v7 }
 0xe5f   : > { %3532 = vmatpush3.bf16.msra.mxu1 %v4307_v46  ;;  %3536 = vmatprep.subr.bf16.mxu0 %v4014_v4 }
 0xe60   : > { %3539 = vmatprep.subr.bf16.mxu1 %v4014_v4 }
 0xe62   : > { %3538 = vmatpush3.bf16.msra.mxu0 %v4313_v48 }
 0xe63   : > { %3545 = vmatprep.subr.bf16.mxu0 %v4014_v4 }
 0xf28   : > { %v1790_v39 = vpop.f32.mrb[14].mxu0 }
 0xf29   : > { %v3303_v41 = vpop.f32.mrb[15].mxu0 }
 0xf2d   : > { %v1865_v42 = vpop.f32.mrb[14].mxu1 }
 0xf2e   : > { %v1866_v43 = vadd.f32 %v1865_v42, %v1790_v39  ;;  %v3314_v44 = vpop.f32.mrb[15].mxu1 }
 0xf30   : > { %v1869_v45 = vadd.f32 %v1866_v43, %v4346_v56  ;;  %v1966_v50 = vpop.f32.mrb[16].mxu0 }
 0xf31   : > { %v1970_v51 = vadd.f32 %v1966_v50, %v1899_v49  ;;  %v3325_v52 = vpop.f32.mrb[17].mxu0 }
 0xf32   : > { %3764 = vtanh.f32 %v1869_v45  ;;  %v2986_v55 = vmul.f32 -1.442695, %v1869_v45 }
 0xf33   : > { %3766 = vtanh.f32 %v1970_v51  ;;  %v2988_v57 = vmul.f32 -1.442695, %v1970_v51 }
 0xf34   : > { %3768 = vpow2.f32 %v2986_v55 }
 0xf35   : > { %3770 = vpow2.f32 %v2988_v57 }
 0xf3c   : > { %v3765_v53 = vpop.eup %3764 }
 0xf3d   : > { %v3767_v54 = vpop.eup %3766  ;;  %1879 = vrot.lane.b32.xlu0 %v3765_v53, %s4017_s14 }
 0xf3e   : > { %1980 = vrot.lane.b32.xlu1 %v3767_v54, %s4017_s14  ;;  %v3769_v58 = vpop.eup %3768 }
 0xf3f   : > { %v3771_v59 = vpop.eup %3770  ;;  %v1873_v60 = vadd.f32 1.0, %v3769_v58 }
 0xf40   : > { %v1974_v61 = vadd.f32 1.0, %v3771_v59 }
 0xf41   : > { %3772 = vrcp.f32 %v1873_v60 }
 0xf42   : > { %3774 = vrcp.f32 %v1974_v61 }
 0xf4b   : > { %v3773_v62 = vpop.eup %3772 }
 0xf4c   : > { %v3775_v0 = vpop.eup %3774  ;;  %v1877_v5 = vmul.f32 %v3773_v62, %v4471_v27 }
 0xf4d   : > { %v1978_v8 = vmul.f32 %v3775_v0, %v4475_v30 }
 0xfaf   : > { %v1880_v63 = vpop.permute.xlu0 %1879 }
 0xfb0   : > { %v1882_v1 = vmul.f32 %v3773_v62, %v1880_v63  ;;  %v1981_v2 = vpop.permute.xlu1 %1980 }
 0xfb1   : > { %v1983_v3 = vmul.f32 %v3775_v0, %v1981_v2 }
 0xfb2   : > { %1884 = vrot.lane.b32.xlu0 %v1882_v1, %s4018_s25 }
 0xfb3   : > { %1985 = vrot.lane.b32.xlu1 %v1983_v3, %s4018_s25 }
0x1024   : > { %v1885_v6 = vpop.permute.xlu0 %1884 }
0x1025   : > { %v4511_v9 = vadd.f32 %v1885_v6, %v1877_v5  ;;  %v1986_v10 = vpop.permute.xlu1 %1985  ;;  %v2445_v5 = vld [vmem:[#allocation6 + $0x7] sm:$0x1] }
0x1026   : > { %v4513_v11 = vadd.f32 %v1986_v10, %v1978_v8 }
0x1027   : > { %3776 = vtanh.f32 %v4511_v9 }
0x1028   : > { %3778 = vtanh.f32 %v4513_v11 }
0x1031   : > { %v3777_v12 = vpop.eup %3776 }
0x1032   : > { %v3779_v15 = vpop.eup %3778  ;;  %1890 = vrot.lane.b32.xlu0 %v3777_v12, %s4017_s14 }
0x1033   : > { %1991 = vrot.lane.b32.xlu1 %v3779_v15, %s4017_s14 }
0x10a4   : > { %v1891_v16 = vpop.permute.xlu0 %1890 }
0x10a5   : > { %v1893_v17 = vmul.f32 %v3773_v62, %v1891_v16  ;;  %v1992_v18 = vpop.permute.xlu1 %1991 }
0x10a6   : > { %v1994_v19 = vmul.f32 %v3775_v0, %v1992_v18 }
0x10a7   : > { %1895 = vrot.lane.b32.xlu0 %v1893_v17, %s4018_s25 }
0x10a8   : > { %2068 = vrot.lane.b32.xlu1 %v1994_v19, %s4018_s25 }
0x1119   : > { %v1896_v20 = vpop.permute.xlu0 %1895 }
0x111a   : > { %1898 = vst.msk [vmem:[#allocation7 + $0x4] sm:$0x1] %vm805_vm3, %v1896_v20  ;;  %v2069_v21 = vpop.permute.xlu1 %2068  ;;  %3335 = vmatmul.mubr.msk.f32.vlgmr.msra.gmra.mrb[16].mxu1 %vm421_vm2, %v1896_v20 }
0x111b   : > { %3346 = vmatmul.mubr.msk.f32.vlgmr.msra.gmra.mrb[18].mxu0 %vm421_vm2, %v2069_v21  ;;  %3541 = vmatpush3.bf16.msra.mxu1 %v4266_v13 }
0x111c   : > { %3542 = vmatprep.subr.bf16.mxu1 %v4014_v4  ;;  %3356 = vmatprep.mubr.msk.f32.mxu1 %vm4015_vm1, %v4016_v7 }
0x111d   : > { %3547 = vmatpush3.bf16.msra.mxu0 %v4301_v40  ;;  %3367 = vmatprep.mubr.msk.f32.mxu0 %vm4015_vm1, %v4016_v7 }
0x111e   : > { %3548 = vmatprep.subr.bf16.mxu0 %v4014_v4 }
0x111f   : > { %3544 = vmatpush3.bf16.msra.mxu1 %v4270_v14 }
0x1120   : > { %3551 = vmatprep.subr.bf16.mxu1 %v4014_v4 }
0x1121   : > { %3550 = vmatpush3.bf16.msra.mxu0 %v4307_v46 }
0x1122   : > { %3357 = vmatmul.mubr.msk.f32.vlgmr.msra.gmra.mrb[18].mxu1 %vm421_vm2, %v2069_v21  ;;  %3557 = vmatprep.subr.bf16.mxu0 %v4014_v4 }
0x1123   : > { %3553 = vmatpush3.bf16.msra.mxu1 %v4309_v47  ;;  %3378 = vmatprep.mubr.msk.f32.mxu1 %vm4015_vm1, %v4016_v7 }
0x1124   : > { %3554 = vmatprep.subr.bf16.mxu1 %v4014_v4 }
0x1127   : > { %3556 = vmatpush3.bf16.msra.mxu1 %v4313_v48 }
0x1128   : > { %3563 = vmatprep.subr.bf16.mxu1 %v4014_v4 }
0x11ed   : > { %v2063_v22 = vpop.f32.mrb[16].mxu1 }
0x11ee   : > { %v2138_v23 = vpop.f32.mrb[18].mxu0  ;;  %v3336_v24 = vpop.f32.mrb[17].mxu1 }
0x11ef   : > { %v2139_v25 = vadd.f32 %v2138_v23, %v2063_v22  ;;  %v3347_v26 = vpop.f32.mrb[19].mxu0 }
0x11f1   : > { %v2142_v27 = vadd.f32 %v2139_v25, %v4346_v56 }
0x11f3   : > { %3780 = vtanh.f32 %v2142_v27  ;;  %v2991_v34 = vmul.f32 -1.442695, %v2142_v27 }
0x11f5   : > { %v2239_v29 = vpop.f32.mrb[18].mxu1 }
0x11f6   : > { %v2243_v30 = vadd.f32 %v2239_v29, %v2172_v28  ;;  %v3358_v31 = vpop.f32.mrb[19].mxu1 }
0x11f8   : > { %3782 = vtanh.f32 %v2243_v30  ;;  %v2993_v35 = vmul.f32 -1.442695, %v2243_v30 }
0x11f9   : > { %3784 = vpow2.f32 %v2991_v34 }
0x11fa   : > { %3786 = vpow2.f32 %v2993_v35 }
0x11fd   : > { %v3781_v32 = vpop.eup %3780 }
0x11fe   : > { %2152 = vrot.lane.b32.xlu0 %v3781_v32, %s4017_s14 }
0x1202   : > { %v3783_v33 = vpop.eup %3782 }
0x1203   : > { %2253 = vrot.lane.b32.xlu1 %v3783_v33, %s4017_s14  ;;  %v3785_v36 = vpop.eup %3784 }
0x1204   : > { %v2146_v37 = vadd.f32 1.0, %v3785_v36  ;;  %v3787_v38 = vpop.eup %3786 }
0x1205   : > { %v2247_v39 = vadd.f32 1.0, %v3787_v38 }
0x1206   : > { %3788 = vrcp.f32 %v2146_v37 }
0x1207   : > { %3790 = vrcp.f32 %v2247_v39 }
0x1210   : > { %v3789_v41 = vpop.eup %3788 }
0x1211   : > { %v3791_v44 = vpop.eup %3790  ;;  %v2150_v50 = vmul.f32 %v3789_v41, %v4511_v9 }
0x1212   : > { %v2251_v53 = vmul.f32 %v3791_v44, %v4513_v11 }
0x1270   : > { %v2153_v42 = vpop.permute.xlu0 %2152 }
0x1271   : > { %v2155_v43 = vmul.f32 %v3789_v41, %v2153_v42 }
0x1273   : > { %2157 = vrot.lane.b32.xlu0 %v2155_v43, %s4018_s25 }
0x1275   : > { %v2254_v45 = vpop.permute.xlu1 %2253 }
0x1276   : > { %v2256_v49 = vmul.f32 %v3791_v44, %v2254_v45 }
0x1278   : > { %2258 = vrot.lane.b32.xlu1 %v2256_v49, %s4018_s25 }
0x12e5   : > { %v2158_v51 = vpop.permute.xlu0 %2157 }
0x12e6   : > { %v4549_v52 = vadd.f32 %v2158_v51, %v2150_v50 }
0x12e8   : > { %3792 = vtanh.f32 %v4549_v52 }
0x12ea   : > { %v2259_v54 = vpop.permute.xlu1 %2258 }
0x12eb   : > { %v4553_v55 = vadd.f32 %v2259_v54, %v2251_v53 }
0x12ed   : > { %3794 = vtanh.f32 %v4553_v55 }
0x12f2   : > { %v3793_v57 = vpop.eup %3792 }
0x12f3   : > { %2163 = vrot.lane.b32.xlu0 %v3793_v57, %s4017_s14 }
0x12f7   : > { %v3795_v58 = vpop.eup %3794 }
0x12f8   : > { %2264 = vrot.lane.b32.xlu1 %v3795_v58, %s4017_s14  ;;  %v2732_v58 = vld [vmem:[%s4695_s7 + $0x8] sm:$0xff] }
0x1365   : > { %v2164_v59 = vpop.permute.xlu0 %2163 }
0x1366   : > { %v2166_v60 = vmul.f32 %v3789_v41, %v2164_v59 }
0x1368   : > { %2168 = vrot.lane.b32.xlu0 %v2166_v60, %s4018_s25  ;;  %v2733_v60 = vld [vmem:[%s4695_s7 + $0x10] sm:$0xff] }
0x136a   : > { %v2265_v61 = vpop.permute.xlu1 %2264 }
0x136b   : > { %v2267_v62 = vmul.f32 %v3791_v44, %v2265_v61  ;;  %v2734_v61 = vld [vmem:[%s4695_s7 + $0x18] sm:$0xff] }
0x136d   : > { %2341 = vrot.lane.b32.xlu1 %v2267_v62, %s4018_s25  ;;  %v3579_v62 = vpack.c.bf16 %v2734_v61, %v2733_v60 }
0x13da   : > { %v2169_v63 = vpop.permute.xlu0 %2168 }
0x13db   : > { %2171 = vst.msk [vmem:[#allocation7 + $0x5] sm:$0x1] %vm805_vm3, %v2169_v63  ;;  %3368 = vmatmul.mubr.msk.f32.vlgmr.msra.gmra.mrb[20].mxu0 %vm421_vm2, %v2169_v63 }
0x13dc   : > { %3559 = vmatpush3.bf16.msra.mxu0 %v4266_v13  ;;  %3389 = vmatprep.mubr.msk.f32.mxu0 %vm4015_vm1, %v4016_v7 }
0x13dd   : > { %3560 = vmatprep.subr.bf16.mxu0 %v4014_v4 }
0x13df   : > { %v2342_v0 = vpop.permute.xlu1 %2341 }
0x13e0   : > { %3562 = vmatpush3.bf16.msra.mxu0 %v4270_v14  ;;  %3379 = vmatmul.mubr.msk.f32.vlgmr.msra.gmra.mrb[20].mxu1 %vm421_vm2, %v2342_v0 }
0x13e1   : > { %3569 = vmatprep.subr.bf16.mxu0 %v4014_v4  ;;  %3565 = vmatpush3.bf16.msra.mxu1 %v4301_v40 }
0x13e2   : > { %3566 = vmatprep.subr.bf16.mxu1 %v4014_v4  ;;  %3400 = vmatprep.mubr.msk.f32.mxu1 %vm4015_vm1, %v4016_v7 }
0x13e3   : > { %3390 = vmatmul.mubr.msk.f32.vlgmr.msra.gmra.mrb[22].mxu0 %vm421_vm2, %v2342_v0 }
0x13e4   : > { %3571 = vmatpush3.bf16.msra.mxu0 %v4309_v47  ;;  %3411 = vmatprep.mubr.msk.f32.mxu0 %vm4015_vm1, %v4016_v7 }
0x13e5   : > { %3572 = vmatprep.subr.bf16.mxu0 %v4014_v4  ;;  %3568 = vmatpush3.bf16.msra.mxu1 %v4307_v46 }
0x13e6   : > { %3575 = vmatprep.subr.bf16.mxu1 %v4014_v4 }
0x13e8   : > { %3574 = vmatpush3.bf16.msra.mxu0 %v4313_v48 }
0x14ae   : > { %v2336_v13 = vpop.f32.mrb[20].mxu0 }
0x14af   : > { %v3369_v14 = vpop.f32.mrb[21].mxu0 }
0x14b3   : > { %v2411_v40 = vpop.f32.mrb[20].mxu1 }
0x14b4   : > { %v2412_v1 = vadd.f32 %v2411_v40, %v2336_v13  ;;  %v3380_v2 = vpop.f32.mrb[21].mxu1 }
0x14b6   : > { %v2415_v3 = vadd.f32 %v2412_v1, %v4346_v56  ;;  %v2512_v47 = vpop.f32.mrb[22].mxu0  ;;  %v3002_v1 = vld [vmem:[%s4696_s8] ss:$0 sm:$0xff] }
0x14b7   : > { %v2516_v6 = vadd.f32 %v2512_v47, %v2445_v5  ;;  %v3391_v8 = vpop.f32.mrb[23].mxu0 }
0x14b8   : > { %3796 = vtanh.f32 %v2415_v3  ;;  %v2996_v46 = vmul.f32 -1.442695, %v2415_v3 }
0x14b9   : > { %3798 = vtanh.f32 %v2516_v6  ;;  %v2998_v48 = vmul.f32 -1.442695, %v2516_v6 }
0x14ba   : > { %3800 = vpow2.f32 %v2996_v46 }
0x14bb   : > { %3802 = vpow2.f32 %v2998_v48 }
0x14c2   : > { %v3797_v9 = vpop.eup %3796 }
0x14c3   : > { %v3799_v10 = vpop.eup %3798  ;;  %2425 = vrot.lane.b32.xlu0 %v3797_v9, %s4017_s14 }
0x14c4   : > { %2526 = vrot.lane.b32.xlu1 %v3799_v10, %s4017_s14  ;;  %v3801_v11 = vpop.eup %3800 }
0x14c5   : > { %v3803_v12 = vpop.eup %3802  ;;  %v2419_v15 = vadd.f32 1.0, %v3801_v11 }
0x14c6   : > { %v2520_v16 = vadd.f32 1.0, %v3803_v12 }
0x14c7   : > { %3804 = vrcp.f32 %v2419_v15 }
0x14c8   : > { %3806 = vrcp.f32 %v2520_v16 }
0x14d1   : > { %v3805_v17 = vpop.eup %3804 }
0x14d2   : > { %v3807_v19 = vpop.eup %3806  ;;  %v2423_v23 = vmul.f32 %v3805_v17, %v4549_v52 }
0x14d3   : > { %v2524_v25 = vmul.f32 %v3807_v19, %v4553_v55 }
0x1535   : > { %v2426_v18 = vpop.permute.xlu0 %2425 }
0x1536   : > { %v2428_v20 = vmul.f32 %v3805_v17, %v2426_v18  ;;  %v2527_v21 = vpop.permute.xlu1 %2526 }
0x1537   : > { %v2529_v22 = vmul.f32 %v3807_v19, %v2527_v21 }
0x1538   : > { %2430 = vrot.lane.b32.xlu0 %v2428_v20, %s4018_s25 }
0x1539   : > { %2531 = vrot.lane.b32.xlu1 %v2529_v22, %s4018_s25 }
0x15aa   : > { %v2431_v24 = vpop.permute.xlu0 %2430 }
0x15ab   : > { %v2433_v26 = vadd.f32 %v2431_v24, %v2423_v23  ;;  %v2532_v27 = vpop.permute.xlu1 %2531 }
0x15ac   : > { %v2534_v28 = vadd.f32 %v2532_v27, %v2524_v25 }
0x15ad   : > { %3808 = vtanh.f32 %v2433_v26 }
0x15ae   : > { %3810 = vtanh.f32 %v2534_v28 }
0x15b7   : > { %v3809_v29 = vpop.eup %3808 }
0x15b8   : > { %v3811_v30 = vpop.eup %3810  ;;  %2436 = vrot.lane.b32.xlu0 %v3809_v29, %s4017_s14 }
0x15b9   : > { %2537 = vrot.lane.b32.xlu1 %v3811_v30, %s4017_s14 }
0x162a   : > { %v2437_v31 = vpop.permute.xlu0 %2436 }
0x162b   : > { %v2439_v32 = vmul.f32 %v3805_v17, %v2437_v31  ;;  %v2538_v33 = vpop.permute.xlu1 %2537 }
0x162c   : > { %v2540_v34 = vmul.f32 %v3807_v19, %v2538_v33 }
0x162d   : > { %2441 = vrot.lane.b32.xlu0 %v2439_v32, %s4018_s25 }
0x162e   : > { %2614 = vrot.lane.b32.xlu1 %v2540_v34, %s4018_s25 }
0x169f   : > { %v2442_v35 = vpop.permute.xlu0 %2441 }
0x16a0   : > { %2444 = vst.msk [vmem:[#allocation7 + $0x6] sm:$0x1] %vm805_vm3, %v2442_v35  ;;  %v2615_v36 = vpop.permute.xlu1 %2614  ;;  %3401 = vmatmul.mubr.msk.f32.vlgmr.msra.gmra.mrb[22].mxu1 %vm421_vm2, %v2442_v35 }
0x16a1   : > { %2719 = vst.msk [vmem:[#allocation2] sm:$0x1] %vm805_vm3, %v2615_v36  ;;  %3412 = vmatmul.mubr.msk.f32.vlgmr.msra.gmra.mrb[24].mxu0 %vm421_vm2, %v2615_v36  ;;  %3422 = vmatprep.mubr.msk.f32.mxu1 %vm4015_vm1, %v4016_v7 }
0x1773   : > { %v2609_v37 = vpop.f32.mrb[22].mxu1 }
0x1774   : > { %v2684_v38 = vpop.f32.mrb[24].mxu0  ;;  %v3402_v39 = vpop.f32.mrb[23].mxu1 }
0x1775   : > { %v2685_v41 = vadd.f32 %v2684_v38, %v2609_v37  ;;  %v3413_v42 = vpop.f32.mrb[25].mxu0 }
0x1777   : > { %v2688_v43 = vadd.f32 %v2685_v41, %v4346_v56  ;;  %v2731_v56 = vld [vmem:[%s4695_s7] sm:$0xff] }
0x1778   : > { %v3576_v59 = vpack.c.bf16 %v2732_v58, %v2731_v56 }
0x1779   : > { %3812 = vtanh.f32 %v2688_v43  ;;  %v3001_v45 = vmul.f32 -1.442695, %v2688_v43 }
0x177a   : > { %3577 = vmatpush3.bf16.msra.mxu1 %v3576_v59 }
0x177b   : > { %3814 = vpow2.f32 %v3001_v45  ;;  %3578 = vmatprep.subr.bf16.mxu1 %v4014_v4 }
0x177e   : > { %3580 = vmatpush3.bf16.msra.mxu1 %v3579_v62 }
0x1783   : > { %v3813_v44 = vpop.eup %3812 }
0x1784   : > { %2698 = vrot.lane.b32.xlu0 %v3813_v44, %s4017_s14 }
0x1785   : > { %v3815_v49 = vpop.eup %3814 }
0x1786   : > { %v2692_v50 = vadd.f32 1.0, %v3815_v49 }
0x1788   : > { %3816 = vrcp.f32 %v2692_v50 }
0x1792   : > { %v3817_v51 = vpop.eup %3816 }
0x1793   : > { %v2696_v7 = vmul.f32 %v3817_v51, %v2433_v26 }
0x17f6   : > { %v2699_v52 = vpop.permute.xlu0 %2698 }
0x17f7   : > { %v2701_v53 = vmul.f32 %v3817_v51, %v2699_v52 }
0x17f9   : > { %2703 = vrot.lane.b32.xlu1 %v2701_v53, %s4018_s25 }
0x186b   : > { %v2704_v54 = vpop.permute.xlu1 %2703 }
0x186c   : > { %v2706_v55 = vadd.f32 %v2704_v54, %v2696_v7 }
0x186e   : > { %3818 = vtanh.f32 %v2706_v55 }
0x1878   : > { %v3819_v57 = vpop.eup %3818 }
0x1879   : > { %2709 = vrot.lane.b32.xlu0 %v3819_v57, %s4017_s14 }
0x187d   : > { %2721 = vrot.lane.b32.xlu0 %v2534_v28, %s4019_s24 }
0x18eb   : > { %v2710_v63 = vpop.permute.xlu0 %2709 }
0x18ec   : > { %v2712_v0 = vmul.f32 %v3817_v51, %v2710_v63 }
0x18ee   : > { %2714 = vrot.lane.b32.xlu1 %v2712_v0, %s4018_s25  ;;  %s2830_s25 = sadd.s32 %s3990_s12, %s3005_s15  ;;  %s2819_s12 = scalar_lea.sflag [#allocation10], %s389_s11 }
0x18ef   : > { %v2722_v13 = vpop.permute.xlu0 %2721  ;;  %s3006_s28 = sshll.u32 %s2830_s25, 7 }
0x18f0   : > { %2724 = vst.msk [vmem:[#allocation3] sm:$0x1] %vm805_vm3, %v2722_v13  ;;  %s4631_s22 = scalar_lea.hbm %s4730_s20, %s3006_s28 }
0x18f2   : > { %2727 = vrot.lane.b32.xlu1 %v2706_v55, %s4019_s24 }
0x1960   : > { %v2715_v4 = vpop.permute.xlu1 %2714 }
0x1961   : > { %2717 = vst.msk [vmem:[#allocation7 + $0x7] sm:$0x1] %vm805_vm3, %v2715_v4  ;;  %2725 = vst.msk [vmem:[#allocation4] sm:$0x1] %vm805_vm3, %v2715_v4 }
0x1964   : > { %v2728_v14 = vpop.permute.xlu1 %2727 }
0x1965   : > { %2730 = vst.msk [vmem:[#allocation5] sm:$0x1] %vm805_vm3, %v2728_v14 }
0x1968   : > { %v2735_v40 = vld [vmem:[#allocation7] sm:$0xff] }
0x1969   : > { %3423 = vmatmul.mubr.msk.f32.vlgmr.msra.gmra.mrb[24].mxu1 %vm421_vm2, %v2735_v40 }
0x1a3c   : > { %v2812_v2 = vpop.f32.mrb[24].mxu1 }
0x1a3d   : > { %v2813_v3 = vadd.f32 %v3002_v1, %v2812_v2  ;;  %v3424_v5 = vpop.f32.mrb[25].mxu1 }
0x1a3f   : > { %2817 = vst.msk [vmem:[%s391_s26] sm:$0xff] %vm2816_vm4, %v2813_v3 }
0x1a40   : > { %3917 = shalt.err (!%p3914_p11)
}
0x1a41   : > { %s3918_s11 = scalar_lea.hbm %s4631_s22, 128  ;;  %s3922_s21 = scalar_lea.hbm %s4730_s20, 512 }
0x1a42   : > { %p3919_p13 = scmp.ne.s32.totalorder %s4631_s22, %s3918_s11  ;;  %p3923_p0 = scmp.lt.u32.totalorder %s4631_s22, %s4730_s20 }
0x1a43   : > { %p3924_p8 = scmp.lt.u32.totalorder %s3922_s21, %s3918_s11  ;;  %p3926_p12 = scmp.lt.u32.totalorder %s3918_s11, %s4631_s22 }
0x1a44   : > { %p3920_p3 = pnand %p3919_p13, %p4731_p1 }
0x1a45   : > { %p3925_p10 = por %p3924_p8, %p3923_p0 }
0x1a46   : > { %p3921_p2 = pneg %p3920_p3 }
0x1a47   : > { %p3927_p4 = por %p3926_p12, %p3925_p10 }
0x1a49   : > { %p3928_p5 = pnand %p3927_p4, %p3921_p2 }
0x1a4b   : > { %3931 = shalt.err (!%p3928_p5)
}
0x1a4c   : > { %3593 = dma.vmem_to_hbm [thread:$0]  (%p4731_p1), %s4633_s16, 128, %s4631_s22, %s2819_s12  }
0x1a4d PF: > { %s4732_s25 = sld [smem:[#allocation22_spill]]  ;;  %s4733_s19 = sld [smem:[#allocation18_spill]] }
0x1a4e   : > { %s4734_s30 = sld [smem:[#allocation25_spill]] }
0x1a53   : > { %p3615_p6 = scmp.ge.s32.totalorder %s4732_s25, 2  ;;  %s2846_s28 = sand.u32 1, %s4733_s19  }
0x1a54   : > { %p4735_p7 = scmp.ne.s32.totalorder %s4734_s30, 0  ;;  %s2847_s24 = scalar_lea.sflag [#allocation10], %s2846_s28 }
0x1a56   : > { %p3606_p9 = pnand %p3615_p6, %p4735_p7 }
0x1a58   : > { %3973 = dma.done.wait (!%p3606_p9), %s2847_s24, 128  }
0x1a59   : > { %3975 = vsyncadd (!%p3606_p9), %s2847_s24, 4294967168  ;;  %s24_s16 = sadd.s32 1, %s4732_s25   ;;  %s4736_s17 = sld [smem:[#allocation19_spill]] }
0x1a5a   : > { %p21_p11 = scmp.ge.s32.totalorder %s24_s16, 6   ;;  %s4737_s11 = sld [smem:[#allocation26_spill]] }
0x1a5b   : > { %s4738_s12 = sld [smem:[#allocation20_spill]]  ;;  %s4739_s13 = sld [smem:[#allocation21_spill]] }
0x1a5c   : > { %s4740_s14 = sld [smem:[#allocation23_spill]]  ;;  %s4741_s15 = sld [smem:[#allocation24_spill]] }
0x1a5d   : > { %s4742_s30 = smov %s3982_s10  ;;  %23 = sbr.rel (!%p21_p11) target bundleno = 9 (0x9), region = 108 }
0x1a5f   : > { %s4743_s10 = smov %s4736_s17 }
0x1a64   :  { %2852 = vsyncpa [#allocation9], 1 }
0x1a65   :  { %2854 = vsyncpa [#allocation9 + $0x1], 1 }
0x1a66   :  { %2855 = vsyncpa [#allocation12], 1 }
0x1a67   :  { %2856 = vsyncpa [#allocation10], 1 }
0x1a68   :  { %2858 = vsyncpa [#allocation10 + $0x1], 1 }

</bundles_post_ra>
